<compile_context>
chip_gen: v5e
topology: v5e:2x2
jax: 0.10.0
libtpu: 0.0.40
codegen_flags: <defaults>
</compile_context>

<pallas_src>
import numpy as np
import jax
import jax.numpy as jnp
from jax.experimental import pallas as pl
from jax.experimental.pallas import tpu as pltpu

HS = 8            # spatial size of the internal 8x8 feature maps
M = HS * HS       # 64 flattened spatial positions per sample

# Tap orderings (shared between the kernel and the host-side weight packing).
STEM_TAPS = tuple((bi, bj) for bi in (-1, 0) for bj in (-1, 0))          # 2x2
RES_TAPS = tuple((dy, dx) for dy in (-1, 0, 1) for dx in (-1, 0, 1))     # 3x3


def _deconv_phase_taps(pr, pc):
    dys = (0, -1) if pr == 0 else (1, 0)
    dxs = (0, -1) if pc == 0 else (1, 0)
    return tuple((dy, dx) for dy in dys for dx in dxs)


# ------------------------------ Pallas kernel ------------------------------

def respose_kernel(xs_ref, smat_ref, w_stem_ref, w_r1_ref, w_r2_ref,
                   w_dec_ref, sb_ref, w_fin_ref, fb_ref, out_ref):
    """One batch sample per grid step; all 5 layers fused, VMEM resident."""
    f32 = jnp.float32

    def shift(z, dy, dx):
        # out[i*8+j] = z[(i+dy)*8+(j+dx)] if in bounds else 0, via a 0/1
        # shift matrix on the MXU (keeps everything as plain 2-D dots).
        if dy == 0 and dx == 0:
            return z
        return jnp.dot(smat_ref[dy + 1, dx + 1], z, preferred_element_type=f32)

    def conv(x, taps, get_w):
        # x: (64, Cin);  y[p] = sum_t x[p + offset_t] @ W_t  (zero padded)
        acc = None
        for t, (dy, dx) in enumerate(taps):
            z = shift(jnp.dot(x, get_w(t), preferred_element_type=f32), dy, dx)
            acc = z if acc is None else acc + z
        return acc

    def bn(y, row):
        # folded batch norm: y * scale + bias (rows packed into sb_ref)
        return y * sb_ref[row:row + 1, :] + sb_ref[row + 1:row + 2, :]

    xs = xs_ref[0]                                            # (64, 16) s2d in

    # ---- backbone: stem (3x3 s2 conv == 2x2 s1 conv on space-to-depth) ----
    h = jnp.maximum(bn(conv(xs, STEM_TAPS, lambda t: w_stem_ref[t]), 0), 0.0)
    identity = h                                              # (64, 8)

    # ---- backbone: basic residual block (two 3x3 s1 convs) ----
    y = jnp.maximum(bn(conv(h, RES_TAPS, lambda t: w_r1_ref[t]), 2), 0.0)
    y = bn(conv(y, RES_TAPS, lambda t: w_r2_ref[t]), 4)
    h = jnp.maximum(y + identity, 0.0)                        # (64, 8)

    # ---- head: sub-pixel deconv (4 phases) + BN + ReLU + 1x1 heatmap conv ----
    for pr in (0, 1):
        for pc in (0, 1):
            ph = pr * 2 + pc
            z = conv(h, _deconv_phase_taps(pr, pc),
                     lambda t, ph=ph: w_dec_ref[ph, t])
            z = jnp.maximum(bn(z, 6), 0.0)
            heat = jnp.dot(z, w_fin_ref[...],
                           preferred_element_type=f32) + fb_ref[...]
            out_ref[0, ph] = heat                             # (64, n_joints)


# --------------------------- host-side packing ------------------------------

def _bn_fold(key, c, eps=1e-5):
    k1, k2, k3, k4 = jax.random.split(key, 4)
    gamma = jax.random.uniform(k1, (c,), minval=0.5, maxval=1.5)
    beta = 0.1 * jax.random.normal(k2, (c,))
    mean = 0.1 * jax.random.normal(k3, (c,))
    var = jax.random.uniform(k4, (c,), minval=0.5, maxval=1.5)
    scale = gamma / jnp.sqrt(var + eps)
    bias = beta - mean * scale
    return scale, bias


def _shift_matrices(h=HS, w=HS):
    # S[dy+1, dx+1][p, q] = 1 iff q == (i+dy)*w + (j+dx) (in bounds), p = i*w+j
    m = np.zeros((3, 3, h * w, h * w), np.float32)
    for dy in (-1, 0, 1):
        for dx in (-1, 0, 1):
            for i in range(h):
                for j in range(w):
                    si, sj = i + dy, j + dx
                    if 0 <= si < h and 0 <= sj < w:
                        m[dy + 1, dx + 1, i * w + j, si * w + sj] = 1.0
    return jnp.asarray(m)


def _pack_stem(w33):
    # 3x3 stride-2 pad-1 conv  ==  2x2 stride-1 conv on space-to-depth input.
    _, _, cin, cout = w33.shape
    w_np = np.asarray(w33)
    d_of = {(-1, 1): 0, (0, 0): 1, (0, 1): 2}      # (block offset, phase) -> tap
    mats = []
    for bi, bj in STEM_TAPS:
        m = np.zeros((2, 2, cin, cout), np.float32)
        for pr in (0, 1):
            for pc in (0, 1):
                di, dj = d_of.get((bi, pr)), d_of.get((bj, pc))
                if di is not None and dj is not None:
                    m[pr, pc] = w_np[di, dj]
        mats.append(m.reshape(4 * cin, cout))      # channel order matches s2d
    return jnp.asarray(np.stack(mats, 0))          # (4, 4*cin, cout)


def _pack_res(w33):
    kh, kw, cin, cout = w33.shape
    return w33.reshape(kh * kw, cin, cout)         # tap t = di*3 + dj


def _pack_deconv(wt):
    # ConvTranspose2d(k=4, s=2, p=1), torch weight layout (Cin, Cout, kh, kw):
    # per output phase (pr, pc) it is a 2x2 conv whose taps select fixed
    # (kr, kc) planes of wt.
    wt_np = np.asarray(wt)
    k_of = {(0, 0): 1, (0, -1): 3, (1, 1): 0, (1, 0): 2}   # (phase, dy) -> k idx
    phases = []
    for pr in (0, 1):
        for pc in (0, 1):
            taps = [wt_np[:, :, k_of[(pr, dy)], k_of[(pc, dx)]]
                    for (dy, dx) in _deconv_phase_taps(pr, pc)]
            phases.append(np.stack(taps, 0))               # (4, cin, cout)
    return jnp.asarray(np.stack(phases, 0))                # (4, 4, cin, cout)


def init_params(key, c_in=4, c_feat=8, n_joints=6):
    ks = jax.random.split(key, 10)
    conv1_w = 0.1 * jax.random.normal(ks[0], (3, 3, c_in, c_feat))      # HWIO
    res1_w = 0.1 * jax.random.normal(ks[2], (3, 3, c_feat, c_feat))
    res2_w = 0.1 * jax.random.normal(ks[4], (3, 3, c_feat, c_feat))
    deconv_wt = 0.1 * jax.random.normal(ks[6], (c_feat, c_feat, 4, 4))  # torch
    final_w = 0.1 * jax.random.normal(ks[8], (1, 1, c_feat, n_joints))
    final_b = 0.1 * jax.random.normal(ks[9], (n_joints,))

    bn1, rbn1 = _bn_fold(ks[1], c_feat), _bn_fold(ks[3], c_feat)
    rbn2, dbn = _bn_fold(ks[5], c_feat), _bn_fold(ks[7], c_feat)

    return {
        "smat": _shift_matrices(),                 # (3, 3, 64, 64)
        "w_stem": _pack_stem(conv1_w),             # (4, 4*c_in, c_feat)
        "w_r1": _pack_res(res1_w),                 # (9, c_feat, c_feat)
        "w_r2": _pack_res(res2_w),                 # (9, c_feat, c_feat)
        "w_dec": _pack_deconv(deconv_wt),          # (4, 4, c_feat, c_feat)
        # rows: [stem_s, stem_b, r1_s, r1_b, r2_s, r2_b, dec_s, dec_b]
        "sb": jnp.stack([bn1[0], bn1[1], rbn1[0], rbn1[1],
                         rbn2[0], rbn2[1], dbn[0], dbn[1]], axis=0),
        "w_fin": final_w.reshape(c_feat, n_joints),
        "fb": final_b.reshape(1, n_joints),
    }


# -------------------------------- forward -----------------------------------

def respose_net_forward(params, x_nchw):
    B, C, H, W = x_nchw.shape                     # (2, 4, 16, 16)
    n_joints = params["w_fin"].shape[-1]
    x = x_nchw.astype(jnp.float32)

    # space-to-depth (pure re-layout): NCHW -> (B, 64, 4*C)
    xs = x.reshape(B, C, HS, 2, HS, 2)
    xs = jnp.transpose(xs, (0, 2, 4, 3, 5, 1)).reshape(B, M, 4 * C)

    out = pl.pallas_call(
        respose_kernel,
        out_shape=jax.ShapeDtypeStruct((B, 4, M, n_joints), jnp.float32),
        grid=(B,),
        in_specs=[
            pl.BlockSpec((1, M, 4 * C), lambda b: (b, 0, 0)),            # xs
            pl.BlockSpec((3, 3, M, M), lambda b: (0, 0, 0, 0)),          # shift
            pl.BlockSpec(params["w_stem"].shape, lambda b: (0, 0, 0)),
            pl.BlockSpec(params["w_r1"].shape, lambda b: (0, 0, 0)),
            pl.BlockSpec(params["w_r2"].shape, lambda b: (0, 0, 0)),
            pl.BlockSpec(params["w_dec"].shape, lambda b: (0, 0, 0, 0)),
            pl.BlockSpec(params["sb"].shape, lambda b: (0, 0)),
            pl.BlockSpec(params["w_fin"].shape, lambda b: (0, 0)),
            pl.BlockSpec(params["fb"].shape, lambda b: (0, 0)),
        ],
        out_specs=pl.BlockSpec((1, 4, M, n_joints), lambda b: (b, 0, 0, 0)),
        compiler_params=pltpu.CompilerParams(
            dimension_semantics=("parallel",)),
    )(xs, params["smat"], params["w_stem"], params["w_r1"], params["w_r2"],
      params["w_dec"], params["sb"], params["w_fin"], params["fb"])

    # interleave the four deconv phases and emit NCHW (tiny XLA reshape).
    y = out.reshape(B, 2, 2, HS, HS, n_joints)    # [b, pr, pc, i, j, c]
    y = jnp.transpose(y, (0, 5, 3, 1, 4, 2))      # [b, c, i, pr, j, pc]
    return y.reshape(B, n_joints, 2 * HS, 2 * HS)  # NCHW, 16x16


# ---------------------------------- main -------------------------------------

if __name__ == "__main__":
    key = jax.random.PRNGKey(0)
    pkey, xkey = jax.random.split(key)
    params = init_params(pkey, c_in=4, c_feat=8, n_joints=6)
    x = jax.random.normal(xkey, (2, 4, 16, 16), jnp.float32)   # NCHW input

    fwd = jax.jit(respose_net_forward)
    out = jax.block_until_ready(fwd(params, x))

    assert out.shape == (2, 6, 16, 16), out.shape
    assert bool(jnp.all(jnp.isfinite(out)))
    print("KERNEL_OK")
</pallas_src>

<mosaic_0001>
module attributes {stable_mosaic.version = 11 : i64} {
  func.func @respose_kernel(%arg0: i32, %arg1: memref<1x64x16xf32, #tpu.memory_space<vmem>>, %arg2: memref<3x3x64x64xf32, #tpu.memory_space<vmem>>, %arg3: memref<4x16x8xf32, #tpu.memory_space<vmem>>, %arg4: memref<9x8x8xf32, #tpu.memory_space<vmem>>, %arg5: memref<9x8x8xf32, #tpu.memory_space<vmem>>, %arg6: memref<4x4x8x8xf32, #tpu.memory_space<vmem>>, %arg7: memref<8x8xf32, #tpu.memory_space<vmem>>, %arg8: memref<8x6xf32, #tpu.memory_space<vmem>>, %arg9: memref<1x6xf32, #tpu.memory_space<vmem>>, %arg10: memref<1x4x64x6xf32, #tpu.memory_space<vmem>>) attributes {dimension_semantics = [#tpu.dimension_semantics<parallel>], iteration_bounds = array<i64: 2>, scalar_prefetch = 0 : i64, scratch_operands = 0 : i64, tpu.core_type = #tpu.core_type<tc>, window_params = [{transform_indices = @transform_0, window_bounds = array<i64: 1, 64, 16>}, {pipeline_mode = #tpu.pipeline_mode<synchronous>, transform_indices = @transform_1, window_bounds = array<i64: 3, 3, 64, 64>}, {pipeline_mode = #tpu.pipeline_mode<synchronous>, transform_indices = @transform_2, window_bounds = array<i64: 4, 16, 8>}, {pipeline_mode = #tpu.pipeline_mode<synchronous>, transform_indices = @transform_3, window_bounds = array<i64: 9, 8, 8>}, {pipeline_mode = #tpu.pipeline_mode<synchronous>, transform_indices = @transform_4, window_bounds = array<i64: 9, 8, 8>}, {pipeline_mode = #tpu.pipeline_mode<synchronous>, transform_indices = @transform_5, window_bounds = array<i64: 4, 4, 8, 8>}, {pipeline_mode = #tpu.pipeline_mode<synchronous>, transform_indices = @transform_6, window_bounds = array<i64: 8, 8>}, {pipeline_mode = #tpu.pipeline_mode<synchronous>, transform_indices = @transform_7, window_bounds = array<i64: 8, 6>}, {pipeline_mode = #tpu.pipeline_mode<synchronous>, transform_indices = @transform_8, window_bounds = array<i64: 1, 6>}, {transform_indices = @transform_9, window_bounds = array<i64: 1, 4, 64, 6>}]} {
    %c0 = arith.constant 0 : index
    %c0_0 = arith.constant 0 : index
    %c0_1 = arith.constant 0 : index
    %0 = vector.load %arg1[%c0, %c0_0, %c0_1] : memref<1x64x16xf32, #tpu.memory_space<vmem>>, vector<1x64x16xf32>
    %1 = vector.shape_cast %0 : vector<1x64x16xf32> to vector<64x16xf32>
    %c0_2 = arith.constant 0 : index
    %c0_3 = arith.constant 0 : index
    %c0_4 = arith.constant 0 : index
    %2 = vector.load %arg3[%c0_2, %c0_3, %c0_4] : memref<4x16x8xf32, #tpu.memory_space<vmem>>, vector<1x16x8xf32>
    %3 = vector.shape_cast %2 : vector<1x16x8xf32> to vector<16x8xf32>
    %cst = arith.constant dense<0.000000e+00> : vector<64x8xf32>
    %4 = tpu.matmul %1, %3, %cst {dimension_numbers = #tpu.dot_dimension_numbers<[1], [0], [0], [1], [0, 0, 1, 1], [], []>} : vector<64x16xf32>, vector<16x8xf32>, vector<64x8xf32> -> vector<64x8xf32>
    %c0_5 = arith.constant 0 : index
    %c0_6 = arith.constant 0 : index
    %c0_7 = arith.constant 0 : index
    %c0_8 = arith.constant 0 : index
    %5 = vector.load %arg2[%c0_5, %c0_6, %c0_7, %c0_8] : memref<3x3x64x64xf32, #tpu.memory_space<vmem>>, vector<1x1x64x64xf32>
    %6 = vector.shape_cast %5 : vector<1x1x64x64xf32> to vector<64x64xf32>
    %cst_9 = arith.constant dense<0.000000e+00> : vector<64x8xf32>
    %7 = tpu.matmul %6, %4, %cst_9 {dimension_numbers = #tpu.dot_dimension_numbers<[1], [0], [0], [1], [0, 0, 1, 1], [], []>} : vector<64x64xf32>, vector<64x8xf32>, vector<64x8xf32> -> vector<64x8xf32>
    %c1 = arith.constant 1 : index
    %c0_10 = arith.constant 0 : index
    %c0_11 = arith.constant 0 : index
    %8 = vector.load %arg3[%c1, %c0_10, %c0_11] : memref<4x16x8xf32, #tpu.memory_space<vmem>>, vector<1x16x8xf32>
    %9 = vector.shape_cast %8 : vector<1x16x8xf32> to vector<16x8xf32>
    %cst_12 = arith.constant dense<0.000000e+00> : vector<64x8xf32>
    %10 = tpu.matmul %1, %9, %cst_12 {dimension_numbers = #tpu.dot_dimension_numbers<[1], [0], [0], [1], [0, 0, 1, 1], [], []>} : vector<64x16xf32>, vector<16x8xf32>, vector<64x8xf32> -> vector<64x8xf32>
    %c0_13 = arith.constant 0 : index
    %c1_14 = arith.constant 1 : index
    %c0_15 = arith.constant 0 : index
    %c0_16 = arith.constant 0 : index
    %11 = vector.load %arg2[%c0_13, %c1_14, %c0_15, %c0_16] : memref<3x3x64x64xf32, #tpu.memory_space<vmem>>, vector<1x1x64x64xf32>
    %12 = vector.shape_cast %11 : vector<1x1x64x64xf32> to vector<64x64xf32>
    %cst_17 = arith.constant dense<0.000000e+00> : vector<64x8xf32>
    %13 = tpu.matmul %12, %10, %cst_17 {dimension_numbers = #tpu.dot_dimension_numbers<[1], [0], [0], [1], [0, 0, 1, 1], [], []>} : vector<64x64xf32>, vector<64x8xf32>, vector<64x8xf32> -> vector<64x8xf32>
    %14 = arith.addf %7, %13 : vector<64x8xf32>
    %c2 = arith.constant 2 : index
    %c0_18 = arith.constant 0 : index
    %c0_19 = arith.constant 0 : index
    %15 = vector.load %arg3[%c2, %c0_18, %c0_19] : memref<4x16x8xf32, #tpu.memory_space<vmem>>, vector<1x16x8xf32>
    %16 = vector.shape_cast %15 : vector<1x16x8xf32> to vector<16x8xf32>
    %cst_20 = arith.constant dense<0.000000e+00> : vector<64x8xf32>
    %17 = tpu.matmul %1, %16, %cst_20 {dimension_numbers = #tpu.dot_dimension_numbers<[1], [0], [0], [1], [0, 0, 1, 1], [], []>} : vector<64x16xf32>, vector<16x8xf32>, vector<64x8xf32> -> vector<64x8xf32>
    %c1_21 = arith.constant 1 : index
    %c0_22 = arith.constant 0 : index
    %c0_23 = arith.constant 0 : index
    %c0_24 = arith.constant 0 : index
    %18 = vector.load %arg2[%c1_21, %c0_22, %c0_23, %c0_24] : memref<3x3x64x64xf32, #tpu.memory_space<vmem>>, vector<1x1x64x64xf32>
    %19 = vector.shape_cast %18 : vector<1x1x64x64xf32> to vector<64x64xf32>
    %cst_25 = arith.constant dense<0.000000e+00> : vector<64x8xf32>
    %20 = tpu.matmul %19, %17, %cst_25 {dimension_numbers = #tpu.dot_dimension_numbers<[1], [0], [0], [1], [0, 0, 1, 1], [], []>} : vector<64x64xf32>, vector<64x8xf32>, vector<64x8xf32> -> vector<64x8xf32>
    %21 = arith.addf %14, %20 : vector<64x8xf32>
    %c3 = arith.constant 3 : index
    %c0_26 = arith.constant 0 : index
    %c0_27 = arith.constant 0 : index
    %22 = vector.load %arg3[%c3, %c0_26, %c0_27] : memref<4x16x8xf32, #tpu.memory_space<vmem>>, vector<1x16x8xf32>
    %23 = vector.shape_cast %22 : vector<1x16x8xf32> to vector<16x8xf32>
    %cst_28 = arith.constant dense<0.000000e+00> : vector<64x8xf32>
    %24 = tpu.matmul %1, %23, %cst_28 {dimension_numbers = #tpu.dot_dimension_numbers<[1], [0], [0], [1], [0, 0, 1, 1], [], []>} : vector<64x16xf32>, vector<16x8xf32>, vector<64x8xf32> -> vector<64x8xf32>
    %25 = arith.addf %21, %24 : vector<64x8xf32>
    %c0_29 = arith.constant 0 : index
    %c0_30 = arith.constant 0 : index
    %26 = vector.load %arg7[%c0_29, %c0_30] : memref<8x8xf32, #tpu.memory_space<vmem>>, vector<1x8xf32>
    %27 = vector.broadcast %26 : vector<1x8xf32> to vector<64x8xf32>
    %28 = arith.mulf %25, %27 : vector<64x8xf32>
    %c1_31 = arith.constant 1 : index
    %c0_32 = arith.constant 0 : index
    %29 = vector.load %arg7[%c1_31, %c0_32] : memref<8x8xf32, #tpu.memory_space<vmem>>, vector<1x8xf32>
    %30 = vector.broadcast %29 : vector<1x8xf32> to vector<64x8xf32>
    %31 = arith.addf %28, %30 : vector<64x8xf32>
    %cst_33 = arith.constant 0.000000e+00 : f32
    %32 = vector.broadcast %cst_33 : f32 to vector<64x8xf32>
    %33 = arith.maximumf %31, %32 : vector<64x8xf32>
    %c0_34 = arith.constant 0 : index
    %c0_35 = arith.constant 0 : index
    %c0_36 = arith.constant 0 : index
    %34 = vector.load %arg4[%c0_34, %c0_35, %c0_36] : memref<9x8x8xf32, #tpu.memory_space<vmem>>, vector<1x8x8xf32>
    %35 = vector.shape_cast %34 : vector<1x8x8xf32> to vector<8x8xf32>
    %cst_37 = arith.constant dense<0.000000e+00> : vector<64x8xf32>
    %36 = tpu.matmul %33, %35, %cst_37 {dimension_numbers = #tpu.dot_dimension_numbers<[1], [0], [0], [1], [0, 0, 1, 1], [], []>} : vector<64x8xf32>, vector<8x8xf32>, vector<64x8xf32> -> vector<64x8xf32>
    %c0_38 = arith.constant 0 : index
    %c0_39 = arith.constant 0 : index
    %c0_40 = arith.constant 0 : index
    %c0_41 = arith.constant 0 : index
    %37 = vector.load %arg2[%c0_38, %c0_39, %c0_40, %c0_41] : memref<3x3x64x64xf32, #tpu.memory_space<vmem>>, vector<1x1x64x64xf32>
    %38 = vector.shape_cast %37 : vector<1x1x64x64xf32> to vector<64x64xf32>
    %cst_42 = arith.constant dense<0.000000e+00> : vector<64x8xf32>
    %39 = tpu.matmul %38, %36, %cst_42 {dimension_numbers = #tpu.dot_dimension_numbers<[1], [0], [0], [1], [0, 0, 1, 1], [], []>} : vector<64x64xf32>, vector<64x8xf32>, vector<64x8xf32> -> vector<64x8xf32>
    %c1_43 = arith.constant 1 : index
    %c0_44 = arith.constant 0 : index
    %c0_45 = arith.constant 0 : index
    %40 = vector.load %arg4[%c1_43, %c0_44, %c0_45] : memref<9x8x8xf32, #tpu.memory_space<vmem>>, vector<1x8x8xf32>
    %41 = vector.shape_cast %40 : vector<1x8x8xf32> to vector<8x8xf32>
    %cst_46 = arith.constant dense<0.000000e+00> : vector<64x8xf32>
    %42 = tpu.matmul %33, %41, %cst_46 {dimension_numbers = #tpu.dot_dimension_numbers<[1], [0], [0], [1], [0, 0, 1, 1], [], []>} : vector<64x8xf32>, vector<8x8xf32>, vector<64x8xf32> -> vector<64x8xf32>
    %c0_47 = arith.constant 0 : index
    %c1_48 = arith.constant 1 : index
    %c0_49 = arith.constant 0 : index
    %c0_50 = arith.constant 0 : index
    %43 = vector.load %arg2[%c0_47, %c1_48, %c0_49, %c0_50] : memref<3x3x64x64xf32, #tpu.memory_space<vmem>>, vector<1x1x64x64xf32>
    %44 = vector.shape_cast %43 : vector<1x1x64x64xf32> to vector<64x64xf32>
    %cst_51 = arith.constant dense<0.000000e+00> : vector<64x8xf32>
    %45 = tpu.matmul %44, %42, %cst_51 {dimension_numbers = #tpu.dot_dimension_numbers<[1], [0], [0], [1], [0, 0, 1, 1], [], []>} : vector<64x64xf32>, vector<64x8xf32>, vector<64x8xf32> -> vector<64x8xf32>
    %46 = arith.addf %39, %45 : vector<64x8xf32>
    %c2_52 = arith.constant 2 : index
    %c0_53 = arith.constant 0 : index
    %c0_54 = arith.constant 0 : index
    %47 = vector.load %arg4[%c2_52, %c0_53, %c0_54] : memref<9x8x8xf32, #tpu.memory_space<vmem>>, vector<1x8x8xf32>
    %48 = vector.shape_cast %47 : vector<1x8x8xf32> to vector<8x8xf32>
    %cst_55 = arith.constant dense<0.000000e+00> : vector<64x8xf32>
    %49 = tpu.matmul %33, %48, %cst_55 {dimension_numbers = #tpu.dot_dimension_numbers<[1], [0], [0], [1], [0, 0, 1, 1], [], []>} : vector<64x8xf32>, vector<8x8xf32>, vector<64x8xf32> -> vector<64x8xf32>
    %c0_56 = arith.constant 0 : index
    %c2_57 = arith.constant 2 : index
    %c0_58 = arith.constant 0 : index
    %c0_59 = arith.constant 0 : index
    %50 = vector.load %arg2[%c0_56, %c2_57, %c0_58, %c0_59] : memref<3x3x64x64xf32, #tpu.memory_space<vmem>>, vector<1x1x64x64xf32>
    %51 = vector.shape_cast %50 : vector<1x1x64x64xf32> to vector<64x64xf32>
    %cst_60 = arith.constant dense<0.000000e+00> : vector<64x8xf32>
    %52 = tpu.matmul %51, %49, %cst_60 {dimension_numbers = #tpu.dot_dimension_numbers<[1], [0], [0], [1], [0, 0, 1, 1], [], []>} : vector<64x64xf32>, vector<64x8xf32>, vector<64x8xf32> -> vector<64x8xf32>
    %53 = arith.addf %46, %52 : vector<64x8xf32>
    %c3_61 = arith.constant 3 : index
    %c0_62 = arith.constant 0 : index
    %c0_63 = arith.constant 0 : index
    %54 = vector.load %arg4[%c3_61, %c0_62, %c0_63] : memref<9x8x8xf32, #tpu.memory_space<vmem>>, vector<1x8x8xf32>
    %55 = vector.shape_cast %54 : vector<1x8x8xf32> to vector<8x8xf32>
    %cst_64 = arith.constant dense<0.000000e+00> : vector<64x8xf32>
    %56 = tpu.matmul %33, %55, %cst_64 {dimension_numbers = #tpu.dot_dimension_numbers<[1], [0], [0], [1], [0, 0, 1, 1], [], []>} : vector<64x8xf32>, vector<8x8xf32>, vector<64x8xf32> -> vector<64x8xf32>
    %c1_65 = arith.constant 1 : index
    %c0_66 = arith.constant 0 : index
    %c0_67 = arith.constant 0 : index
    %c0_68 = arith.constant 0 : index
    %57 = vector.load %arg2[%c1_65, %c0_66, %c0_67, %c0_68] : memref<3x3x64x64xf32, #tpu.memory_space<vmem>>, vector<1x1x64x64xf32>
    %58 = vector.shape_cast %57 : vector<1x1x64x64xf32> to vector<64x64xf32>
    %cst_69 = arith.constant dense<0.000000e+00> : vector<64x8xf32>
    %59 = tpu.matmul %58, %56, %cst_69 {dimension_numbers = #tpu.dot_dimension_numbers<[1], [0], [0], [1], [0, 0, 1, 1], [], []>} : vector<64x64xf32>, vector<64x8xf32>, vector<64x8xf32> -> vector<64x8xf32>
    %60 = arith.addf %53, %59 : vector<64x8xf32>
    %c4 = arith.constant 4 : index
    %c0_70 = arith.constant 0 : index
    %c0_71 = arith.constant 0 : index
    %61 = vector.load %arg4[%c4, %c0_70, %c0_71] : memref<9x8x8xf32, #tpu.memory_space<vmem>>, vector<1x8x8xf32>
    %62 = vector.shape_cast %61 : vector<1x8x8xf32> to vector<8x8xf32>
    %cst_72 = arith.constant dense<0.000000e+00> : vector<64x8xf32>
    %63 = tpu.matmul %33, %62, %cst_72 {dimension_numbers = #tpu.dot_dimension_numbers<[1], [0], [0], [1], [0, 0, 1, 1], [], []>} : vector<64x8xf32>, vector<8x8xf32>, vector<64x8xf32> -> vector<64x8xf32>
    %64 = arith.addf %60, %63 : vector<64x8xf32>
    %c5 = arith.constant 5 : index
    %c0_73 = arith.constant 0 : index
    %c0_74 = arith.constant 0 : index
    %65 = vector.load %arg4[%c5, %c0_73, %c0_74] : memref<9x8x8xf32, #tpu.memory_space<vmem>>, vector<1x8x8xf32>
    %66 = vector.shape_cast %65 : vector<1x8x8xf32> to vector<8x8xf32>
    %cst_75 = arith.constant dense<0.000000e+00> : vector<64x8xf32>
    %67 = tpu.matmul %33, %66, %cst_75 {dimension_numbers = #tpu.dot_dimension_numbers<[1], [0], [0], [1], [0, 0, 1, 1], [], []>} : vector<64x8xf32>, vector<8x8xf32>, vector<64x8xf32> -> vector<64x8xf32>
    %c1_76 = arith.constant 1 : index
    %c2_77 = arith.constant 2 : index
    %c0_78 = arith.constant 0 : index
    %c0_79 = arith.constant 0 : index
    %68 = vector.load %arg2[%c1_76, %c2_77, %c0_78, %c0_79] : memref<3x3x64x64xf32, #tpu.memory_space<vmem>>, vector<1x1x64x64xf32>
    %69 = vector.shape_cast %68 : vector<1x1x64x64xf32> to vector<64x64xf32>
    %cst_80 = arith.constant dense<0.000000e+00> : vector<64x8xf32>
    %70 = tpu.matmul %69, %67, %cst_80 {dimension_numbers = #tpu.dot_dimension_numbers<[1], [0], [0], [1], [0, 0, 1, 1], [], []>} : vector<64x64xf32>, vector<64x8xf32>, vector<64x8xf32> -> vector<64x8xf32>
    %71 = arith.addf %64, %70 : vector<64x8xf32>
    %c6 = arith.constant 6 : index
    %c0_81 = arith.constant 0 : index
    %c0_82 = arith.constant 0 : index
    %72 = vector.load %arg4[%c6, %c0_81, %c0_82] : memref<9x8x8xf32, #tpu.memory_space<vmem>>, vector<1x8x8xf32>
    %73 = vector.shape_cast %72 : vector<1x8x8xf32> to vector<8x8xf32>
    %cst_83 = arith.constant dense<0.000000e+00> : vector<64x8xf32>
    %74 = tpu.matmul %33, %73, %cst_83 {dimension_numbers = #tpu.dot_dimension_numbers<[1], [0], [0], [1], [0, 0, 1, 1], [], []>} : vector<64x8xf32>, vector<8x8xf32>, vector<64x8xf32> -> vector<64x8xf32>
    %c2_84 = arith.constant 2 : index
    %c0_85 = arith.constant 0 : index
    %c0_86 = arith.constant 0 : index
    %c0_87 = arith.constant 0 : index
    %75 = vector.load %arg2[%c2_84, %c0_85, %c0_86, %c0_87] : memref<3x3x64x64xf32, #tpu.memory_space<vmem>>, vector<1x1x64x64xf32>
    %76 = vector.shape_cast %75 : vector<1x1x64x64xf32> to vector<64x64xf32>
    %cst_88 = arith.constant dense<0.000000e+00> : vector<64x8xf32>
    %77 = tpu.matmul %76, %74, %cst_88 {dimension_numbers = #tpu.dot_dimension_numbers<[1], [0], [0], [1], [0, 0, 1, 1], [], []>} : vector<64x64xf32>, vector<64x8xf32>, vector<64x8xf32> -> vector<64x8xf32>
    %78 = arith.addf %71, %77 : vector<64x8xf32>
    %c7 = arith.constant 7 : index
    %c0_89 = arith.constant 0 : index
    %c0_90 = arith.constant 0 : index
    %79 = vector.load %arg4[%c7, %c0_89, %c0_90] : memref<9x8x8xf32, #tpu.memory_space<vmem>>, vector<1x8x8xf32>
    %80 = vector.shape_cast %79 : vector<1x8x8xf32> to vector<8x8xf32>
    %cst_91 = arith.constant dense<0.000000e+00> : vector<64x8xf32>
    %81 = tpu.matmul %33, %80, %cst_91 {dimension_numbers = #tpu.dot_dimension_numbers<[1], [0], [0], [1], [0, 0, 1, 1], [], []>} : vector<64x8xf32>, vector<8x8xf32>, vector<64x8xf32> -> vector<64x8xf32>
    %c2_92 = arith.constant 2 : index
    %c1_93 = arith.constant 1 : index
    %c0_94 = arith.constant 0 : index
    %c0_95 = arith.constant 0 : index
    %82 = vector.load %arg2[%c2_92, %c1_93, %c0_94, %c0_95] : memref<3x3x64x64xf32, #tpu.memory_space<vmem>>, vector<1x1x64x64xf32>
    %83 = vector.shape_cast %82 : vector<1x1x64x64xf32> to vector<64x64xf32>
    %cst_96 = arith.constant dense<0.000000e+00> : vector<64x8xf32>
    %84 = tpu.matmul %83, %81, %cst_96 {dimension_numbers = #tpu.dot_dimension_numbers<[1], [0], [0], [1], [0, 0, 1, 1], [], []>} : vector<64x64xf32>, vector<64x8xf32>, vector<64x8xf32> -> vector<64x8xf32>
    %85 = arith.addf %78, %84 : vector<64x8xf32>
    %c8 = arith.constant 8 : index
    %c0_97 = arith.constant 0 : index
    %c0_98 = arith.constant 0 : index
    %86 = vector.load %arg4[%c8, %c0_97, %c0_98] : memref<9x8x8xf32, #tpu.memory_space<vmem>>, vector<1x8x8xf32>
    %87 = vector.shape_cast %86 : vector<1x8x8xf32> to vector<8x8xf32>
    %cst_99 = arith.constant dense<0.000000e+00> : vector<64x8xf32>
    %88 = tpu.matmul %33, %87, %cst_99 {dimension_numbers = #tpu.dot_dimension_numbers<[1], [0], [0], [1], [0, 0, 1, 1], [], []>} : vector<64x8xf32>, vector<8x8xf32>, vector<64x8xf32> -> vector<64x8xf32>
    %c2_100 = arith.constant 2 : index
    %c2_101 = arith.constant 2 : index
    %c0_102 = arith.constant 0 : index
    %c0_103 = arith.constant 0 : index
    %89 = vector.load %arg2[%c2_100, %c2_101, %c0_102, %c0_103] : memref<3x3x64x64xf32, #tpu.memory_space<vmem>>, vector<1x1x64x64xf32>
    %90 = vector.shape_cast %89 : vector<1x1x64x64xf32> to vector<64x64xf32>
    %cst_104 = arith.constant dense<0.000000e+00> : vector<64x8xf32>
    %91 = tpu.matmul %90, %88, %cst_104 {dimension_numbers = #tpu.dot_dimension_numbers<[1], [0], [0], [1], [0, 0, 1, 1], [], []>} : vector<64x64xf32>, vector<64x8xf32>, vector<64x8xf32> -> vector<64x8xf32>
    %92 = arith.addf %85, %91 : vector<64x8xf32>
    %c2_105 = arith.constant 2 : index
    %c0_106 = arith.constant 0 : index
    %93 = vector.load %arg7[%c2_105, %c0_106] : memref<8x8xf32, #tpu.memory_space<vmem>>, vector<1x8xf32>
    %94 = vector.broadcast %93 : vector<1x8xf32> to vector<64x8xf32>
    %95 = arith.mulf %92, %94 : vector<64x8xf32>
    %c3_107 = arith.constant 3 : index
    %c0_108 = arith.constant 0 : index
    %96 = vector.load %arg7[%c3_107, %c0_108] : memref<8x8xf32, #tpu.memory_space<vmem>>, vector<1x8xf32>
    %97 = vector.broadcast %96 : vector<1x8xf32> to vector<64x8xf32>
    %98 = arith.addf %95, %97 : vector<64x8xf32>
    %cst_109 = arith.constant 0.000000e+00 : f32
    %99 = vector.broadcast %cst_109 : f32 to vector<64x8xf32>
    %100 = arith.maximumf %98, %99 : vector<64x8xf32>
    %c0_110 = arith.constant 0 : index
    %c0_111 = arith.constant 0 : index
    %c0_112 = arith.constant 0 : index
    %101 = vector.load %arg5[%c0_110, %c0_111, %c0_112] : memref<9x8x8xf32, #tpu.memory_space<vmem>>, vector<1x8x8xf32>
    %102 = vector.shape_cast %101 : vector<1x8x8xf32> to vector<8x8xf32>
    %cst_113 = arith.constant dense<0.000000e+00> : vector<64x8xf32>
    %103 = tpu.matmul %100, %102, %cst_113 {dimension_numbers = #tpu.dot_dimension_numbers<[1], [0], [0], [1], [0, 0, 1, 1], [], []>} : vector<64x8xf32>, vector<8x8xf32>, vector<64x8xf32> -> vector<64x8xf32>
    %c0_114 = arith.constant 0 : index
    %c0_115 = arith.constant 0 : index
    %c0_116 = arith.constant 0 : index
    %c0_117 = arith.constant 0 : index
    %104 = vector.load %arg2[%c0_114, %c0_115, %c0_116, %c0_117] : memref<3x3x64x64xf32, #tpu.memory_space<vmem>>, vector<1x1x64x64xf32>
    %105 = vector.shape_cast %104 : vector<1x1x64x64xf32> to vector<64x64xf32>
    %cst_118 = arith.constant dense<0.000000e+00> : vector<64x8xf32>
    %106 = tpu.matmul %105, %103, %cst_118 {dimension_numbers = #tpu.dot_dimension_numbers<[1], [0], [0], [1], [0, 0, 1, 1], [], []>} : vector<64x64xf32>, vector<64x8xf32>, vector<64x8xf32> -> vector<64x8xf32>
    %c1_119 = arith.constant 1 : index
    %c0_120 = arith.constant 0 : index
    %c0_121 = arith.constant 0 : index
    %107 = vector.load %arg5[%c1_119, %c0_120, %c0_121] : memref<9x8x8xf32, #tpu.memory_space<vmem>>, vector<1x8x8xf32>
    %108 = vector.shape_cast %107 : vector<1x8x8xf32> to vector<8x8xf32>
    %cst_122 = arith.constant dense<0.000000e+00> : vector<64x8xf32>
    %109 = tpu.matmul %100, %108, %cst_122 {dimension_numbers = #tpu.dot_dimension_numbers<[1], [0], [0], [1], [0, 0, 1, 1], [], []>} : vector<64x8xf32>, vector<8x8xf32>, vector<64x8xf32> -> vector<64x8xf32>
    %c0_123 = arith.constant 0 : index
    %c1_124 = arith.constant 1 : index
    %c0_125 = arith.constant 0 : index
    %c0_126 = arith.constant 0 : index
    %110 = vector.load %arg2[%c0_123, %c1_124, %c0_125, %c0_126] : memref<3x3x64x64xf32, #tpu.memory_space<vmem>>, vector<1x1x64x64xf32>
    %111 = vector.shape_cast %110 : vector<1x1x64x64xf32> to vector<64x64xf32>
    %cst_127 = arith.constant dense<0.000000e+00> : vector<64x8xf32>
    %112 = tpu.matmul %111, %109, %cst_127 {dimension_numbers = #tpu.dot_dimension_numbers<[1], [0], [0], [1], [0, 0, 1, 1], [], []>} : vector<64x64xf32>, vector<64x8xf32>, vector<64x8xf32> -> vector<64x8xf32>
    %113 = arith.addf %106, %112 : vector<64x8xf32>
    %c2_128 = arith.constant 2 : index
    %c0_129 = arith.constant 0 : index
    %c0_130 = arith.constant 0 : index
    %114 = vector.load %arg5[%c2_128, %c0_129, %c0_130] : memref<9x8x8xf32, #tpu.memory_space<vmem>>, vector<1x8x8xf32>
    %115 = vector.shape_cast %114 : vector<1x8x8xf32> to vector<8x8xf32>
    %cst_131 = arith.constant dense<0.000000e+00> : vector<64x8xf32>
    %116 = tpu.matmul %100, %115, %cst_131 {dimension_numbers = #tpu.dot_dimension_numbers<[1], [0], [0], [1], [0, 0, 1, 1], [], []>} : vector<64x8xf32>, vector<8x8xf32>, vector<64x8xf32> -> vector<64x8xf32>
    %c0_132 = arith.constant 0 : index
    %c2_133 = arith.constant 2 : index
    %c0_134 = arith.constant 0 : index
    %c0_135 = arith.constant 0 : index
    %117 = vector.load %arg2[%c0_132, %c2_133, %c0_134, %c0_135] : memref<3x3x64x64xf32, #tpu.memory_space<vmem>>, vector<1x1x64x64xf32>
    %118 = vector.shape_cast %117 : vector<1x1x64x64xf32> to vector<64x64xf32>
    %cst_136 = arith.constant dense<0.000000e+00> : vector<64x8xf32>
    %119 = tpu.matmul %118, %116, %cst_136 {dimension_numbers = #tpu.dot_dimension_numbers<[1], [0], [0], [1], [0, 0, 1, 1], [], []>} : vector<64x64xf32>, vector<64x8xf32>, vector<64x8xf32> -> vector<64x8xf32>
    %120 = arith.addf %113, %119 : vector<64x8xf32>
    %c3_137 = arith.constant 3 : index
    %c0_138 = arith.constant 0 : index
    %c0_139 = arith.constant 0 : index
    %121 = vector.load %arg5[%c3_137, %c0_138, %c0_139] : memref<9x8x8xf32, #tpu.memory_space<vmem>>, vector<1x8x8xf32>
    %122 = vector.shape_cast %121 : vector<1x8x8xf32> to vector<8x8xf32>
    %cst_140 = arith.constant dense<0.000000e+00> : vector<64x8xf32>
    %123 = tpu.matmul %100, %122, %cst_140 {dimension_numbers = #tpu.dot_dimension_numbers<[1], [0], [0], [1], [0, 0, 1, 1], [], []>} : vector<64x8xf32>, vector<8x8xf32>, vector<64x8xf32> -> vector<64x8xf32>
    %c1_141 = arith.constant 1 : index
    %c0_142 = arith.constant 0 : index
    %c0_143 = arith.constant 0 : index
    %c0_144 = arith.constant 0 : index
    %124 = vector.load %arg2[%c1_141, %c0_142, %c0_143, %c0_144] : memref<3x3x64x64xf32, #tpu.memory_space<vmem>>, vector<1x1x64x64xf32>
    %125 = vector.shape_cast %124 : vector<1x1x64x64xf32> to vector<64x64xf32>
    %cst_145 = arith.constant dense<0.000000e+00> : vector<64x8xf32>
    %126 = tpu.matmul %125, %123, %cst_145 {dimension_numbers = #tpu.dot_dimension_numbers<[1], [0], [0], [1], [0, 0, 1, 1], [], []>} : vector<64x64xf32>, vector<64x8xf32>, vector<64x8xf32> -> vector<64x8xf32>
    %127 = arith.addf %120, %126 : vector<64x8xf32>
    %c4_146 = arith.constant 4 : index
    %c0_147 = arith.constant 0 : index
    %c0_148 = arith.constant 0 : index
    %128 = vector.load %arg5[%c4_146, %c0_147, %c0_148] : memref<9x8x8xf32, #tpu.memory_space<vmem>>, vector<1x8x8xf32>
    %129 = vector.shape_cast %128 : vector<1x8x8xf32> to vector<8x8xf32>
    %cst_149 = arith.constant dense<0.000000e+00> : vector<64x8xf32>
    %130 = tpu.matmul %100, %129, %cst_149 {dimension_numbers = #tpu.dot_dimension_numbers<[1], [0], [0], [1], [0, 0, 1, 1], [], []>} : vector<64x8xf32>, vector<8x8xf32>, vector<64x8xf32> -> vector<64x8xf32>
    %131 = arith.addf %127, %130 : vector<64x8xf32>
    %c5_150 = arith.constant 5 : index
    %c0_151 = arith.constant 0 : index
    %c0_152 = arith.constant 0 : index
    %132 = vector.load %arg5[%c5_150, %c0_151, %c0_152] : memref<9x8x8xf32, #tpu.memory_space<vmem>>, vector<1x8x8xf32>
    %133 = vector.shape_cast %132 : vector<1x8x8xf32> to vector<8x8xf32>
    %cst_153 = arith.constant dense<0.000000e+00> : vector<64x8xf32>
    %134 = tpu.matmul %100, %133, %cst_153 {dimension_numbers = #tpu.dot_dimension_numbers<[1], [0], [0], [1], [0, 0, 1, 1], [], []>} : vector<64x8xf32>, vector<8x8xf32>, vector<64x8xf32> -> vector<64x8xf32>
    %c1_154 = arith.constant 1 : index
    %c2_155 = arith.constant 2 : index
    %c0_156 = arith.constant 0 : index
    %c0_157 = arith.constant 0 : index
    %135 = vector.load %arg2[%c1_154, %c2_155, %c0_156, %c0_157] : memref<3x3x64x64xf32, #tpu.memory_space<vmem>>, vector<1x1x64x64xf32>
    %136 = vector.shape_cast %135 : vector<1x1x64x64xf32> to vector<64x64xf32>
    %cst_158 = arith.constant dense<0.000000e+00> : vector<64x8xf32>
    %137 = tpu.matmul %136, %134, %cst_158 {dimension_numbers = #tpu.dot_dimension_numbers<[1], [0], [0], [1], [0, 0, 1, 1], [], []>} : vector<64x64xf32>, vector<64x8xf32>, vector<64x8xf32> -> vector<64x8xf32>
    %138 = arith.addf %131, %137 : vector<64x8xf32>
    %c6_159 = arith.constant 6 : index
    %c0_160 = arith.constant 0 : index
    %c0_161 = arith.constant 0 : index
    %139 = vector.load %arg5[%c6_159, %c0_160, %c0_161] : memref<9x8x8xf32, #tpu.memory_space<vmem>>, vector<1x8x8xf32>
    %140 = vector.shape_cast %139 : vector<1x8x8xf32> to vector<8x8xf32>
    %cst_162 = arith.constant dense<0.000000e+00> : vector<64x8xf32>
    %141 = tpu.matmul %100, %140, %cst_162 {dimension_numbers = #tpu.dot_dimension_numbers<[1], [0], [0], [1], [0, 0, 1, 1], [], []>} : vector<64x8xf32>, vector<8x8xf32>, vector<64x8xf32> -> vector<64x8xf32>
    %c2_163 = arith.constant 2 : index
    %c0_164 = arith.constant 0 : index
    %c0_165 = arith.constant 0 : index
    %c0_166 = arith.constant 0 : index
    %142 = vector.load %arg2[%c2_163, %c0_164, %c0_165, %c0_166] : memref<3x3x64x64xf32, #tpu.memory_space<vmem>>, vector<1x1x64x64xf32>
    %143 = vector.shape_cast %142 : vector<1x1x64x64xf32> to vector<64x64xf32>
    %cst_167 = arith.constant dense<0.000000e+00> : vector<64x8xf32>
    %144 = tpu.matmul %143, %141, %cst_167 {dimension_numbers = #tpu.dot_dimension_numbers<[1], [0], [0], [1], [0, 0, 1, 1], [], []>} : vector<64x64xf32>, vector<64x8xf32>, vector<64x8xf32> -> vector<64x8xf32>
    %145 = arith.addf %138, %144 : vector<64x8xf32>
    %c7_168 = arith.constant 7 : index
    %c0_169 = arith.constant 0 : index
    %c0_170 = arith.constant 0 : index
    %146 = vector.load %arg5[%c7_168, %c0_169, %c0_170] : memref<9x8x8xf32, #tpu.memory_space<vmem>>, vector<1x8x8xf32>
    %147 = vector.shape_cast %146 : vector<1x8x8xf32> to vector<8x8xf32>
    %cst_171 = arith.constant dense<0.000000e+00> : vector<64x8xf32>
    %148 = tpu.matmul %100, %147, %cst_171 {dimension_numbers = #tpu.dot_dimension_numbers<[1], [0], [0], [1], [0, 0, 1, 1], [], []>} : vector<64x8xf32>, vector<8x8xf32>, vector<64x8xf32> -> vector<64x8xf32>
    %c2_172 = arith.constant 2 : index
    %c1_173 = arith.constant 1 : index
    %c0_174 = arith.constant 0 : index
    %c0_175 = arith.constant 0 : index
    %149 = vector.load %arg2[%c2_172, %c1_173, %c0_174, %c0_175] : memref<3x3x64x64xf32, #tpu.memory_space<vmem>>, vector<1x1x64x64xf32>
    %150 = vector.shape_cast %149 : vector<1x1x64x64xf32> to vector<64x64xf32>
    %cst_176 = arith.constant dense<0.000000e+00> : vector<64x8xf32>
    %151 = tpu.matmul %150, %148, %cst_176 {dimension_numbers = #tpu.dot_dimension_numbers<[1], [0], [0], [1], [0, 0, 1, 1], [], []>} : vector<64x64xf32>, vector<64x8xf32>, vector<64x8xf32> -> vector<64x8xf32>
    %152 = arith.addf %145, %151 : vector<64x8xf32>
    %c8_177 = arith.constant 8 : index
    %c0_178 = arith.constant 0 : index
    %c0_179 = arith.constant 0 : index
    %153 = vector.load %arg5[%c8_177, %c0_178, %c0_179] : memref<9x8x8xf32, #tpu.memory_space<vmem>>, vector<1x8x8xf32>
    %154 = vector.shape_cast %153 : vector<1x8x8xf32> to vector<8x8xf32>
    %cst_180 = arith.constant dense<0.000000e+00> : vector<64x8xf32>
    %155 = tpu.matmul %100, %154, %cst_180 {dimension_numbers = #tpu.dot_dimension_numbers<[1], [0], [0], [1], [0, 0, 1, 1], [], []>} : vector<64x8xf32>, vector<8x8xf32>, vector<64x8xf32> -> vector<64x8xf32>
    %c2_181 = arith.constant 2 : index
    %c2_182 = arith.constant 2 : index
    %c0_183 = arith.constant 0 : index
    %c0_184 = arith.constant 0 : index
    %156 = vector.load %arg2[%c2_181, %c2_182, %c0_183, %c0_184] : memref<3x3x64x64xf32, #tpu.memory_space<vmem>>, vector<1x1x64x64xf32>
    %157 = vector.shape_cast %156 : vector<1x1x64x64xf32> to vector<64x64xf32>
    %cst_185 = arith.constant dense<0.000000e+00> : vector<64x8xf32>
    %158 = tpu.matmul %157, %155, %cst_185 {dimension_numbers = #tpu.dot_dimension_numbers<[1], [0], [0], [1], [0, 0, 1, 1], [], []>} : vector<64x64xf32>, vector<64x8xf32>, vector<64x8xf32> -> vector<64x8xf32>
    %159 = arith.addf %152, %158 : vector<64x8xf32>
    %c4_186 = arith.constant 4 : index
    %c0_187 = arith.constant 0 : index
    %160 = vector.load %arg7[%c4_186, %c0_187] : memref<8x8xf32, #tpu.memory_space<vmem>>, vector<1x8xf32>
    %161 = vector.broadcast %160 : vector<1x8xf32> to vector<64x8xf32>
    %162 = arith.mulf %159, %161 : vector<64x8xf32>
    %c5_188 = arith.constant 5 : index
    %c0_189 = arith.constant 0 : index
    %163 = vector.load %arg7[%c5_188, %c0_189] : memref<8x8xf32, #tpu.memory_space<vmem>>, vector<1x8xf32>
    %164 = vector.broadcast %163 : vector<1x8xf32> to vector<64x8xf32>
    %165 = arith.addf %162, %164 : vector<64x8xf32>
    %166 = arith.addf %165, %33 : vector<64x8xf32>
    %cst_190 = arith.constant 0.000000e+00 : f32
    %167 = vector.broadcast %cst_190 : f32 to vector<64x8xf32>
    %168 = arith.maximumf %166, %167 : vector<64x8xf32>
    %c0_191 = arith.constant 0 : index
    %c0_192 = arith.constant 0 : index
    %c0_193 = arith.constant 0 : index
    %c0_194 = arith.constant 0 : index
    %169 = vector.load %arg6[%c0_191, %c0_192, %c0_193, %c0_194] : memref<4x4x8x8xf32, #tpu.memory_space<vmem>>, vector<1x1x8x8xf32>
    %170 = vector.shape_cast %169 : vector<1x1x8x8xf32> to vector<8x8xf32>
    %cst_195 = arith.constant dense<0.000000e+00> : vector<64x8xf32>
    %171 = tpu.matmul %168, %170, %cst_195 {dimension_numbers = #tpu.dot_dimension_numbers<[1], [0], [0], [1], [0, 0, 1, 1], [], []>} : vector<64x8xf32>, vector<8x8xf32>, vector<64x8xf32> -> vector<64x8xf32>
    %c0_196 = arith.constant 0 : index
    %c1_197 = arith.constant 1 : index
    %c0_198 = arith.constant 0 : index
    %c0_199 = arith.constant 0 : index
    %172 = vector.load %arg6[%c0_196, %c1_197, %c0_198, %c0_199] : memref<4x4x8x8xf32, #tpu.memory_space<vmem>>, vector<1x1x8x8xf32>
    %173 = vector.shape_cast %172 : vector<1x1x8x8xf32> to vector<8x8xf32>
    %cst_200 = arith.constant dense<0.000000e+00> : vector<64x8xf32>
    %174 = tpu.matmul %168, %173, %cst_200 {dimension_numbers = #tpu.dot_dimension_numbers<[1], [0], [0], [1], [0, 0, 1, 1], [], []>} : vector<64x8xf32>, vector<8x8xf32>, vector<64x8xf32> -> vector<64x8xf32>
    %c1_201 = arith.constant 1 : index
    %c0_202 = arith.constant 0 : index
    %c0_203 = arith.constant 0 : index
    %c0_204 = arith.constant 0 : index
    %175 = vector.load %arg2[%c1_201, %c0_202, %c0_203, %c0_204] : memref<3x3x64x64xf32, #tpu.memory_space<vmem>>, vector<1x1x64x64xf32>
    %176 = vector.shape_cast %175 : vector<1x1x64x64xf32> to vector<64x64xf32>
    %cst_205 = arith.constant dense<0.000000e+00> : vector<64x8xf32>
    %177 = tpu.matmul %176, %174, %cst_205 {dimension_numbers = #tpu.dot_dimension_numbers<[1], [0], [0], [1], [0, 0, 1, 1], [], []>} : vector<64x64xf32>, vector<64x8xf32>, vector<64x8xf32> -> vector<64x8xf32>
    %178 = arith.addf %171, %177 : vector<64x8xf32>
    %c0_206 = arith.constant 0 : index
    %c2_207 = arith.constant 2 : index
    %c0_208 = arith.constant 0 : index
    %c0_209 = arith.constant 0 : index
    %179 = vector.load %arg6[%c0_206, %c2_207, %c0_208, %c0_209] : memref<4x4x8x8xf32, #tpu.memory_space<vmem>>, vector<1x1x8x8xf32>
    %180 = vector.shape_cast %179 : vector<1x1x8x8xf32> to vector<8x8xf32>
    %cst_210 = arith.constant dense<0.000000e+00> : vector<64x8xf32>
    %181 = tpu.matmul %168, %180, %cst_210 {dimension_numbers = #tpu.dot_dimension_numbers<[1], [0], [0], [1], [0, 0, 1, 1], [], []>} : vector<64x8xf32>, vector<8x8xf32>, vector<64x8xf32> -> vector<64x8xf32>
    %c0_211 = arith.constant 0 : index
    %c1_212 = arith.constant 1 : index
    %c0_213 = arith.constant 0 : index
    %c0_214 = arith.constant 0 : index
    %182 = vector.load %arg2[%c0_211, %c1_212, %c0_213, %c0_214] : memref<3x3x64x64xf32, #tpu.memory_space<vmem>>, vector<1x1x64x64xf32>
    %183 = vector.shape_cast %182 : vector<1x1x64x64xf32> to vector<64x64xf32>
    %cst_215 = arith.constant dense<0.000000e+00> : vector<64x8xf32>
    %184 = tpu.matmul %183, %181, %cst_215 {dimension_numbers = #tpu.dot_dimension_numbers<[1], [0], [0], [1], [0, 0, 1, 1], [], []>} : vector<64x64xf32>, vector<64x8xf32>, vector<64x8xf32> -> vector<64x8xf32>
    %185 = arith.addf %178, %184 : vector<64x8xf32>
    %c0_216 = arith.constant 0 : index
    %c3_217 = arith.constant 3 : index
    %c0_218 = arith.constant 0 : index
    %c0_219 = arith.constant 0 : index
    %186 = vector.load %arg6[%c0_216, %c3_217, %c0_218, %c0_219] : memref<4x4x8x8xf32, #tpu.memory_space<vmem>>, vector<1x1x8x8xf32>
    %187 = vector.shape_cast %186 : vector<1x1x8x8xf32> to vector<8x8xf32>
    %cst_220 = arith.constant dense<0.000000e+00> : vector<64x8xf32>
    %188 = tpu.matmul %168, %187, %cst_220 {dimension_numbers = #tpu.dot_dimension_numbers<[1], [0], [0], [1], [0, 0, 1, 1], [], []>} : vector<64x8xf32>, vector<8x8xf32>, vector<64x8xf32> -> vector<64x8xf32>
    %c0_221 = arith.constant 0 : index
    %c0_222 = arith.constant 0 : index
    %c0_223 = arith.constant 0 : index
    %c0_224 = arith.constant 0 : index
    %189 = vector.load %arg2[%c0_221, %c0_222, %c0_223, %c0_224] : memref<3x3x64x64xf32, #tpu.memory_space<vmem>>, vector<1x1x64x64xf32>
    %190 = vector.shape_cast %189 : vector<1x1x64x64xf32> to vector<64x64xf32>
    %cst_225 = arith.constant dense<0.000000e+00> : vector<64x8xf32>
    %191 = tpu.matmul %190, %188, %cst_225 {dimension_numbers = #tpu.dot_dimension_numbers<[1], [0], [0], [1], [0, 0, 1, 1], [], []>} : vector<64x64xf32>, vector<64x8xf32>, vector<64x8xf32> -> vector<64x8xf32>
    %192 = arith.addf %185, %191 : vector<64x8xf32>
    %c6_226 = arith.constant 6 : index
    %c0_227 = arith.constant 0 : index
    %193 = vector.load %arg7[%c6_226, %c0_227] : memref<8x8xf32, #tpu.memory_space<vmem>>, vector<1x8xf32>
    %194 = vector.broadcast %193 : vector<1x8xf32> to vector<64x8xf32>
    %195 = arith.mulf %192, %194 : vector<64x8xf32>
    %c7_228 = arith.constant 7 : index
    %c0_229 = arith.constant 0 : index
    %196 = vector.load %arg7[%c7_228, %c0_229] : memref<8x8xf32, #tpu.memory_space<vmem>>, vector<1x8xf32>
    %197 = vector.broadcast %196 : vector<1x8xf32> to vector<64x8xf32>
    %198 = arith.addf %195, %197 : vector<64x8xf32>
    %cst_230 = arith.constant 0.000000e+00 : f32
    %199 = vector.broadcast %cst_230 : f32 to vector<64x8xf32>
    %200 = arith.maximumf %198, %199 : vector<64x8xf32>
    %c0_231 = arith.constant 0 : index
    %c0_232 = arith.constant 0 : index
    %201 = vector.load %arg8[%c0_231, %c0_232] : memref<8x6xf32, #tpu.memory_space<vmem>>, vector<8x6xf32>
    %cst_233 = arith.constant dense<0.000000e+00> : vector<64x6xf32>
    %202 = tpu.matmul %200, %201, %cst_233 {dimension_numbers = #tpu.dot_dimension_numbers<[1], [0], [0], [1], [0, 0, 1, 1], [], []>} : vector<64x8xf32>, vector<8x6xf32>, vector<64x6xf32> -> vector<64x6xf32>
    %c0_234 = arith.constant 0 : index
    %c0_235 = arith.constant 0 : index
    %203 = vector.load %arg9[%c0_234, %c0_235] : memref<1x6xf32, #tpu.memory_space<vmem>>, vector<1x6xf32>
    %204 = vector.broadcast %203 : vector<1x6xf32> to vector<64x6xf32>
    %205 = arith.addf %202, %204 : vector<64x6xf32>
    %c0_236 = arith.constant 0 : index
    %c0_237 = arith.constant 0 : index
    %c0_238 = arith.constant 0 : index
    %c0_239 = arith.constant 0 : index
    %206 = vector.load %arg10[%c0_236, %c0_237, %c0_238, %c0_239] : memref<1x4x64x6xf32, #tpu.memory_space<vmem>>, vector<1x1x64x6xf32>
    %207 = vector.shape_cast %206 : vector<1x1x64x6xf32> to vector<64x6xf32>
    %208 = vector.shape_cast %205 : vector<64x6xf32> to vector<1x1x64x6xf32>
    tpu.vector_store %arg10[%c0_236, %c0_237, %c0_238, %c0_239], %208 {strides = array<i32>} : memref<1x4x64x6xf32, #tpu.memory_space<vmem>>, vector<1x1x64x6xf32>,
    %c1_240 = arith.constant 1 : index
    %c0_241 = arith.constant 0 : index
    %c0_242 = arith.constant 0 : index
    %c0_243 = arith.constant 0 : index
    %209 = vector.load %arg6[%c1_240, %c0_241, %c0_242, %c0_243] : memref<4x4x8x8xf32, #tpu.memory_space<vmem>>, vector<1x1x8x8xf32>
    %210 = vector.shape_cast %209 : vector<1x1x8x8xf32> to vector<8x8xf32>
    %cst_244 = arith.constant dense<0.000000e+00> : vector<64x8xf32>
    %211 = tpu.matmul %168, %210, %cst_244 {dimension_numbers = #tpu.dot_dimension_numbers<[1], [0], [0], [1], [0, 0, 1, 1], [], []>} : vector<64x8xf32>, vector<8x8xf32>, vector<64x8xf32> -> vector<64x8xf32>
    %c1_245 = arith.constant 1 : index
    %c2_246 = arith.constant 2 : index
    %c0_247 = arith.constant 0 : index
    %c0_248 = arith.constant 0 : index
    %212 = vector.load %arg2[%c1_245, %c2_246, %c0_247, %c0_248] : memref<3x3x64x64xf32, #tpu.memory_space<vmem>>, vector<1x1x64x64xf32>
    %213 = vector.shape_cast %212 : vector<1x1x64x64xf32> to vector<64x64xf32>
    %cst_249 = arith.constant dense<0.000000e+00> : vector<64x8xf32>
    %214 = tpu.matmul %213, %211, %cst_249 {dimension_numbers = #tpu.dot_dimension_numbers<[1], [0], [0], [1], [0, 0, 1, 1], [], []>} : vector<64x64xf32>, vector<64x8xf32>, vector<64x8xf32> -> vector<64x8xf32>
    %c1_250 = arith.constant 1 : index
    %c1_251 = arith.constant 1 : index
    %c0_252 = arith.constant 0 : index
    %c0_253 = arith.constant 0 : index
    %215 = vector.load %arg6[%c1_250, %c1_251, %c0_252, %c0_253] : memref<4x4x8x8xf32, #tpu.memory_space<vmem>>, vector<1x1x8x8xf32>
    %216 = vector.shape_cast %215 : vector<1x1x8x8xf32> to vector<8x8xf32>
    %cst_254 = arith.constant dense<0.000000e+00> : vector<64x8xf32>
    %217 = tpu.matmul %168, %216, %cst_254 {dimension_numbers = #tpu.dot_dimension_numbers<[1], [0], [0], [1], [0, 0, 1, 1], [], []>} : vector<64x8xf32>, vector<8x8xf32>, vector<64x8xf32> -> vector<64x8xf32>
    %218 = arith.addf %214, %217 : vector<64x8xf32>
    %c1_255 = arith.constant 1 : index
    %c2_256 = arith.constant 2 : index
    %c0_257 = arith.constant 0 : index
    %c0_258 = arith.constant 0 : index
    %219 = vector.load %arg6[%c1_255, %c2_256, %c0_257, %c0_258] : memref<4x4x8x8xf32, #tpu.memory_space<vmem>>, vector<1x1x8x8xf32>
    %220 = vector.shape_cast %219 : vector<1x1x8x8xf32> to vector<8x8xf32>
    %cst_259 = arith.constant dense<0.000000e+00> : vector<64x8xf32>
    %221 = tpu.matmul %168, %220, %cst_259 {dimension_numbers = #tpu.dot_dimension_numbers<[1], [0], [0], [1], [0, 0, 1, 1], [], []>} : vector<64x8xf32>, vector<8x8xf32>, vector<64x8xf32> -> vector<64x8xf32>
    %c0_260 = arith.constant 0 : index
    %c2_261 = arith.constant 2 : index
    %c0_262 = arith.constant 0 : index
    %c0_263 = arith.constant 0 : index
    %222 = vector.load %arg2[%c0_260, %c2_261, %c0_262, %c0_263] : memref<3x3x64x64xf32, #tpu.memory_space<vmem>>, vector<1x1x64x64xf32>
    %223 = vector.shape_cast %222 : vector<1x1x64x64xf32> to vector<64x64xf32>
    %cst_264 = arith.constant dense<0.000000e+00> : vector<64x8xf32>
    %224 = tpu.matmul %223, %221, %cst_264 {dimension_numbers = #tpu.dot_dimension_numbers<[1], [0], [0], [1], [0, 0, 1, 1], [], []>} : vector<64x64xf32>, vector<64x8xf32>, vector<64x8xf32> -> vector<64x8xf32>
    %225 = arith.addf %218, %224 : vector<64x8xf32>
    %c1_265 = arith.constant 1 : index
    %c3_266 = arith.constant 3 : index
    %c0_267 = arith.constant 0 : index
    %c0_268 = arith.constant 0 : index
    %226 = vector.load %arg6[%c1_265, %c3_266, %c0_267, %c0_268] : memref<4x4x8x8xf32, #tpu.memory_space<vmem>>, vector<1x1x8x8xf32>
    %227 = vector.shape_cast %226 : vector<1x1x8x8xf32> to vector<8x8xf32>
    %cst_269 = arith.constant dense<0.000000e+00> : vector<64x8xf32>
    %228 = tpu.matmul %168, %227, %cst_269 {dimension_numbers = #tpu.dot_dimension_numbers<[1], [0], [0], [1], [0, 0, 1, 1], [], []>} : vector<64x8xf32>, vector<8x8xf32>, vector<64x8xf32> -> vector<64x8xf32>
    %c0_270 = arith.constant 0 : index
    %c1_271 = arith.constant 1 : index
    %c0_272 = arith.constant 0 : index
    %c0_273 = arith.constant 0 : index
    %229 = vector.load %arg2[%c0_270, %c1_271, %c0_272, %c0_273] : memref<3x3x64x64xf32, #tpu.memory_space<vmem>>, vector<1x1x64x64xf32>
    %230 = vector.shape_cast %229 : vector<1x1x64x64xf32> to vector<64x64xf32>
    %cst_274 = arith.constant dense<0.000000e+00> : vector<64x8xf32>
    %231 = tpu.matmul %230, %228, %cst_274 {dimension_numbers = #tpu.dot_dimension_numbers<[1], [0], [0], [1], [0, 0, 1, 1], [], []>} : vector<64x64xf32>, vector<64x8xf32>, vector<64x8xf32> -> vector<64x8xf32>
    %232 = arith.addf %225, %231 : vector<64x8xf32>
    %c6_275 = arith.constant 6 : index
    %c0_276 = arith.constant 0 : index
    %233 = vector.load %arg7[%c6_275, %c0_276] : memref<8x8xf32, #tpu.memory_space<vmem>>, vector<1x8xf32>
    %234 = vector.broadcast %233 : vector<1x8xf32> to vector<64x8xf32>
    %235 = arith.mulf %232, %234 : vector<64x8xf32>
    %c7_277 = arith.constant 7 : index
    %c0_278 = arith.constant 0 : index
    %236 = vector.load %arg7[%c7_277, %c0_278] : memref<8x8xf32, #tpu.memory_space<vmem>>, vector<1x8xf32>
    %237 = vector.broadcast %236 : vector<1x8xf32> to vector<64x8xf32>
    %238 = arith.addf %235, %237 : vector<64x8xf32>
    %cst_279 = arith.constant 0.000000e+00 : f32
    %239 = vector.broadcast %cst_279 : f32 to vector<64x8xf32>
    %240 = arith.maximumf %238, %239 : vector<64x8xf32>
    %c0_280 = arith.constant 0 : index
    %c0_281 = arith.constant 0 : index
    %241 = vector.load %arg8[%c0_280, %c0_281] : memref<8x6xf32, #tpu.memory_space<vmem>>, vector<8x6xf32>
    %cst_282 = arith.constant dense<0.000000e+00> : vector<64x6xf32>
    %242 = tpu.matmul %240, %241, %cst_282 {dimension_numbers = #tpu.dot_dimension_numbers<[1], [0], [0], [1], [0, 0, 1, 1], [], []>} : vector<64x8xf32>, vector<8x6xf32>, vector<64x6xf32> -> vector<64x6xf32>
    %c0_283 = arith.constant 0 : index
    %c0_284 = arith.constant 0 : index
    %243 = vector.load %arg9[%c0_283, %c0_284] : memref<1x6xf32, #tpu.memory_space<vmem>>, vector<1x6xf32>
    %244 = vector.broadcast %243 : vector<1x6xf32> to vector<64x6xf32>
    %245 = arith.addf %242, %244 : vector<64x6xf32>
    %c0_285 = arith.constant 0 : index
    %c1_286 = arith.constant 1 : index
    %c0_287 = arith.constant 0 : index
    %c0_288 = arith.constant 0 : index
    %246 = vector.load %arg10[%c0_285, %c1_286, %c0_287, %c0_288] : memref<1x4x64x6xf32, #tpu.memory_space<vmem>>, vector<1x1x64x6xf32>
    %247 = vector.shape_cast %246 : vector<1x1x64x6xf32> to vector<64x6xf32>
    %248 = vector.shape_cast %245 : vector<64x6xf32> to vector<1x1x64x6xf32>
    tpu.vector_store %arg10[%c0_285, %c1_286, %c0_287, %c0_288], %248 {strides = array<i32>} : memref<1x4x64x6xf32, #tpu.memory_space<vmem>>, vector<1x1x64x6xf32>,
    %c2_289 = arith.constant 2 : index
    %c0_290 = arith.constant 0 : index
    %c0_291 = arith.constant 0 : index
    %c0_292 = arith.constant 0 : index
    %249 = vector.load %arg6[%c2_289, %c0_290, %c0_291, %c0_292] : memref<4x4x8x8xf32, #tpu.memory_space<vmem>>, vector<1x1x8x8xf32>
    %250 = vector.shape_cast %249 : vector<1x1x8x8xf32> to vector<8x8xf32>
    %cst_293 = arith.constant dense<0.000000e+00> : vector<64x8xf32>
    %251 = tpu.matmul %168, %250, %cst_293 {dimension_numbers = #tpu.dot_dimension_numbers<[1], [0], [0], [1], [0, 0, 1, 1], [], []>} : vector<64x8xf32>, vector<8x8xf32>, vector<64x8xf32> -> vector<64x8xf32>
    %c2_294 = arith.constant 2 : index
    %c1_295 = arith.constant 1 : index
    %c0_296 = arith.constant 0 : index
    %c0_297 = arith.constant 0 : index
    %252 = vector.load %arg2[%c2_294, %c1_295, %c0_296, %c0_297] : memref<3x3x64x64xf32, #tpu.memory_space<vmem>>, vector<1x1x64x64xf32>
    %253 = vector.shape_cast %252 : vector<1x1x64x64xf32> to vector<64x64xf32>
    %cst_298 = arith.constant dense<0.000000e+00> : vector<64x8xf32>
    %254 = tpu.matmul %253, %251, %cst_298 {dimension_numbers = #tpu.dot_dimension_numbers<[1], [0], [0], [1], [0, 0, 1, 1], [], []>} : vector<64x64xf32>, vector<64x8xf32>, vector<64x8xf32> -> vector<64x8xf32>
    %c2_299 = arith.constant 2 : index
    %c1_300 = arith.constant 1 : index
    %c0_301 = arith.constant 0 : index
    %c0_302 = arith.constant 0 : index
    %255 = vector.load %arg6[%c2_299, %c1_300, %c0_301, %c0_302] : memref<4x4x8x8xf32, #tpu.memory_space<vmem>>, vector<1x1x8x8xf32>
    %256 = vector.shape_cast %255 : vector<1x1x8x8xf32> to vector<8x8xf32>
    %cst_303 = arith.constant dense<0.000000e+00> : vector<64x8xf32>
    %257 = tpu.matmul %168, %256, %cst_303 {dimension_numbers = #tpu.dot_dimension_numbers<[1], [0], [0], [1], [0, 0, 1, 1], [], []>} : vector<64x8xf32>, vector<8x8xf32>, vector<64x8xf32> -> vector<64x8xf32>
    %c2_304 = arith.constant 2 : index
    %c0_305 = arith.constant 0 : index
    %c0_306 = arith.constant 0 : index
    %c0_307 = arith.constant 0 : index
    %258 = vector.load %arg2[%c2_304, %c0_305, %c0_306, %c0_307] : memref<3x3x64x64xf32, #tpu.memory_space<vmem>>, vector<1x1x64x64xf32>
    %259 = vector.shape_cast %258 : vector<1x1x64x64xf32> to vector<64x64xf32>
    %cst_308 = arith.constant dense<0.000000e+00> : vector<64x8xf32>
    %260 = tpu.matmul %259, %257, %cst_308 {dimension_numbers = #tpu.dot_dimension_numbers<[1], [0], [0], [1], [0, 0, 1, 1], [], []>} : vector<64x64xf32>, vector<64x8xf32>, vector<64x8xf32> -> vector<64x8xf32>
    %261 = arith.addf %254, %260 : vector<64x8xf32>
    %c2_309 = arith.constant 2 : index
    %c2_310 = arith.constant 2 : index
    %c0_311 = arith.constant 0 : index
    %c0_312 = arith.constant 0 : index
    %262 = vector.load %arg6[%c2_309, %c2_310, %c0_311, %c0_312] : memref<4x4x8x8xf32, #tpu.memory_space<vmem>>, vector<1x1x8x8xf32>
    %263 = vector.shape_cast %262 : vector<1x1x8x8xf32> to vector<8x8xf32>
    %cst_313 = arith.constant dense<0.000000e+00> : vector<64x8xf32>
    %264 = tpu.matmul %168, %263, %cst_313 {dimension_numbers = #tpu.dot_dimension_numbers<[1], [0], [0], [1], [0, 0, 1, 1], [], []>} : vector<64x8xf32>, vector<8x8xf32>, vector<64x8xf32> -> vector<64x8xf32>
    %265 = arith.addf %261, %264 : vector<64x8xf32>
    %c2_314 = arith.constant 2 : index
    %c3_315 = arith.constant 3 : index
    %c0_316 = arith.constant 0 : index
    %c0_317 = arith.constant 0 : index
    %266 = vector.load %arg6[%c2_314, %c3_315, %c0_316, %c0_317] : memref<4x4x8x8xf32, #tpu.memory_space<vmem>>, vector<1x1x8x8xf32>
    %267 = vector.shape_cast %266 : vector<1x1x8x8xf32> to vector<8x8xf32>
    %cst_318 = arith.constant dense<0.000000e+00> : vector<64x8xf32>
    %268 = tpu.matmul %168, %267, %cst_318 {dimension_numbers = #tpu.dot_dimension_numbers<[1], [0], [0], [1], [0, 0, 1, 1], [], []>} : vector<64x8xf32>, vector<8x8xf32>, vector<64x8xf32> -> vector<64x8xf32>
    %c1_319 = arith.constant 1 : index
    %c0_320 = arith.constant 0 : index
    %c0_321 = arith.constant 0 : index
    %c0_322 = arith.constant 0 : index
    %269 = vector.load %arg2[%c1_319, %c0_320, %c0_321, %c0_322] : memref<3x3x64x64xf32, #tpu.memory_space<vmem>>, vector<1x1x64x64xf32>
    %270 = vector.shape_cast %269 : vector<1x1x64x64xf32> to vector<64x64xf32>
    %cst_323 = arith.constant dense<0.000000e+00> : vector<64x8xf32>
    %271 = tpu.matmul %270, %268, %cst_323 {dimension_numbers = #tpu.dot_dimension_numbers<[1], [0], [0], [1], [0, 0, 1, 1], [], []>} : vector<64x64xf32>, vector<64x8xf32>, vector<64x8xf32> -> vector<64x8xf32>
    %272 = arith.addf %265, %271 : vector<64x8xf32>
    %c6_324 = arith.constant 6 : index
    %c0_325 = arith.constant 0 : index
    %273 = vector.load %arg7[%c6_324, %c0_325] : memref<8x8xf32, #tpu.memory_space<vmem>>, vector<1x8xf32>
    %274 = vector.broadcast %273 : vector<1x8xf32> to vector<64x8xf32>
    %275 = arith.mulf %272, %274 : vector<64x8xf32>
    %c7_326 = arith.constant 7 : index
    %c0_327 = arith.constant 0 : index
    %276 = vector.load %arg7[%c7_326, %c0_327] : memref<8x8xf32, #tpu.memory_space<vmem>>, vector<1x8xf32>
    %277 = vector.broadcast %276 : vector<1x8xf32> to vector<64x8xf32>
    %278 = arith.addf %275, %277 : vector<64x8xf32>
    %cst_328 = arith.constant 0.000000e+00 : f32
    %279 = vector.broadcast %cst_328 : f32 to vector<64x8xf32>
    %280 = arith.maximumf %278, %279 : vector<64x8xf32>
    %c0_329 = arith.constant 0 : index
    %c0_330 = arith.constant 0 : index
    %281 = vector.load %arg8[%c0_329, %c0_330] : memref<8x6xf32, #tpu.memory_space<vmem>>, vector<8x6xf32>
    %cst_331 = arith.constant dense<0.000000e+00> : vector<64x6xf32>
    %282 = tpu.matmul %280, %281, %cst_331 {dimension_numbers = #tpu.dot_dimension_numbers<[1], [0], [0], [1], [0, 0, 1, 1], [], []>} : vector<64x8xf32>, vector<8x6xf32>, vector<64x6xf32> -> vector<64x6xf32>
    %c0_332 = arith.constant 0 : index
    %c0_333 = arith.constant 0 : index
    %283 = vector.load %arg9[%c0_332, %c0_333] : memref<1x6xf32, #tpu.memory_space<vmem>>, vector<1x6xf32>
    %284 = vector.broadcast %283 : vector<1x6xf32> to vector<64x6xf32>
    %285 = arith.addf %282, %284 : vector<64x6xf32>
    %c0_334 = arith.constant 0 : index
    %c2_335 = arith.constant 2 : index
    %c0_336 = arith.constant 0 : index
    %c0_337 = arith.constant 0 : index
    %286 = vector.load %arg10[%c0_334, %c2_335, %c0_336, %c0_337] : memref<1x4x64x6xf32, #tpu.memory_space<vmem>>, vector<1x1x64x6xf32>
    %287 = vector.shape_cast %286 : vector<1x1x64x6xf32> to vector<64x6xf32>
    %288 = vector.shape_cast %285 : vector<64x6xf32> to vector<1x1x64x6xf32>
    tpu.vector_store %arg10[%c0_334, %c2_335, %c0_336, %c0_337], %288 {strides = array<i32>} : memref<1x4x64x6xf32, #tpu.memory_space<vmem>>, vector<1x1x64x6xf32>,
    %c3_338 = arith.constant 3 : index
    %c0_339 = arith.constant 0 : index
    %c0_340 = arith.constant 0 : index
    %c0_341 = arith.constant 0 : index
    %289 = vector.load %arg6[%c3_338, %c0_339, %c0_340, %c0_341] : memref<4x4x8x8xf32, #tpu.memory_space<vmem>>, vector<1x1x8x8xf32>
    %290 = vector.shape_cast %289 : vector<1x1x8x8xf32> to vector<8x8xf32>
    %cst_342 = arith.constant dense<0.000000e+00> : vector<64x8xf32>
    %291 = tpu.matmul %168, %290, %cst_342 {dimension_numbers = #tpu.dot_dimension_numbers<[1], [0], [0], [1], [0, 0, 1, 1], [], []>} : vector<64x8xf32>, vector<8x8xf32>, vector<64x8xf32> -> vector<64x8xf32>
    %c2_343 = arith.constant 2 : index
    %c2_344 = arith.constant 2 : index
    %c0_345 = arith.constant 0 : index
    %c0_346 = arith.constant 0 : index
    %292 = vector.load %arg2[%c2_343, %c2_344, %c0_345, %c0_346] : memref<3x3x64x64xf32, #tpu.memory_space<vmem>>, vector<1x1x64x64xf32>
    %293 = vector.shape_cast %292 : vector<1x1x64x64xf32> to vector<64x64xf32>
    %cst_347 = arith.constant dense<0.000000e+00> : vector<64x8xf32>
    %294 = tpu.matmul %293, %291, %cst_347 {dimension_numbers = #tpu.dot_dimension_numbers<[1], [0], [0], [1], [0, 0, 1, 1], [], []>} : vector<64x64xf32>, vector<64x8xf32>, vector<64x8xf32> -> vector<64x8xf32>
    %c3_348 = arith.constant 3 : index
    %c1_349 = arith.constant 1 : index
    %c0_350 = arith.constant 0 : index
    %c0_351 = arith.constant 0 : index
    %295 = vector.load %arg6[%c3_348, %c1_349, %c0_350, %c0_351] : memref<4x4x8x8xf32, #tpu.memory_space<vmem>>, vector<1x1x8x8xf32>
    %296 = vector.shape_cast %295 : vector<1x1x8x8xf32> to vector<8x8xf32>
    %cst_352 = arith.constant dense<0.000000e+00> : vector<64x8xf32>
    %297 = tpu.matmul %168, %296, %cst_352 {dimension_numbers = #tpu.dot_dimension_numbers<[1], [0], [0], [1], [0, 0, 1, 1], [], []>} : vector<64x8xf32>, vector<8x8xf32>, vector<64x8xf32> -> vector<64x8xf32>
    %c2_353 = arith.constant 2 : index
    %c1_354 = arith.constant 1 : index
    %c0_355 = arith.constant 0 : index
    %c0_356 = arith.constant 0 : index
    %298 = vector.load %arg2[%c2_353, %c1_354, %c0_355, %c0_356] : memref<3x3x64x64xf32, #tpu.memory_space<vmem>>, vector<1x1x64x64xf32>
    %299 = vector.shape_cast %298 : vector<1x1x64x64xf32> to vector<64x64xf32>
    %cst_357 = arith.constant dense<0.000000e+00> : vector<64x8xf32>
    %300 = tpu.matmul %299, %297, %cst_357 {dimension_numbers = #tpu.dot_dimension_numbers<[1], [0], [0], [1], [0, 0, 1, 1], [], []>} : vector<64x64xf32>, vector<64x8xf32>, vector<64x8xf32> -> vector<64x8xf32>
    %301 = arith.addf %294, %300 : vector<64x8xf32>
    %c3_358 = arith.constant 3 : index
    %c2_359 = arith.constant 2 : index
    %c0_360 = arith.constant 0 : index
    %c0_361 = arith.constant 0 : index
    %302 = vector.load %arg6[%c3_358, %c2_359, %c0_360, %c0_361] : memref<4x4x8x8xf32, #tpu.memory_space<vmem>>, vector<1x1x8x8xf32>
    %303 = vector.shape_cast %302 : vector<1x1x8x8xf32> to vector<8x8xf32>
    %cst_362 = arith.constant dense<0.000000e+00> : vector<64x8xf32>
    %304 = tpu.matmul %168, %303, %cst_362 {dimension_numbers = #tpu.dot_dimension_numbers<[1], [0], [0], [1], [0, 0, 1, 1], [], []>} : vector<64x8xf32>, vector<8x8xf32>, vector<64x8xf32> -> vector<64x8xf32>
    %c1_363 = arith.constant 1 : index
    %c2_364 = arith.constant 2 : index
    %c0_365 = arith.constant 0 : index
    %c0_366 = arith.constant 0 : index
    %305 = vector.load %arg2[%c1_363, %c2_364, %c0_365, %c0_366] : memref<3x3x64x64xf32, #tpu.memory_space<vmem>>, vector<1x1x64x64xf32>
    %306 = vector.shape_cast %305 : vector<1x1x64x64xf32> to vector<64x64xf32>
    %cst_367 = arith.constant dense<0.000000e+00> : vector<64x8xf32>
    %307 = tpu.matmul %306, %304, %cst_367 {dimension_numbers = #tpu.dot_dimension_numbers<[1], [0], [0], [1], [0, 0, 1, 1], [], []>} : vector<64x64xf32>, vector<64x8xf32>, vector<64x8xf32> -> vector<64x8xf32>
    %308 = arith.addf %301, %307 : vector<64x8xf32>
    %c3_368 = arith.constant 3 : index
    %c3_369 = arith.constant 3 : index
    %c0_370 = arith.constant 0 : index
    %c0_371 = arith.constant 0 : index
    %309 = vector.load %arg6[%c3_368, %c3_369, %c0_370, %c0_371] : memref<4x4x8x8xf32, #tpu.memory_space<vmem>>, vector<1x1x8x8xf32>
    %310 = vector.shape_cast %309 : vector<1x1x8x8xf32> to vector<8x8xf32>
    %cst_372 = arith.constant dense<0.000000e+00> : vector<64x8xf32>
    %311 = tpu.matmul %168, %310, %cst_372 {dimension_numbers = #tpu.dot_dimension_numbers<[1], [0], [0], [1], [0, 0, 1, 1], [], []>} : vector<64x8xf32>, vector<8x8xf32>, vector<64x8xf32> -> vector<64x8xf32>
    %312 = arith.addf %308, %311 : vector<64x8xf32>
    %c6_373 = arith.constant 6 : index
    %c0_374 = arith.constant 0 : index
    %313 = vector.load %arg7[%c6_373, %c0_374] : memref<8x8xf32, #tpu.memory_space<vmem>>, vector<1x8xf32>
    %314 = vector.broadcast %313 : vector<1x8xf32> to vector<64x8xf32>
    %315 = arith.mulf %312, %314 : vector<64x8xf32>
    %c7_375 = arith.constant 7 : index
    %c0_376 = arith.constant 0 : index
    %316 = vector.load %arg7[%c7_375, %c0_376] : memref<8x8xf32, #tpu.memory_space<vmem>>, vector<1x8xf32>
    %317 = vector.broadcast %316 : vector<1x8xf32> to vector<64x8xf32>
    %318 = arith.addf %315, %317 : vector<64x8xf32>
    %cst_377 = arith.constant 0.000000e+00 : f32
    %319 = vector.broadcast %cst_377 : f32 to vector<64x8xf32>
    %320 = arith.maximumf %318, %319 : vector<64x8xf32>
    %c0_378 = arith.constant 0 : index
    %c0_379 = arith.constant 0 : index
    %321 = vector.load %arg8[%c0_378, %c0_379] : memref<8x6xf32, #tpu.memory_space<vmem>>, vector<8x6xf32>
    %cst_380 = arith.constant dense<0.000000e+00> : vector<64x6xf32>
    %322 = tpu.matmul %320, %321, %cst_380 {dimension_numbers = #tpu.dot_dimension_numbers<[1], [0], [0], [1], [0, 0, 1, 1], [], []>} : vector<64x8xf32>, vector<8x6xf32>, vector<64x6xf32> -> vector<64x6xf32>
    %c0_381 = arith.constant 0 : index
    %c0_382 = arith.constant 0 : index
    %323 = vector.load %arg9[%c0_381, %c0_382] : memref<1x6xf32, #tpu.memory_space<vmem>>, vector<1x6xf32>
    %324 = vector.broadcast %323 : vector<1x6xf32> to vector<64x6xf32>
    %325 = arith.addf %322, %324 : vector<64x6xf32>
    %c0_383 = arith.constant 0 : index
    %c3_384 = arith.constant 3 : index
    %c0_385 = arith.constant 0 : index
    %c0_386 = arith.constant 0 : index
    %326 = vector.load %arg10[%c0_383, %c3_384, %c0_385, %c0_386] : memref<1x4x64x6xf32, #tpu.memory_space<vmem>>, vector<1x1x64x6xf32>
    %327 = vector.shape_cast %326 : vector<1x1x64x6xf32> to vector<64x6xf32>
    %328 = vector.shape_cast %325 : vector<64x6xf32> to vector<1x1x64x6xf32>
    tpu.vector_store %arg10[%c0_383, %c3_384, %c0_385, %c0_386], %328 {strides = array<i32>} : memref<1x4x64x6xf32, #tpu.memory_space<vmem>>, vector<1x1x64x6xf32>,
    return
  }
  func.func @transform_0(%arg0: i32) -> (i32, i32, i32) {
    %c0_i32 = arith.constant 0 : i32
    %c0_i32_0 = arith.constant 0 : i32
    %c0_i32_1 = arith.constant 0 : i32
    return %arg0, %c0_i32, %c0_i32_0 : i32, i32, i32
  }
  func.func @transform_1(%arg0: i32) -> (i32, i32, i32, i32) {
    %c0_i32 = arith.constant 0 : i32
    %c0_i32_0 = arith.constant 0 : i32
    %c0_i32_1 = arith.constant 0 : i32
    %c0_i32_2 = arith.constant 0 : i32
    %c0_i32_3 = arith.constant 0 : i32
    return %c0_i32, %c0_i32_0, %c0_i32_1, %c0_i32_2 : i32, i32, i32, i32
  }
  func.func @transform_2(%arg0: i32) -> (i32, i32, i32) {
    %c0_i32 = arith.constant 0 : i32
    %c0_i32_0 = arith.constant 0 : i32
    %c0_i32_1 = arith.constant 0 : i32
    %c0_i32_2 = arith.constant 0 : i32
    return %c0_i32, %c0_i32_0, %c0_i32_1 : i32, i32, i32
  }
  func.func @transform_3(%arg0: i32) -> (i32, i32, i32) {
    %c0_i32 = arith.constant 0 : i32
    %c0_i32_0 = arith.constant 0 : i32
    %c0_i32_1 = arith.constant 0 : i32
    %c0_i32_2 = arith.constant 0 : i32
    return %c0_i32, %c0_i32_0, %c0_i32_1 : i32, i32, i32
  }
  func.func @transform_4(%arg0: i32) -> (i32, i32, i32) {
    %c0_i32 = arith.constant 0 : i32
    %c0_i32_0 = arith.constant 0 : i32
    %c0_i32_1 = arith.constant 0 : i32
    %c0_i32_2 = arith.constant 0 : i32
    return %c0_i32, %c0_i32_0, %c0_i32_1 : i32, i32, i32
  }
  func.func @transform_5(%arg0: i32) -> (i32, i32, i32, i32) {
    %c0_i32 = arith.constant 0 : i32
    %c0_i32_0 = arith.constant 0 : i32
    %c0_i32_1 = arith.constant 0 : i32
    %c0_i32_2 = arith.constant 0 : i32
    %c0_i32_3 = arith.constant 0 : i32
    return %c0_i32, %c0_i32_0, %c0_i32_1, %c0_i32_2 : i32, i32, i32, i32
  }
  func.func @transform_6(%arg0: i32) -> (i32, i32) {
    %c0_i32 = arith.constant 0 : i32
    %c0_i32_0 = arith.constant 0 : i32
    %c0_i32_1 = arith.constant 0 : i32
    return %c0_i32, %c0_i32_0 : i32, i32
  }
  func.func @transform_7(%arg0: i32) -> (i32, i32) {
    %c0_i32 = arith.constant 0 : i32
    %c0_i32_0 = arith.constant 0 : i32
    %c0_i32_1 = arith.constant 0 : i32
    return %c0_i32, %c0_i32_0 : i32, i32
  }
  func.func @transform_8(%arg0: i32) -> (i32, i32) {
    %c0_i32 = arith.constant 0 : i32
    %c0_i32_0 = arith.constant 0 : i32
    %c0_i32_1 = arith.constant 0 : i32
    return %c0_i32, %c0_i32_0 : i32, i32
  }
  func.func @transform_9(%arg0: i32) -> (i32, i32, i32, i32) {
    %c0_i32 = arith.constant 0 : i32
    %c0_i32_0 = arith.constant 0 : i32
    %c0_i32_1 = arith.constant 0 : i32
    %c0_i32_2 = arith.constant 0 : i32
    return %arg0, %c0_i32, %c0_i32_0, %c0_i32_1 : i32, i32, i32, i32
  }
}

</mosaic_0001>

<bundles_post_ra>
// kernel: respose_net_forward.1
= control target key start
LH: loop header
LB: loop body
LE: loop exit
PB: predicated region body
PF: predicated region fallthrough
CT: control target
= control target key end

     0   :  { %s5571_s30 = smov 0   ;;  %s8291_s0 = inlined_call_operand.vmem [shape: f32[2,64,16], index: 0, kind: input, shape index: {}]   ;;  %s8292_s1 = inlined_call_operand.vmem [shape: f32[3,3,64,64], index: 1, kind: input, shape index: {}]   ;;  %s8293_s2 = inlined_call_operand.vmem [shape: f32[4,16,8], index: 2, kind: input, shape index: {}]   ;;  %s8294_s3 = inlined_call_operand.vmem [shape: f32[9,8,8], index: 3, kind: input, shape index: {}]   ;;  %s8295_s4 = inlined_call_operand.vmem [shape: f32[9,8,8], index: 4, kind: input, shape index: {}]   ;;  %s8296_s5 = inlined_call_operand.vmem [shape: f32[4,4,8,8], index: 5, kind: input, shape index: {}]   ;;  %s8297_s6 = inlined_call_operand.vmem [shape: f32[8,8], index: 6, kind: input, shape index: {}]   ;;  %s8298_s7 = inlined_call_operand.vmem [shape: f32[8,6], index: 7, kind: input, shape index: {}]   ;;  %s8299_s8 = inlined_call_operand.vmem [shape: f32[1,6], index: 8, kind: input, shape index: {}]   ;;  %s8300_s9 = inlined_call_operand.vmem [shape: f32[2,4,64,6], index: 9, kind: output, shape index: {}]  }
   0x1 LB: > { %s4663_s10 = sadd.s32 4294967295, %s5519_s30   ;;  %p4667_p0 = scmp.ge.s32.totalorder %s5519_s30, 1  ;;  %s5519_s30 = sphi %s5571_s30, %s19_s30  }
   0x2   : > { %p287_p1 = scmp.lt.s32.totalorder %s5519_s30, 3 }
   0x4   : > { %p288_p2 = pnand %p4667_p0, %p287_p1 }
   0x6   : > { %291 = sbr.rel (%p288_p2) target bundleno = 3945 (0xf69), region = 56 }
   0xb   : > { %v342_v0 = vld [vmem:[%s8293_s2 + $0x8] sm:$0xff]  ;;  %v341_v1 = vld [vmem:[%s8293_s2] sm:$0xff]  ;;  %p323_p3 = scmp.lt.s32.totalorder %s4663_s10, 1  ;;  %vm343_vm0 = vcmask 130048   ;;  %v4681_v2 = vld [vmem:[%s8293_s2 + $0x18] sm:$0xff]  ;;  %vm470_vm1 = vcmask 523264  }
   0xc   : > { %382 = vmatpush.msra.mxu0 %v342_v0  ;;  %5449 = vmatpush.msra.mxu1 %v342_v0  ;;  %v4715_v3 = vld [vmem:[%s8293_s2 + $0x28] sm:$0xff]  ;;  %v4680_v4 = vld [vmem:[%s8293_s2 + $0x10] sm:$0xff]  ;;  %v4714_v5 = vld [vmem:[%s8293_s2 + $0x20] sm:$0xff]  ;;  %vm808_vm2 = vcmask 64512   ;;  %vm3057_vm3 = vcmask 48128  }
   0xd   : > { %5451 = vmatpush.msra.mxu3 %v342_v0  ;;  %s8506_s10 = smov (!%p323_p3, %s4663_s10), 1  ;;  %5450 = vmatpush.msra.mxu2 %v342_v0  ;;  %v5670_v34 = vld [vmem:[%s8292_s1] sm:$0xff]  ;;  %v5677_v37 = vld [vmem:[%s8292_s1 + $0x8] sm:$0xff]  ;;  %v5684_v40 = vld [vmem:[%s8292_s1 + $0x10] sm:$0xff] }
   0xe   : > { %383 = vmatpush.msra.mxu0 %v341_v1  ;;  %5452 = vmatpush.msra.mxu1 %v341_v1  ;;  %s5447_s19 = sshll.u32 %s8506_s10, 6  ;;  %v5691_v41 = vld [vmem:[%s8292_s1 + $0x18] sm:$0xff]  ;;  %v5698_v42 = vld [vmem:[%s8292_s1 + $0x40] sm:$0xff]  ;;  %v5719_v45 = vld [vmem:[%s8292_s1 + $0x48] sm:$0xff]  ;;  %s5448_s28 = sshll.u32 %s8506_s10, 8 }
   0xf   : > { %5454 = vmatpush.msra.mxu3 %v341_v1  ;;  %5453 = vmatpush.msra.mxu2 %v341_v1  ;;  %s327_s26 = scalar_lea.vmem %s8291_s0, %s5447_s19  ;;  %v5703_v43 = vld [vmem:[%s8292_s1 + $0xc0] sm:$0xff]  ;;  %v5724_v46 = vld [vmem:[%s8292_s1 + $0xc8] sm:$0xff]  ;;  %v5740_v48 = vld [vmem:[%s8292_s1 + $0x50] sm:$0xff]  ;;  %s7706_s14 = scalar_lea.vmem %s8300_s9, %s5448_s28 }
  0x10   : > { %434 = vmatpush.msrb.mxu1 %v4681_v2  ;;  %618 = vmatpush.msrb.mxu0 %v4715_v3  ;;  %v5603_v6 = vld [vmem:[%s327_s26] sm:$0xff]  ;;  %v5605_v7 = vld [vmem:[%s327_s26 + $0x10] sm:$0xff]  ;;  %v5619_v10 = vld [vmem:[%s327_s26 + $0x8] sm:$0xff] }
  0x11   : > { %v5607_v8 = vld [vmem:[%s327_s26 + $0x30] sm:$0xff]  ;;  %4672 = vmatmul.msk.f32.vlgmr.msra.gmra.mxu0 %vm343_vm0, %v5603_v6  ;;  %4674 = vmatmul.msk.f32.vlgmr.msra.gmra.mxu1 %vm343_vm0, %v5605_v7  ;;  %v5613_v9 = vld [vmem:[%s327_s26 + $0x20] sm:$0xff]  ;;  %v5621_v11 = vld [vmem:[%s327_s26 + $0x18] sm:$0xff] }
  0x12   : > { %4678 = vmatmul.msk.f32.vlgmr.msra.gmra.mxu3 %vm343_vm0, %v5607_v8  ;;  %4676 = vmatmul.msk.f32.vlgmr.msra.gmra.mxu2 %vm343_vm0, %v5613_v9  ;;  %v5623_v12 = vld [vmem:[%s327_s26 + $0x38] sm:$0xff]  ;;  %v5625_v13 = vld [vmem:[%s327_s26 + $0x28] sm:$0xff]  ;;  %v5712_v44 = vld [vmem:[%s8292_s1 + $0x20] sm:$0xff] }
  0x13   : > { %435 = vmatpush.msrb.mxu1 %v4680_v4  ;;  %619 = vmatpush.msrb.mxu0 %v4714_v5  ;;  %v5733_v47 = vld [vmem:[%s8292_s1 + $0x28] sm:$0xff]  ;;  %v5745_v49 = vld [vmem:[%s8292_s1 + $0xd0] sm:$0xff]  ;;  %v4741_v51 = vld [vmem:[%s8293_s2 + $0x38] sm:$0xff] }
  0x14   : > { %v5754_v50 = vld [vmem:[%s8292_s1 + $0x30] sm:$0xff]  ;;  %v5764_v52 = vld [vmem:[%s8292_s1 + $0x58] sm:$0xff]  ;;  %v5788_v56 = vld [vmem:[%s8292_s1 + $0x60] sm:$0xff] }
  0x15   : > { %v5769_v53 = vld [vmem:[%s8292_s1 + $0xd8] sm:$0xff]  ;;  %v4740_v55 = vld [vmem:[%s8293_s2 + $0x30] sm:$0xff]  ;;  %v5793_v57 = vld [vmem:[%s8292_s1 + $0xe0] sm:$0xff] }
  0x16   : > { %v5778_v54 = vld [vmem:[%s8292_s1 + $0x38] sm:$0xff]  ;;  %v5802_v58 = vld [vmem:[%s8292_s1 + $0x68] sm:$0xff]  ;;  %v5816_v60 = vld [vmem:[%s8292_s1 + $0x70] sm:$0xff] }
  0x17   : > { %v5807_v59 = vld [vmem:[%s8292_s1 + $0xe8] sm:$0xff]  ;;  %v5821_v61 = vld [vmem:[%s8292_s1 + $0xf0] sm:$0xff]  ;;  %v5830_v62 = vld [vmem:[%s8292_s1 + $0x78] sm:$0xff] }
  0x18   : > { %v5835_v63 = vld [vmem:[%s8292_s1 + $0xf8] sm:$0xff]  ;;  %v4758_v4 = vld [vmem:[%s8294_s3 + $0x8] sm:$0xff] }
  0x19   : > { %4673 = vmatmul.msk.f32.gmra.mxu0 %vm343_vm0, %v5619_v10  ;;  %4675 = vmatmul.msk.f32.gmra.mxu1 %vm343_vm0, %v5621_v11 }
  0x1a   : > { %4679 = vmatmul.msk.f32.gmra.mxu3 %vm343_vm0, %v5623_v12  ;;  %4677 = vmatmul.msk.f32.gmra.mxu2 %vm343_vm0, %v5625_v13 }
  0x1b   : > { %891 = vmatpush.msra.mxu0 %v4758_v4 }
  0x21   : > { %4682 = vmatmul.msk.f32.vlgmr.msrb.gmra.mxu1 %vm343_vm0, %v5603_v6  ;;  %4716 = vmatmul.msk.f32.vlgmr.msrb.gmra.mxu0 %vm343_vm0, %v5603_v6 }
  0x29   : > { %4683 = vmatmul.msk.f32.gmra.mxu1 %vm343_vm0, %v5619_v10  ;;  %4717 = vmatmul.msk.f32.gmra.mxu0 %vm343_vm0, %v5619_v10 }
  0x31   : > { %4684 = vmatmul.msk.f32.gmra.mxu1 %vm343_vm0, %v5605_v7  ;;  %4718 = vmatmul.msk.f32.gmra.mxu0 %vm343_vm0, %v5605_v7 }
  0x39   : > { %4685 = vmatmul.msk.f32.gmra.mxu1 %vm343_vm0, %v5621_v11  ;;  %4719 = vmatmul.msk.f32.gmra.mxu0 %vm343_vm0, %v5621_v11 }
  0x41   : > { %4686 = vmatmul.msk.f32.gmra.mxu1 %vm343_vm0, %v5613_v9  ;;  %4720 = vmatmul.msk.f32.gmra.mxu0 %vm343_vm0, %v5613_v9 }
  0x49   : > { %4687 = vmatmul.msk.f32.gmra.mxu1 %vm343_vm0, %v5625_v13  ;;  %4721 = vmatmul.msk.f32.gmra.mxu0 %vm343_vm0, %v5625_v13 }
  0x51   : > { %4688 = vmatmul.msk.f32.gmra.mxu1 %vm343_vm0, %v5607_v8  ;;  %4722 = vmatmul.msk.f32.gmra.mxu0 %vm343_vm0, %v5607_v8 }
  0x59   : > { %4689 = vmatmul.msk.f32.gmra.mxu1 %vm343_vm0, %v5623_v12  ;;  %4723 = vmatmul.msk.f32.gmra.mxu0 %vm343_vm0, %v5623_v12 }
  0x8e   : > { %v385_v14 = vpop.f32.mrf.mxu0  ;;  %v391_v15 = vpop.f32.mrf.mxu1 }
  0x95   : > { %v403_v16 = vpop.f32.mrf.mxu3  ;;  %v397_v17 = vpop.f32.mrf.mxu2 }
  0x96   : > { %v388_v18 = vpop.f32.mrf.mxu0  ;;  %v394_v19 = vpop.f32.mrf.mxu1 }
  0x9d   : > { %v406_v20 = vpop.f32.mrf.mxu3  ;;  %v400_v23 = vpop.f32.mrf.mxu2 }
  0x9e   : > { %568 = vmatpush.msrb.mxu3 %v406_v20  ;;  %v437_v21 = vpop.f32.mrf.mxu1  ;;  %v621_v22 = vpop.f32.mrf.mxu0  ;;  %v5875_v20 = vld [vmem:[%s8297_s6 + $0x1] ss:$0 sm:$0xff] }
  0xa0   : > { %569 = vmatpush.msrb.mxu3 %v403_v16 }
  0xa2   : > { %570 = vmatpush.msrb.mxu3 %v400_v23 }
  0xa4   : > { %571 = vmatpush.msrb.mxu3 %v397_v17  ;;  %v5870_v17 = vld [vmem:[%s8297_s6] ss:$0 sm:$0xff] }
  0xa6   : > { %572 = vmatpush.msrb.mxu3 %v394_v19  ;;  %v440_v24 = vpop.f32.mrf.mxu1  ;;  %v624_v25 = vpop.f32.mrf.mxu0 }
  0xa8   : > { %573 = vmatpush.msrb.mxu3 %v391_v15 }
  0xaa   : > { %574 = vmatpush.msrb.mxu3 %v388_v18 }
  0xac   : > { %575 = vmatpush.msrb.mxu3 %v385_v14 }
  0xad   : > { %4706 = vmatmul.msk.f32.vlgmr.msrb.gmra.mxu3 %vm470_vm1, %v5670_v34 }
  0xae   : > { %v443_v26 = vpop.f32.mrf.mxu1  ;;  %v627_v27 = vpop.f32.mrf.mxu0 }
  0xb5   : > { %4707 = vmatmul.msk.f32.gmra.mxu3 %vm470_vm1, %v5677_v37 }
  0xb6   : > { %v446_v28 = vpop.f32.mrf.mxu1  ;;  %v630_v29 = vpop.f32.mrf.mxu0 }
  0xbd   : > { %4708 = vmatmul.msk.f32.gmra.mxu3 %vm470_vm1, %v5684_v40 }
  0xbe   : > { %v449_v30 = vpop.f32.mrf.mxu1  ;;  %v633_v31 = vpop.f32.mrf.mxu0 }
  0xc5   : > { %4709 = vmatmul.msk.f32.gmra.mxu3 %vm470_vm1, %v5691_v41 }
  0xc6   : > { %v452_v32 = vpop.f32.mrf.mxu1  ;;  %v636_v33 = vpop.f32.mrf.mxu0 }
  0xcd   : > { %4710 = vmatmul.msk.f32.gmra.mxu3 %vm470_vm1, %v5712_v44 }
  0xce   : > { %v455_v35 = vpop.f32.mrf.mxu1  ;;  %v639_v36 = vpop.f32.mrf.mxu0 }
  0xd5   : > { %4711 = vmatmul.msk.f32.gmra.mxu3 %vm470_vm1, %v5733_v47 }
  0xd6   : > { %v458_v38 = vpop.f32.mrf.mxu1  ;;  %v642_v39 = vpop.f32.mrf.mxu0 }
  0xd7   : > { %503 = vmatpush.msrb.mxu2 %v458_v38  ;;  %686 = vmatpush.msra.mxu1 %v642_v39 }
  0xd9   : > { %504 = vmatpush.msrb.mxu2 %v455_v35  ;;  %687 = vmatpush.msra.mxu1 %v639_v36 }
  0xdb   : > { %505 = vmatpush.msrb.mxu2 %v452_v32  ;;  %688 = vmatpush.msra.mxu1 %v636_v33 }
  0xdd   : > { %506 = vmatpush.msrb.mxu2 %v449_v30  ;;  %689 = vmatpush.msra.mxu1 %v633_v31 }
  0xde   : > { %4712 = vmatmul.msk.f32.gmra.mxu3 %vm470_vm1, %v5754_v50 }
  0xdf   : > { %507 = vmatpush.msrb.mxu2 %v446_v28  ;;  %690 = vmatpush.msra.mxu1 %v630_v29 }
  0xe1   : > { %508 = vmatpush.msrb.mxu2 %v443_v26  ;;  %691 = vmatpush.msra.mxu1 %v627_v27 }
  0xe3   : > { %509 = vmatpush.msrb.mxu2 %v440_v24  ;;  %692 = vmatpush.msra.mxu1 %v624_v25 }
  0xe5   : > { %510 = vmatpush.msrb.mxu2 %v437_v21  ;;  %693 = vmatpush.msra.mxu1 %v621_v22 }
  0xe6   : > { %4698 = vmatmul.msk.f32.vlgmr.msrb.gmra.mxu2 %vm470_vm1, %v5698_v42  ;;  %4732 = vmatmul.msk.f32.vlgmr.msra.gmra.mxu1 %vm470_vm1, %v5703_v43 }
  0xe7   : > { %744 = vmatpush.msra.mxu2 %v4741_v51  ;;  %4713 = vmatmul.msk.f32.gmra.mxu3 %vm470_vm1, %v5778_v54 }
  0xe9   : > { %745 = vmatpush.msra.mxu2 %v4740_v55 }
  0xee   : > { %4699 = vmatmul.msk.f32.gmra.mxu2 %vm470_vm1, %v5719_v45  ;;  %4733 = vmatmul.msk.f32.gmra.mxu1 %vm470_vm1, %v5724_v46 }
  0xf6   : > { %4700 = vmatmul.msk.f32.gmra.mxu2 %vm470_vm1, %v5740_v48  ;;  %4734 = vmatmul.msk.f32.gmra.mxu1 %vm470_vm1, %v5745_v49 }
  0xfe   : > { %4701 = vmatmul.msk.f32.gmra.mxu2 %vm470_vm1, %v5764_v52  ;;  %4735 = vmatmul.msk.f32.gmra.mxu1 %vm470_vm1, %v5769_v53 }
 0x106   : > { %4702 = vmatmul.msk.f32.gmra.mxu2 %vm470_vm1, %v5788_v56  ;;  %4736 = vmatmul.msk.f32.gmra.mxu1 %vm470_vm1, %v5793_v57 }
 0x10e   : > { %4703 = vmatmul.msk.f32.gmra.mxu2 %vm470_vm1, %v5802_v58  ;;  %4737 = vmatmul.msk.f32.gmra.mxu1 %vm470_vm1, %v5807_v59 }
 0x116   : > { %4704 = vmatmul.msk.f32.gmra.mxu2 %vm470_vm1, %v5816_v60  ;;  %4738 = vmatmul.msk.f32.gmra.mxu1 %vm470_vm1, %v5821_v61 }
 0x11e   : > { %4705 = vmatmul.msk.f32.gmra.mxu2 %vm470_vm1, %v5830_v62  ;;  %4739 = vmatmul.msk.f32.gmra.mxu1 %vm470_vm1, %v5835_v63 }
 0x126   : > { %4742 = vmatmul.msk.f32.vlgmr.msra.gmra.mxu2 %vm343_vm0, %v5603_v6 }
 0x12e   : > { %4743 = vmatmul.msk.f32.gmra.mxu2 %vm343_vm0, %v5619_v10 }
 0x136   : > { %4744 = vmatmul.msk.f32.gmra.mxu2 %vm343_vm0, %v5605_v7  ;;  %v807_v7 = vld [vmem:[%s8294_s3] sm:$0xff] }
 0x137   : > { %848 = vmatpush.msra.mxu3 %v807_v7 }
 0x13e   : > { %4745 = vmatmul.msk.f32.gmra.mxu2 %vm343_vm0, %v5621_v11 }
 0x146   : > { %4746 = vmatmul.msk.f32.gmra.mxu2 %vm343_vm0, %v5613_v9 }
 0x14e   : > { %4747 = vmatmul.msk.f32.gmra.mxu2 %vm343_vm0, %v5625_v13 }
 0x156   : > { %4748 = vmatmul.msk.f32.gmra.mxu2 %vm343_vm0, %v5607_v8  ;;  %v577_v8 = vpop.f32.mrf.mxu3 }
 0x15e   : > { %4749 = vmatmul.msk.f32.gmra.mxu2 %vm343_vm0, %v5623_v12  ;;  %v580_v11 = vpop.f32.mrf.mxu3 }
 0x163   : > { %v695_v9 = vpop.f32.mrf.mxu1 }
 0x166   : > { %v583_v15 = vpop.f32.mrf.mxu3 }
 0x169   : > { %v512_v0 = vpop.f32.mrf.mxu2 }
 0x16a   : > { %v578_v14 = vadd.f32 %v577_v8, %v512_v0 }
 0x16b   : > { %v698_v12 = vpop.f32.mrf.mxu1 }
 0x16c   : > { %v719_v16 = vadd.f32 %v695_v9, %v578_v14 }
 0x16e   : > { %v586_v27 = vpop.f32.mrf.mxu3 }
 0x171   : > { %v515_v1 = vpop.f32.mrf.mxu2 }
 0x172   : > { %v581_v22 = vadd.f32 %v580_v11, %v515_v1 }
 0x173   : > { %v701_v21 = vpop.f32.mrf.mxu1 }
 0x174   : > { %v720_v25 = vadd.f32 %v698_v12, %v581_v22 }
 0x176   : > { %v589_v51 = vpop.f32.mrf.mxu3 }
 0x179   : > { %v518_v2 = vpop.f32.mrf.mxu2 }
 0x17a   : > { %v584_v30 = vadd.f32 %v583_v15, %v518_v2 }
 0x17b   : > { %v704_v32 = vpop.f32.mrf.mxu1 }
 0x17c   : > { %v721_v35 = vadd.f32 %v701_v21, %v584_v30 }
 0x181   : > { %v521_v3 = vpop.f32.mrf.mxu2 }
 0x182   : > { %v587_v55 = vadd.f32 %v586_v27, %v521_v3  ;;  %v592_v3 = vpop.f32.mrf.mxu3 }
 0x183   : > { %v707_v2 = vpop.f32.mrf.mxu1 }
 0x184   : > { %v722_v4 = vadd.f32 %v704_v32, %v587_v55 }
 0x189   : > { %v524_v5 = vpop.f32.mrf.mxu2 }
 0x18a   : > { %v590_v11 = vadd.f32 %v589_v51, %v524_v5  ;;  %v4783_v5 = vld [vmem:[%s8294_s3 + $0x10] sm:$0xff] }
 0x18b   : > { %1016 = vmatpush.msrb.mxu3 %v4783_v5 }
 0x18c   : > { %v723_v15 = vadd.f32 %v707_v2, %v590_v11 }
 0x191   : > { %v527_v6 = vpop.f32.mrf.mxu2 }
 0x192   : > { %v593_v22 = vadd.f32 %v592_v3, %v527_v6 }
 0x199   : > { %v5863_v10 = vpop.f32.mrf.mxu2 }
 0x1a1   : > { %v5865_v13 = vpop.f32.mrf.mxu2 }
 0x1a9   : > { %v747_v18 = vpop.f32.mrf.mxu2 }
 0x1aa   : > { %v771_v19 = vadd.f32 %v747_v18, %v719_v16  ;;  %v710_v18 = vpop.f32.mrf.mxu1 }
 0x1ab   : > { %v724_v27 = vadd.f32 %v710_v18, %v593_v22 }
 0x1ac   : > { %v781_v23 = vmul.f32 %v5870_v17, %v771_v19 }
 0x1ae   : > { %v791_v24 = vadd.f32 %v5875_v20, %v781_v23 }
 0x1b0   : > { %v5879_v26 = vmax.f32 %v791_v24, 0.0 }
 0x1b1   : > { %v750_v28 = vpop.f32.mrf.mxu2 }
 0x1b2   : > { %8365 = vst [vmem:[#allocation2_spill] sm:$0xff] %v5879_v26  ;;  %v772_v29 = vadd.f32 %v750_v28, %v720_v25  ;;  %4750 = vmatmul.msk.f32.vlgmr.msra.gmra.mxu3 %vm808_vm2, %v5879_v26  ;;  %4759 = vmatmul.msk.f32.vlgmr.msra.gmra.mxu0 %vm808_vm2, %v5879_v26  ;;  %v595_v25 = vpop.f32.mrf.mxu3 }
 0x1b3   : > { %v596_v32 = vadd.f32 %v595_v25, %v5863_v10 }
 0x1b4   : > { %v782_v31 = vmul.f32 %v5870_v17, %v772_v29 }
 0x1b6   : > { %v792_v33 = vadd.f32 %v5875_v20, %v782_v31  ;;  %v713_v31 = vpop.f32.mrf.mxu1 }
 0x1b8   : > { %v5887_v36 = vmax.f32 %v792_v33, 0.0 }
 0x1b9   : > { %v753_v38 = vpop.f32.mrf.mxu2 }
 0x1ba   : > { %8366 = vst [vmem:[#allocation3_spill] sm:$0xff] %v5887_v36  ;;  %v773_v39 = vadd.f32 %v753_v38, %v721_v35  ;;  %4751 = vmatmul.msk.f32.gmra.mxu3 %vm808_vm2, %v5887_v36  ;;  %4760 = vmatmul.msk.f32.gmra.mxu0 %vm808_vm2, %v5887_v36  ;;  %v725_v35 = vadd.f32 %v713_v31, %v596_v32 }
 0x1bc   : > { %v783_v0 = vmul.f32 %v5870_v17, %v773_v39  ;;  %v598_v39 = vpop.f32.mrf.mxu3 }
 0x1be   : > { %v793_v1 = vadd.f32 %v5875_v20, %v783_v0  ;;  %v599_v0 = vadd.f32 %v598_v39, %v5865_v13 }
 0x1c0   : > { %v5895_v7 = vmax.f32 %v793_v1, 0.0  ;;  %v716_v1 = vpop.f32.mrf.mxu1 }
 0x1c1   : > { %v756_v8 = vpop.f32.mrf.mxu2 }
 0x1c2   : > { %8367 = vst [vmem:[#allocation4_spill] sm:$0xff] %v5895_v7  ;;  %v774_v9 = vadd.f32 %v756_v8, %v722_v4  ;;  %4752 = vmatmul.msk.f32.gmra.mxu3 %vm808_vm2, %v5895_v7  ;;  %4761 = vmatmul.msk.f32.gmra.mxu0 %vm808_vm2, %v5895_v7  ;;  %v726_v4 = vadd.f32 %v716_v1, %v599_v0  ;;  %v4884_v1 = vld [vmem:[%s8294_s3 + $0x38] sm:$0xff] }
 0x1c4   : > { %v784_v12 = vmul.f32 %v5870_v17, %v774_v9 }
 0x1c6   : > { %v794_v14 = vadd.f32 %v5875_v20, %v784_v12 }
 0x1c8   : > { %v5903_v16 = vmax.f32 %v794_v14, 0.0 }
 0x1c9   : > { %v759_v19 = vpop.f32.mrf.mxu2 }
 0x1ca   : > { %8368 = vst [vmem:[#allocation5_spill] sm:$0xff] %v5903_v16  ;;  %v775_v21 = vadd.f32 %v759_v19, %v723_v15  ;;  %4753 = vmatmul.msk.f32.gmra.mxu3 %vm808_vm2, %v5903_v16  ;;  %4762 = vmatmul.msk.f32.gmra.mxu0 %vm808_vm2, %v5903_v16 }
 0x1cc   : > { %v785_v23 = vmul.f32 %v5870_v17, %v775_v21 }
 0x1ce   : > { %v795_v24 = vadd.f32 %v5875_v20, %v785_v23 }
 0x1d0   : > { %v5914_v28 = vmax.f32 %v795_v24, 0.0 }
 0x1d1   : > { %v762_v29 = vpop.f32.mrf.mxu2 }
 0x1d2   : > { %8369 = vst [vmem:[#allocation6_spill] sm:$0xff] %v5914_v28  ;;  %v776_v30 = vadd.f32 %v762_v29, %v724_v27  ;;  %4754 = vmatmul.msk.f32.gmra.mxu3 %vm808_vm2, %v5914_v28  ;;  %4763 = vmatmul.msk.f32.gmra.mxu0 %vm808_vm2, %v5914_v28 }
 0x1d4   : > { %v786_v6 = vmul.f32 %v5870_v17, %v776_v30 }
 0x1d6   : > { %v796_v33 = vadd.f32 %v5875_v20, %v786_v6 }
 0x1d8   : > { %v5923_v38 = vmax.f32 %v796_v33, 0.0 }
 0x1d9   : > { %v765_v51 = vpop.f32.mrf.mxu2 }
 0x1da   : > { %8370 = vst [vmem:[#allocation7_spill] sm:$0xff] %v5923_v38  ;;  %v777_v55 = vadd.f32 %v765_v51, %v725_v35  ;;  %4755 = vmatmul.msk.f32.gmra.mxu3 %vm808_vm2, %v5923_v38  ;;  %4764 = vmatmul.msk.f32.gmra.mxu0 %vm808_vm2, %v5923_v38 }
 0x1dc   : > { %v787_v10 = vmul.f32 %v5870_v17, %v777_v55 }
 0x1de   : > { %v797_v2 = vadd.f32 %v5875_v20, %v787_v10 }
 0x1e0   : > { %v5932_v8 = vmax.f32 %v797_v2, 0.0 }
 0x1e1   : > { %v768_v9 = vpop.f32.mrf.mxu2 }
 0x1e2   : > { %8371 = vst [vmem:[#allocation8_spill] sm:$0xff] %v5932_v8  ;;  %v778_v11 = vadd.f32 %v768_v9, %v726_v4  ;;  %4756 = vmatmul.msk.f32.gmra.mxu3 %vm808_vm2, %v5932_v8  ;;  %4765 = vmatmul.msk.f32.gmra.mxu0 %vm808_vm2, %v5932_v8 }
 0x1e4   : > { %v788_v12 = vmul.f32 %v5870_v17, %v778_v11  ;;  %v4825_v17 = vld [vmem:[%s8294_s3 + $0x20] sm:$0xff] }
 0x1e5   : > { %1233 = vmatpush.msra.mxu3 %v4825_v17 }
 0x1e6   : > { %v798_v13 = vadd.f32 %v5875_v20, %v788_v12 }
 0x1e8   : > { %v5940_v3 = vmax.f32 %v798_v13, 0.0 }
 0x1ea   : > { %8372 = vst [vmem:[#allocation9_spill] sm:$0xff] %v5940_v3  ;;  %4757 = vmatmul.msk.f32.gmra.mxu3 %vm808_vm2, %v5940_v3  ;;  %4766 = vmatmul.msk.f32.gmra.mxu0 %vm808_vm2, %v5940_v3 }
 0x1f2   : > { %4784 = vmatmul.msk.f32.vlgmr.msrb.gmra.mxu3 %vm808_vm2, %v5879_v26 }
 0x1fa   : > { %4785 = vmatmul.msk.f32.gmra.mxu3 %vm808_vm2, %v5887_v36 }
 0x202   : > { %4786 = vmatmul.msk.f32.gmra.mxu3 %vm808_vm2, %v5895_v7 }
 0x20a   : > { %4787 = vmatmul.msk.f32.gmra.mxu3 %vm808_vm2, %v5903_v16 }
 0x212   : > { %4788 = vmatmul.msk.f32.gmra.mxu3 %vm808_vm2, %v5914_v28 }
 0x21a   : > { %4789 = vmatmul.msk.f32.gmra.mxu3 %vm808_vm2, %v5923_v38 }
 0x222   : > { %4790 = vmatmul.msk.f32.gmra.mxu3 %vm808_vm2, %v5932_v8 }
 0x22a   : > { %4791 = vmatmul.msk.f32.gmra.mxu3 %vm808_vm2, %v5940_v3 }
 0x22f   : > { %v893_v20 = vpop.f32.mrf.mxu0 }
 0x232   : > { %4826 = vmatmul.msk.f32.vlgmr.msra.gmra.mxu3 %vm808_vm2, %v5879_v26 }
 0x235   : > { %v850_v14 = vpop.f32.mrf.mxu3 }
 0x237   : > { %v896_v15 = vpop.f32.mrf.mxu0 }
 0x23a   : > { %4827 = vmatmul.msk.f32.gmra.mxu3 %vm808_vm2, %v5887_v36 }
 0x23d   : > { %v853_v18 = vpop.f32.mrf.mxu3 }
 0x23f   : > { %v899_v19 = vpop.f32.mrf.mxu0 }
 0x242   : > { %4828 = vmatmul.msk.f32.gmra.mxu3 %vm808_vm2, %v5895_v7 }
 0x245   : > { %v856_v21 = vpop.f32.mrf.mxu3 }
 0x247   : > { %v902_v5 = vpop.f32.mrf.mxu0 }
 0x24a   : > { %4829 = vmatmul.msk.f32.gmra.mxu3 %vm808_vm2, %v5903_v16 }
 0x24d   : > { %v859_v22 = vpop.f32.mrf.mxu3 }
 0x24f   : > { %v905_v23 = vpop.f32.mrf.mxu0 }
 0x252   : > { %4830 = vmatmul.msk.f32.gmra.mxu3 %vm808_vm2, %v5914_v28 }
 0x255   : > { %v862_v24 = vpop.f32.mrf.mxu3 }
 0x257   : > { %v908_v25 = vpop.f32.mrf.mxu0 }
 0x25a   : > { %4831 = vmatmul.msk.f32.gmra.mxu3 %vm808_vm2, %v5923_v38 }
 0x25d   : > { %v865_v27 = vpop.f32.mrf.mxu3 }
 0x25f   : > { %v911_v29 = vpop.f32.mrf.mxu0 }
 0x262   : > { %4832 = vmatmul.msk.f32.gmra.mxu3 %vm808_vm2, %v5932_v8 }
 0x265   : > { %v868_v30 = vpop.f32.mrf.mxu3 }
 0x267   : > { %v914_v31 = vpop.f32.mrf.mxu0 }
 0x268   : > { %925 = vmatpush.msrb.mxu1 %v914_v31  ;;  %v4859_v31 = vld [vmem:[%s8294_s3 + $0x30] sm:$0xff] }
 0x26a   : > { %926 = vmatpush.msrb.mxu1 %v911_v29  ;;  %4833 = vmatmul.msk.f32.gmra.mxu3 %vm808_vm2, %v5940_v3 }
 0x26c   : > { %927 = vmatpush.msrb.mxu1 %v908_v25 }
 0x26d   : > { %v871_v32 = vpop.f32.mrf.mxu3 }
 0x26e   : > { %928 = vmatpush.msrb.mxu1 %v905_v23  ;;  %966 = vmatpush.msrb.mxu2 %v871_v32 }
 0x270   : > { %929 = vmatpush.msrb.mxu1 %v902_v5  ;;  %967 = vmatpush.msrb.mxu2 %v868_v30 }
 0x272   : > { %930 = vmatpush.msrb.mxu1 %v899_v19  ;;  %968 = vmatpush.msrb.mxu2 %v865_v27 }
 0x274   : > { %931 = vmatpush.msrb.mxu1 %v896_v15  ;;  %969 = vmatpush.msrb.mxu2 %v862_v24 }
 0x275   : > { %v1018_v6 = vpop.f32.mrf.mxu3 }
 0x276   : > { %932 = vmatpush.msrb.mxu1 %v893_v20  ;;  %970 = vmatpush.msrb.mxu2 %v859_v22 }
 0x277   : > { %4767 = vmatmul.msk.f32.vlgmr.msrb.gmra.mxu1 %vm470_vm1, %v5698_v42  ;;  %v4808_v42 = vld [vmem:[%s8294_s3 + $0x18] sm:$0xff] }
 0x278   : > { %971 = vmatpush.msrb.mxu2 %v856_v21  ;;  %1141 = vmatpush.msra.mxu1 %v4808_v42 }
 0x27a   : > { %972 = vmatpush.msrb.mxu2 %v853_v18 }
 0x27c   : > { %973 = vmatpush.msrb.mxu2 %v850_v14 }
 0x27d   : > { %4775 = vmatmul.msk.f32.vlgmr.msrb.gmra.mxu2 %vm470_vm1, %v5670_v34  ;;  %v1021_v33 = vpop.f32.mrf.mxu3 }
 0x27f   : > { %4768 = vmatmul.msk.f32.gmra.mxu1 %vm470_vm1, %v5719_v45 }
 0x285   : > { %4776 = vmatmul.msk.f32.gmra.mxu2 %vm470_vm1, %v5677_v37  ;;  %v1024_v35 = vpop.f32.mrf.mxu3 }
 0x287   : > { %4769 = vmatmul.msk.f32.gmra.mxu1 %vm470_vm1, %v5740_v48  ;;  %v6039_v48 = vld [vmem:[%s8292_s1 + $0x90] sm:$0xff] }
 0x288   : > { %8375 = vst [vmem:[#allocation12_spill] sm:$0xff] %v6039_v48 }
 0x28d   : > { %4777 = vmatmul.msk.f32.gmra.mxu2 %vm470_vm1, %v5684_v40  ;;  %v1027_v34 = vpop.f32.mrf.mxu3 }
 0x28f   : > { %4770 = vmatmul.msk.f32.gmra.mxu1 %vm470_vm1, %v5764_v52  ;;  %v6057_v52 = vld [vmem:[%s8292_s1 + $0xa0] sm:$0xff] }
 0x290   : > { %8377 = vst [vmem:[#allocation14_spill] sm:$0xff] %v6057_v52 }
 0x295   : > { %4778 = vmatmul.msk.f32.gmra.mxu2 %vm470_vm1, %v5691_v41  ;;  %v1030_v37 = vpop.f32.mrf.mxu3 }
 0x297   : > { %4771 = vmatmul.msk.f32.gmra.mxu1 %vm470_vm1, %v5788_v56  ;;  %v6069_v56 = vld [vmem:[%s8292_s1 + $0xa8] sm:$0xff] }
 0x298   : > { %8378 = vst [vmem:[#allocation15_spill] sm:$0xff] %v6069_v56 }
 0x29d   : > { %4779 = vmatmul.msk.f32.gmra.mxu2 %vm470_vm1, %v5712_v44  ;;  %v1033_v45 = vpop.f32.mrf.mxu3  ;;  %v6021_v44 = vld [vmem:[%s8292_s1 + $0x80] sm:$0xff] }
 0x29e   : > { %8373 = vst [vmem:[#allocation10_spill] sm:$0xff] %v6021_v44 }
 0x29f   : > { %4772 = vmatmul.msk.f32.gmra.mxu1 %vm470_vm1, %v5802_v58  ;;  %v6078_v58 = vld [vmem:[%s8292_s1 + $0xb0] sm:$0xff] }
 0x2a0   : > { %8379 = vst [vmem:[#allocation16_spill] sm:$0xff] %v6078_v58 }
 0x2a5   : > { %4780 = vmatmul.msk.f32.gmra.mxu2 %vm470_vm1, %v5733_v47  ;;  %v1036_v40 = vpop.f32.mrf.mxu3  ;;  %v6030_v47 = vld [vmem:[%s8292_s1 + $0x88] sm:$0xff] }
 0x2a6   : > { %8374 = vst [vmem:[#allocation11_spill] sm:$0xff] %v6030_v47 }
 0x2a7   : > { %4773 = vmatmul.msk.f32.gmra.mxu1 %vm470_vm1, %v5816_v60  ;;  %v6087_v60 = vld [vmem:[%s8292_s1 + $0xb8] sm:$0xff] }
 0x2a8   : > { %8380 = vst [vmem:[#allocation17_spill] sm:$0xff] %v6087_v60 }
 0x2ad   : > { %4781 = vmatmul.msk.f32.gmra.mxu2 %vm470_vm1, %v5754_v50  ;;  %v1039_v41 = vpop.f32.mrf.mxu3  ;;  %v6048_v50 = vld [vmem:[%s8292_s1 + $0x98] sm:$0xff] }
 0x2ae   : > { %1083 = vmatpush.msrb.mxu0 %v1039_v41  ;;  %8376 = vst [vmem:[#allocation13_spill] sm:$0xff] %v6048_v50  ;;  %v6220_v41 = vld [vmem:[%s8292_s1 + $0x158] sm:$0xff] }
 0x2af   : > { %4774 = vmatmul.msk.f32.gmra.mxu1 %vm470_vm1, %v5830_v62  ;;  %8384 = vst [vmem:[#allocation21_spill] sm:$0xff] %v6220_v41 }
 0x2b0   : > { %1084 = vmatpush.msrb.mxu0 %v1036_v40 }
 0x2b2   : > { %1085 = vmatpush.msrb.mxu0 %v1033_v45  ;;  %v6211_v45 = vld [vmem:[%s8292_s1 + $0x150] sm:$0xff] }
 0x2b3   : > { %8383 = vst [vmem:[#allocation20_spill] sm:$0xff] %v6211_v45 }
 0x2b4   : > { %1086 = vmatpush.msrb.mxu0 %v1030_v37 }
 0x2b5   : > { %4782 = vmatmul.msk.f32.gmra.mxu2 %vm470_vm1, %v5778_v54  ;;  %v4834_v54 = vld [vmem:[%s8294_s3 + $0x28] sm:$0xff] }
 0x2b6   : > { %1087 = vmatpush.msrb.mxu0 %v1027_v34  ;;  %v4909_v34 = vld [vmem:[%s8294_s3 + $0x40] sm:$0xff] }
 0x2b7   : > { %4809 = vmatmul.msk.f32.vlgmr.msra.gmra.mxu1 %vm808_vm2, %v5879_v26 }
 0x2b8   : > { %1088 = vmatpush.msrb.mxu0 %v1024_v35  ;;  %v6197_v35 = vld [vmem:[%s8292_s1 + $0x148] sm:$0xff] }
 0x2b9   : > { %8382 = vst [vmem:[#allocation19_spill] sm:$0xff] %v6197_v35 }
 0x2ba   : > { %1089 = vmatpush.msrb.mxu0 %v1021_v33 }
 0x2bc   : > { %1090 = vmatpush.msrb.mxu0 %v1018_v6 }
 0x2bd   : > { %4800 = vmatmul.msk.f32.vlgmr.msrb.gmra.mxu0 %vm470_vm1, %v6021_v44 }
 0x2be   : > { %1284 = vmatpush.msra.mxu0 %v4834_v54 }
 0x2bf   : > { %4810 = vmatmul.msk.f32.gmra.mxu1 %vm808_vm2, %v5887_v36 }
 0x2c0   : > { %1534 = vmatpush.msrb.mxu0 %v4884_v1 }
 0x2c5   : > { %4801 = vmatmul.msk.f32.gmra.mxu0 %vm470_vm1, %v6030_v47 }
 0x2c7   : > { %4811 = vmatmul.msk.f32.gmra.mxu1 %vm808_vm2, %v5895_v7 }
 0x2cd   : > { %4802 = vmatmul.msk.f32.gmra.mxu0 %vm470_vm1, %v6039_v48 }
 0x2cf   : > { %4812 = vmatmul.msk.f32.gmra.mxu1 %vm808_vm2, %v5903_v16 }
 0x2d5   : > { %4803 = vmatmul.msk.f32.gmra.mxu0 %vm470_vm1, %v6048_v50 }
 0x2d7   : > { %4813 = vmatmul.msk.f32.gmra.mxu1 %vm808_vm2, %v5914_v28 }
 0x2dd   : > { %4804 = vmatmul.msk.f32.gmra.mxu0 %vm470_vm1, %v6057_v52 }
 0x2df   : > { %4814 = vmatmul.msk.f32.gmra.mxu1 %vm808_vm2, %v5923_v38 }
 0x2e5   : > { %4805 = vmatmul.msk.f32.gmra.mxu0 %vm470_vm1, %v6069_v56 }
 0x2e7   : > { %4815 = vmatmul.msk.f32.gmra.mxu1 %vm808_vm2, %v5932_v8 }
 0x2ed   : > { %4806 = vmatmul.msk.f32.gmra.mxu0 %vm470_vm1, %v6078_v58 }
 0x2ef   : > { %4816 = vmatmul.msk.f32.gmra.mxu1 %vm808_vm2, %v5940_v3 }
 0x2f4   : > { %v6089_v62 = vpop.f32.mrf.mxu1 }
 0x2f5   : > { %4807 = vmatmul.msk.f32.gmra.mxu0 %vm470_vm1, %v6087_v60 }
 0x2fc   : > { %v6093_v39 = vpop.f32.mrf.mxu1 }
 0x2fd   : > { %4835 = vmatmul.msk.f32.vlgmr.msra.gmra.mxu0 %vm808_vm2, %v5879_v26 }
 0x304   : > { %v6097_v51 = vpop.f32.mrf.mxu1 }
 0x305   : > { %4836 = vmatmul.msk.f32.gmra.mxu0 %vm808_vm2, %v5887_v36 }
 0x30c   : > { %v6101_v55 = vpop.f32.mrf.mxu1 }
 0x30d   : > { %4837 = vmatmul.msk.f32.gmra.mxu0 %vm808_vm2, %v5895_v7 }
 0x314   : > { %v6105_v0 = vpop.f32.mrf.mxu1 }
 0x315   : > { %4838 = vmatmul.msk.f32.gmra.mxu0 %vm808_vm2, %v5903_v16 }
 0x31c   : > { %v6109_v10 = vpop.f32.mrf.mxu1 }
 0x31d   : > { %4839 = vmatmul.msk.f32.gmra.mxu0 %vm808_vm2, %v5914_v28 }
 0x324   : > { %v6116_v2 = vpop.f32.mrf.mxu1 }
 0x325   : > { %4840 = vmatmul.msk.f32.gmra.mxu0 %vm808_vm2, %v5923_v38 }
 0x32c   : > { %v6120_v4 = vpop.f32.mrf.mxu1 }
 0x32d   : > { %4841 = vmatmul.msk.f32.gmra.mxu0 %vm808_vm2, %v5932_v8 }
 0x334   : > { %v1143_v9 = vpop.f32.mrf.mxu1 }
 0x335   : > { %4842 = vmatmul.msk.f32.gmra.mxu0 %vm808_vm2, %v5940_v3 }
 0x33a   : > { %v6126_v11 = vpop.f32.mrf.mxu0 }
 0x33c   : > { %v1146_v12 = vpop.f32.mrf.mxu1 }
 0x33d   : > { %4885 = vmatmul.msk.f32.vlgmr.msrb.gmra.mxu0 %vm808_vm2, %v5879_v26 }
 0x342   : > { %v6130_v13 = vpop.f32.mrf.mxu0 }
 0x344   : > { %v1149_v17 = vpop.f32.mrf.mxu1 }
 0x345   : > { %4886 = vmatmul.msk.f32.gmra.mxu0 %vm808_vm2, %v5887_v36 }
 0x34a   : > { %v6134_v20 = vpop.f32.mrf.mxu0 }
 0x34c   : > { %v1152_v14 = vpop.f32.mrf.mxu1 }
 0x34d   : > { %4887 = vmatmul.msk.f32.gmra.mxu0 %vm808_vm2, %v5895_v7 }
 0x352   : > { %v6138_v15 = vpop.f32.mrf.mxu0 }
 0x354   : > { %v1155_v18 = vpop.f32.mrf.mxu1 }
 0x355   : > { %4888 = vmatmul.msk.f32.gmra.mxu0 %vm808_vm2, %v5903_v16 }
 0x35a   : > { %v6142_v19 = vpop.f32.mrf.mxu0 }
 0x35c   : > { %v1158_v21 = vpop.f32.mrf.mxu1 }
 0x35d   : > { %4889 = vmatmul.msk.f32.gmra.mxu0 %vm808_vm2, %v5914_v28 }
 0x362   : > { %v6146_v5 = vpop.f32.mrf.mxu0 }
 0x364   : > { %v1161_v22 = vpop.f32.mrf.mxu1 }
 0x365   : > { %4890 = vmatmul.msk.f32.gmra.mxu0 %vm808_vm2, %v5923_v38 }
 0x36a   : > { %v6150_v23 = vpop.f32.mrf.mxu0 }
 0x36c   : > { %v1164_v24 = vpop.f32.mrf.mxu1 }
 0x36d   : > { %1175 = vmatpush.msra.mxu2 %v1164_v24  ;;  %4891 = vmatmul.msk.f32.gmra.mxu0 %vm808_vm2, %v5932_v8 }
 0x36f   : > { %1176 = vmatpush.msra.mxu2 %v1161_v22  ;;  %v6253_v22 = vld [vmem:[%s8292_s1 + $0x170] sm:$0xff] }
 0x370   : > { %8387 = vst [vmem:[#allocation24_spill] sm:$0xff] %v6253_v22 }
 0x371   : > { %1177 = vmatpush.msra.mxu2 %v1158_v21 }
 0x372   : > { %v6154_v25 = vpop.f32.mrf.mxu0 }
 0x373   : > { %1178 = vmatpush.msra.mxu2 %v1155_v18 }
 0x375   : > { %1179 = vmatpush.msra.mxu2 %v1152_v14  ;;  %4892 = vmatmul.msk.f32.gmra.mxu0 %vm808_vm2, %v5940_v3  ;;  %v6242_v14 = vld [vmem:[%s8292_s1 + $0x168] sm:$0xff] }
 0x376   : > { %8386 = vst [vmem:[#allocation23_spill] sm:$0xff] %v6242_v14 }
 0x377   : > { %1180 = vmatpush.msra.mxu2 %v1149_v17 }
 0x379   : > { %1181 = vmatpush.msra.mxu2 %v1146_v12 }
 0x37a   : > { %v1286_v27 = vpop.f32.mrf.mxu0 }
 0x37b   : > { %1182 = vmatpush.msra.mxu2 %v1143_v9  ;;  %v6231_v9 = vld [vmem:[%s8292_s1 + $0x160] sm:$0xff] }
 0x37c   : > { %4817 = vmatmul.msk.f32.vlgmr.msra.gmra.mxu2 %vm470_vm1, %v5703_v43  ;;  %8385 = vst [vmem:[#allocation22_spill] sm:$0xff] %v6231_v9 }
 0x37d   : > { %1409 = vmatpush.msrb.mxu2 %v4859_v31 }
 0x37f   : > { %1659 = vmatpush.msra.mxu2 %v4909_v34 }
 0x382   : > { %v1289_v29 = vpop.f32.mrf.mxu0 }
 0x384   : > { %4818 = vmatmul.msk.f32.gmra.mxu2 %vm470_vm1, %v5724_v46 }
 0x38a   : > { %v1292_v30 = vpop.f32.mrf.mxu0 }
 0x38c   : > { %4819 = vmatmul.msk.f32.gmra.mxu2 %vm470_vm1, %v5745_v49  ;;  %v6175_v49 = vpop.f32.mrf.mxu2 }
 0x38d   : > { %v976_v58 = vadd.f32 %v6175_v49, %v6089_v62 }
 0x38f   : > { %v1116_v52 = vadd.f32 %v6126_v11, %v976_v58 }
 0x392   : > { %v1295_v32 = vpop.f32.mrf.mxu0 }
 0x394   : > { %4820 = vmatmul.msk.f32.gmra.mxu2 %vm470_vm1, %v5769_v53 }
 0x39a   : > { %v1298_v6 = vpop.f32.mrf.mxu0 }
 0x39c   : > { %4821 = vmatmul.msk.f32.gmra.mxu2 %vm470_vm1, %v5793_v57  ;;  %v6179_v57 = vpop.f32.mrf.mxu2 }
 0x39d   : > { %v979_v50 = vadd.f32 %v6179_v57, %v6093_v39 }
 0x3a2   : > { %v1301_v43 = vpop.f32.mrf.mxu0 }
 0x3a4   : > { %4822 = vmatmul.msk.f32.gmra.mxu2 %vm470_vm1, %v5807_v59  ;;  %v6186_v59 = vld [vmem:[%s8292_s1 + $0x140] sm:$0xff] }
 0x3a5   : > { %8381 = vst [vmem:[#allocation18_spill] sm:$0xff] %v6186_v59 }
 0x3aa   : > { %v1304_v46 = vpop.f32.mrf.mxu0 }
 0x3ac   : > { %4823 = vmatmul.msk.f32.gmra.mxu2 %vm470_vm1, %v5821_v61 }
 0x3b2   : > { %v1307_v33 = vpop.f32.mrf.mxu0 }
 0x3b3   : > { %1351 = vmatpush.msrb.mxu1 %v1307_v33 }
 0x3b4   : > { %4824 = vmatmul.msk.f32.gmra.mxu2 %vm470_vm1, %v5835_v63  ;;  %v6192_v63 = vpop.f32.mrf.mxu2 }
 0x3b5   : > { %1352 = vmatpush.msrb.mxu1 %v1304_v46  ;;  %v982_v62 = vadd.f32 %v6192_v63, %v6097_v51 }
 0x3b7   : > { %1353 = vmatpush.msrb.mxu1 %v1301_v43  ;;  %v1118_v11 = vadd.f32 %v6134_v20, %v982_v62 }
 0x3b9   : > { %1354 = vmatpush.msrb.mxu1 %v1298_v6 }
 0x3ba   : > { %v1536_v53 = vpop.f32.mrf.mxu0 }
 0x3bb   : > { %1355 = vmatpush.msrb.mxu1 %v1295_v32 }
 0x3bc   : > { %4860 = vmatmul.msk.f32.vlgmr.msrb.gmra.mxu2 %vm808_vm2, %v5879_v26  ;;  %v6206_v37 = vpop.f32.mrf.mxu2 }
 0x3bd   : > { %1356 = vmatpush.msrb.mxu1 %v1292_v30  ;;  %v985_v63 = vadd.f32 %v6206_v37, %v6101_v55 }
 0x3bf   : > { %1357 = vmatpush.msrb.mxu1 %v1289_v29  ;;  %v6264_v29 = vld [vmem:[%s8292_s1 + $0x178] sm:$0xff] }
 0x3c0   : > { %8388 = vst [vmem:[#allocation25_spill] sm:$0xff] %v6264_v29 }
 0x3c1   : > { %1358 = vmatpush.msrb.mxu1 %v1286_v27 }
 0x3c2   : > { %4851 = vmatmul.msk.f32.vlgmr.msrb.gmra.mxu1 %vm470_vm1, %v6186_v59  ;;  %v1539_v61 = vpop.f32.mrf.mxu0  ;;  %v1795_v59 = vld [vmem:[%s8295_s4] sm:$0xff] }
 0x3c3   : > { %1835 = vmatpush.msra.mxu0 %v1795_v59 }
 0x3c4   : > { %4861 = vmatmul.msk.f32.gmra.mxu2 %vm808_vm2, %v5887_v36  ;;  %v6222_v54 = vpop.f32.mrf.mxu2 }
 0x3ca   : > { %4852 = vmatmul.msk.f32.gmra.mxu1 %vm470_vm1, %v6197_v35  ;;  %v1542_v42 = vpop.f32.mrf.mxu0 }
 0x3cc   : > { %4862 = vmatmul.msk.f32.gmra.mxu2 %vm808_vm2, %v5895_v7  ;;  %v6235_v17 = vpop.f32.mrf.mxu2 }
 0x3d2   : > { %4853 = vmatmul.msk.f32.gmra.mxu1 %vm470_vm1, %v6211_v45  ;;  %v1545_v40 = vpop.f32.mrf.mxu0 }
 0x3d4   : > { %4863 = vmatmul.msk.f32.gmra.mxu2 %vm808_vm2, %v5903_v16  ;;  %v6248_v21 = vpop.f32.mrf.mxu2 }
 0x3da   : > { %4854 = vmatmul.msk.f32.gmra.mxu1 %vm470_vm1, %v6220_v41  ;;  %v1548_v1 = vpop.f32.mrf.mxu0 }
 0x3dc   : > { %4864 = vmatmul.msk.f32.gmra.mxu2 %vm808_vm2, %v5914_v28  ;;  %v6259_v27 = vpop.f32.mrf.mxu2 }
 0x3e2   : > { %4855 = vmatmul.msk.f32.gmra.mxu1 %vm470_vm1, %v6231_v9  ;;  %v1551_v12 = vpop.f32.mrf.mxu0  ;;  %v4942_v9 = vld [vmem:[%s8295_s4 + $0x8] sm:$0xff] }
 0x3e4   : > { %4865 = vmatmul.msk.f32.gmra.mxu2 %vm808_vm2, %v5923_v38 }
 0x3ea   : > { %4856 = vmatmul.msk.f32.gmra.mxu1 %vm470_vm1, %v6242_v14  ;;  %v1554_v18 = vpop.f32.mrf.mxu0 }
 0x3ec   : > { %4866 = vmatmul.msk.f32.gmra.mxu2 %vm808_vm2, %v5932_v8 }
 0x3f2   : > { %4857 = vmatmul.msk.f32.gmra.mxu1 %vm470_vm1, %v6253_v22  ;;  %v1557_v24 = vpop.f32.mrf.mxu0 }
 0x3f3   : > { %1601 = vmatpush.msra.mxu1 %v1557_v24  ;;  %v6303_v24 = vld [vmem:[%s8292_s1 + $0x1c0] sm:$0xff] }
 0x3f4   : > { %4867 = vmatmul.msk.f32.gmra.mxu2 %vm808_vm2, %v5940_v3  ;;  %8390 = vst [vmem:[#allocation27_spill] sm:$0xff] %v6303_v24 }
 0x3f5   : > { %1602 = vmatpush.msra.mxu1 %v1554_v18 }
 0x3f7   : > { %1603 = vmatpush.msra.mxu1 %v1551_v12 }
 0x3f9   : > { %1604 = vmatpush.msra.mxu1 %v1548_v1 }
 0x3fa   : > { %4858 = vmatmul.msk.f32.gmra.mxu1 %vm470_vm1, %v6264_v29 }
 0x3fb   : > { %1605 = vmatpush.msra.mxu1 %v1545_v40 }
 0x3fc   : > { %4910 = vmatmul.msk.f32.vlgmr.msra.gmra.mxu2 %vm808_vm2, %v5879_v26  ;;  %v6373_v26 = vld [vmem:[%s8292_s1 + $0x1f0] sm:$0xff] }
 0x3fd   : > { %1606 = vmatpush.msra.mxu1 %v1542_v42  ;;  %8400 = vst [vmem:[#allocation37_spill] sm:$0xff] %v6373_v26 }
 0x3ff   : > { %v6270_v30 = vpop.f32.mrf.mxu2  ;;  %1607 = vmatpush.msra.mxu1 %v1539_v61 }
 0x401   : > { %1608 = vmatpush.msra.mxu1 %v1536_v53 }
 0x402   : > { %4901 = vmatmul.msk.f32.vlgmr.msra.gmra.mxu1 %vm470_vm1, %v6303_v24 }
 0x403   : > { %1878 = vmatpush.msrb.mxu1 %v4942_v9  ;;  %v1208_v9 = vadd.f32 %v6270_v30, %v1116_v52  ;;  %v6517_v52 = vld [vmem:[%s8297_s6 + $0x2] ss:$0 sm:$0xff] }
 0x404   : > { %4911 = vmatmul.msk.f32.gmra.mxu2 %vm808_vm2, %v5887_v36 }
 0x407   : > { %v6274_v31 = vpop.f32.mrf.mxu2 }
 0x40c   : > { %4912 = vmatmul.msk.f32.gmra.mxu2 %vm808_vm2, %v5895_v7  ;;  %v6366_v7 = vld [vmem:[%s8292_s1 + $0x198] sm:$0xff] }
 0x40d   : > { %8399 = vst [vmem:[#allocation36_spill] sm:$0xff] %v6366_v7 }
 0x40f   : > { %v6278_v32 = vpop.f32.mrf.mxu2 }
 0x414   : > { %4913 = vmatmul.msk.f32.gmra.mxu2 %vm808_vm2, %v5903_v16  ;;  %v6359_v16 = vld [vmem:[%s8292_s1 + $0x1e8] sm:$0xff] }
 0x415   : > { %8398 = vst [vmem:[#allocation35_spill] sm:$0xff] %v6359_v16 }
 0x417   : > { %v6282_v6 = vpop.f32.mrf.mxu2 }
 0x41c   : > { %4914 = vmatmul.msk.f32.gmra.mxu2 %vm808_vm2, %v5914_v28  ;;  %v6317_v28 = vld [vmem:[%s8292_s1 + $0x1d0] sm:$0xff] }
 0x41d   : > { %8392 = vst [vmem:[#allocation29_spill] sm:$0xff] %v6317_v28 }
 0x41f   : > { %v6286_v43 = vpop.f32.mrf.mxu2 }
 0x424   : > { %4915 = vmatmul.msk.f32.gmra.mxu2 %vm808_vm2, %v5923_v38 }
 0x427   : > { %v6290_v46 = vpop.f32.mrf.mxu2 }
 0x42c   : > { %4916 = vmatmul.msk.f32.gmra.mxu2 %vm808_vm2, %v5932_v8 }
 0x42f   : > { %v6294_v33 = vpop.f32.mrf.mxu2 }
 0x434   : > { %4917 = vmatmul.msk.f32.gmra.mxu2 %vm808_vm2, %v5940_v3  ;;  %v6310_v3 = vld [vmem:[%s8292_s1 + $0x1c8] sm:$0xff] }
 0x435   : > { %8391 = vst [vmem:[#allocation28_spill] sm:$0xff] %v6310_v3  ;;  %4902 = vmatmul.msk.f32.gmra.mxu1 %vm470_vm1, %v6310_v3 }
 0x437   : > { %v6298_v53 = vpop.f32.mrf.mxu2 }
 0x438   : > { %8389 = vst [vmem:[#allocation26_spill] sm:$0xff] %v6298_v53 }
 0x43d   : > { %4903 = vmatmul.msk.f32.gmra.mxu1 %vm470_vm1, %v6317_v28 }
 0x43f   : > { %v1411_v61 = vpop.f32.mrf.mxu2 }
 0x447   : > { %v1414_v42 = vpop.f32.mrf.mxu2 }
 0x44f   : > { %v1417_v34 = vpop.f32.mrf.mxu2 }
 0x457   : > { %v1420_v40 = vpop.f32.mrf.mxu2 }
 0x45f   : > { %v1423_v1 = vpop.f32.mrf.mxu2 }
 0x467   : > { %v1426_v12 = vpop.f32.mrf.mxu2 }
 0x46f   : > { %v1429_v18 = vpop.f32.mrf.mxu2 }
 0x477   : > { %v1432_v8 = vpop.f32.mrf.mxu2 }
 0x478   : > { %1476 = vmatpush.msrb.mxu3 %v1432_v8  ;;  %v6324_v8 = vld [vmem:[%s8292_s1 + $0x180] sm:$0xff] }
 0x479   : > { %8393 = vst [vmem:[#allocation30_spill] sm:$0xff] %v6324_v8 }
 0x47a   : > { %1477 = vmatpush.msrb.mxu3 %v1429_v18 }
 0x47c   : > { %1478 = vmatpush.msrb.mxu3 %v1426_v12  ;;  %v6331_v12 = vld [vmem:[%s8292_s1 + $0x1d8] sm:$0xff] }
 0x47d   : > { %8394 = vst [vmem:[#allocation31_spill] sm:$0xff] %v6331_v12  ;;  %4904 = vmatmul.msk.f32.gmra.mxu1 %vm470_vm1, %v6331_v12 }
 0x47e   : > { %1479 = vmatpush.msrb.mxu3 %v1423_v1 }
 0x47f   : > { %v1661_v38 = vpop.f32.mrf.mxu2 }
 0x480   : > { %1480 = vmatpush.msrb.mxu3 %v1420_v40  ;;  %v6352_v40 = vld [vmem:[%s8292_s1 + $0x190] sm:$0xff] }
 0x481   : > { %8397 = vst [vmem:[#allocation34_spill] sm:$0xff] %v6352_v40 }
 0x482   : > { %1481 = vmatpush.msrb.mxu3 %v1417_v34  ;;  %v6345_v34 = vld [vmem:[%s8292_s1 + $0x1e0] sm:$0xff] }
 0x483   : > { %8396 = vst [vmem:[#allocation33_spill] sm:$0xff] %v6345_v34 }
 0x484   : > { %1482 = vmatpush.msrb.mxu3 %v1414_v42  ;;  %v6338_v42 = vld [vmem:[%s8292_s1 + $0x188] sm:$0xff] }
 0x485   : > { %8395 = vst [vmem:[#allocation32_spill] sm:$0xff] %v6338_v42  ;;  %4905 = vmatmul.msk.f32.gmra.mxu1 %vm470_vm1, %v6345_v34  ;;  %v6408_v34 = vld [vmem:[%s8292_s1 + $0x1b8] sm:$0xff] }
 0x486   : > { %1483 = vmatpush.msrb.mxu3 %v1411_v61  ;;  %8405 = vst [vmem:[#allocation42_spill] sm:$0xff] %v6408_v34 }
 0x487   : > { %4876 = vmatmul.msk.f32.vlgmr.msrb.gmra.mxu3 %vm470_vm1, %v6324_v8  ;;  %v1664_v1 = vpop.f32.mrf.mxu2  ;;  %v6394_v8 = vld [vmem:[%s8292_s1 + $0x1a8] sm:$0xff] }
 0x488   : > { %8403 = vst [vmem:[#allocation40_spill] sm:$0xff] %v6394_v8 }
 0x48d   : > { %4906 = vmatmul.msk.f32.gmra.mxu1 %vm470_vm1, %v6359_v16  ;;  %v6401_v16 = vld [vmem:[%s8292_s1 + $0x1b0] sm:$0xff] }
 0x48e   : > { %8404 = vst [vmem:[#allocation41_spill] sm:$0xff] %v6401_v16 }
 0x48f   : > { %4877 = vmatmul.msk.f32.gmra.mxu3 %vm470_vm1, %v6338_v42  ;;  %v1667_v61 = vpop.f32.mrf.mxu2  ;;  %v6385_v42 = vld [vmem:[%s8292_s1 + $0x1f8] sm:$0xff] }
 0x490   : > { %8402 = vst [vmem:[#allocation39_spill] sm:$0xff] %v6385_v42 }
 0x495   : > { %4907 = vmatmul.msk.f32.gmra.mxu1 %vm470_vm1, %v6373_v26 }
 0x497   : > { %4878 = vmatmul.msk.f32.gmra.mxu3 %vm470_vm1, %v6352_v40  ;;  %v1670_v18 = vpop.f32.mrf.mxu2  ;;  %v6380_v40 = vld [vmem:[%s8292_s1 + $0x1a0] sm:$0xff] }
 0x498   : > { %8401 = vst [vmem:[#allocation38_spill] sm:$0xff] %v6380_v40 }
 0x49d   : > { %4908 = vmatmul.msk.f32.gmra.mxu1 %vm470_vm1, %v6385_v42  ;;  %v1235_v42 = vpop.f32.mrf.mxu3 }
 0x49e   : > { %v1259_v48 = vadd.f32 %v1235_v42, %v1208_v9  ;;  %v1119_v42 = vadd.f32 %v6138_v15, %v985_v63 }
 0x49f   : > { %4879 = vmatmul.msk.f32.gmra.mxu3 %vm470_vm1, %v6366_v7  ;;  %v1673_v36 = vpop.f32.mrf.mxu2 }
 0x4a7   : > { %4880 = vmatmul.msk.f32.gmra.mxu3 %vm470_vm1, %v6380_v40  ;;  %v1676_v7 = vpop.f32.mrf.mxu2 }
 0x4af   : > { %4881 = vmatmul.msk.f32.gmra.mxu3 %vm470_vm1, %v6394_v8  ;;  %v1679_v26 = vpop.f32.mrf.mxu2  ;;  %v6474_v8 = vld [vmem:[%s8292_s1 + $0x238] sm:$0xff] }
 0x4b0   : > { %8413 = vst [vmem:[#allocation50_spill] sm:$0xff] %v6474_v8 }
 0x4b7   : > { %4882 = vmatmul.msk.f32.gmra.mxu3 %vm470_vm1, %v6401_v16  ;;  %v1682_v40 = vpop.f32.mrf.mxu2  ;;  %v6415_v16 = vld [vmem:[%s8292_s1 + $0x200] sm:$0xff] }
 0x4b8   : > { %1726 = vmatpush.msra.mxu3 %v1682_v40  ;;  %8406 = vst [vmem:[#allocation43_spill] sm:$0xff] %v6415_v16 }
 0x4ba   : > { %1727 = vmatpush.msra.mxu3 %v1679_v26  ;;  %v1238_v26 = vpop.f32.mrf.mxu3 }
 0x4bc   : > { %1728 = vmatpush.msra.mxu3 %v1676_v7 }
 0x4be   : > { %1729 = vmatpush.msra.mxu3 %v1673_v36  ;;  %v6422_v36 = vld [vmem:[%s8292_s1 + $0x208] sm:$0xff] }
 0x4bf   : > { %4883 = vmatmul.msk.f32.gmra.mxu3 %vm470_vm1, %v6408_v34  ;;  %8407 = vst [vmem:[#allocation44_spill] sm:$0xff] %v6422_v36  ;;  %v6465_v34 = vld [vmem:[%s8292_s1 + $0x230] sm:$0xff] }
 0x4c0   : > { %1730 = vmatpush.msra.mxu3 %v1670_v18  ;;  %v6449_v18 = vld [vmem:[%s8292_s1 + $0x220] sm:$0xff]  ;;  %8412 = vst [vmem:[#allocation49_spill] sm:$0xff] %v6465_v34 }
 0x4c1   : > { %8410 = vst [vmem:[#allocation47_spill] sm:$0xff] %v6449_v18 }
 0x4c2   : > { %1731 = vmatpush.msra.mxu3 %v1667_v61  ;;  %v6426_v7 = vpop.f32.mrf.mxu3  ;;  %v6440_v61 = vld [vmem:[%s8292_s1 + $0x218] sm:$0xff] }
 0x4c3   : > { %8409 = vst [vmem:[#allocation46_spill] sm:$0xff] %v6440_v61 }
 0x4c4   : > { %1732 = vmatpush.msra.mxu3 %v1664_v1  ;;  %v6431_v1 = vld [vmem:[%s8292_s1 + $0x210] sm:$0xff] }
 0x4c5   : > { %8408 = vst [vmem:[#allocation45_spill] sm:$0xff] %v6431_v1 }
 0x4c6   : > { %1733 = vmatpush.msra.mxu3 %v1661_v38 }
 0x4c7   : > { %4926 = vmatmul.msk.f32.vlgmr.msra.gmra.mxu3 %vm470_vm1, %v6415_v16 }
 0x4ca   : > { %v6435_v38 = vpop.f32.mrf.mxu3 }
 0x4cf   : > { %4927 = vmatmul.msk.f32.gmra.mxu3 %vm470_vm1, %v6422_v36  ;;  %v6456_v36 = vld [vmem:[%s8292_s1 + $0x228] sm:$0xff] }
 0x4d0   : > { %8411 = vst [vmem:[#allocation48_spill] sm:$0xff] %v6456_v36 }
 0x4d2   : > { %v6444_v40 = vpop.f32.mrf.mxu3 }
 0x4d7   : > { %4928 = vmatmul.msk.f32.gmra.mxu3 %vm470_vm1, %v6431_v1  ;;  %v1360_v1 = vpop.f32.mrf.mxu1 }
 0x4d8   : > { %v1384_v59 = vadd.f32 %v1360_v1, %v1259_v48  ;;  %v6523_v48 = vld [vmem:[%s8297_s6 + $0x3] ss:$0 sm:$0xff] }
 0x4da   : > { %v6458_v16 = vpop.f32.mrf.mxu3 }
 0x4df   : > { %4929 = vmatmul.msk.f32.gmra.mxu3 %vm470_vm1, %v6440_v61  ;;  %v1363_v61 = vpop.f32.mrf.mxu1 }
 0x4e7   : > { %4930 = vmatmul.msk.f32.gmra.mxu3 %vm470_vm1, %v6449_v18  ;;  %v6469_v18 = vpop.f32.mrf.mxu3  ;;  %v1366_v12 = vpop.f32.mrf.mxu1 }
 0x4ef   : > { %4931 = vmatmul.msk.f32.gmra.mxu3 %vm470_vm1, %v6456_v36  ;;  %v6478_v36 = vpop.f32.mrf.mxu3  ;;  %v6480_v28 = vpop.f32.mrf.mxu1 }
 0x4f0   : > { %8414 = vst [vmem:[#allocation51_spill] sm:$0xff] %v6478_v36 }
 0x4f7   : > { %4932 = vmatmul.msk.f32.gmra.mxu3 %vm470_vm1, %v6465_v34  ;;  %v6482_v24 = vpop.f32.mrf.mxu1 }
 0x4ff   : > { %4933 = vmatmul.msk.f32.gmra.mxu3 %vm470_vm1, %v6474_v8  ;;  %v6484_v22 = vpop.f32.mrf.mxu1 }
 0x507   : > { %v6489_v41 = vpop.f32.mrf.mxu1 }
 0x50a   : > { %v1485_v3 = vpop.f32.mrf.mxu3 }
 0x50b   : > { %v1509_v53 = vadd.f32 %v1485_v3, %v1384_v59 }
 0x50f   : > { %v6493_v45 = vpop.f32.mrf.mxu1 }
 0x510   : > { %8415 = vst [vmem:[#allocation52_spill] sm:$0xff] %v6493_v45  ;;  %v1117_v45 = vadd.f32 %v6130_v13, %v979_v50  ;;  %v1210_v50 = vadd.f32 %v6278_v32, %v1118_v11 }
 0x512   : > { %v1488_v29 = vpop.f32.mrf.mxu3  ;;  %v1209_v36 = vadd.f32 %v6274_v31, %v1117_v45  ;;  %v1261_v20 = vadd.f32 %v6426_v7, %v1210_v50  ;;  %v988_v7 = vadd.f32 %v6222_v54, %v6105_v0 }
 0x514   : > { %v1260_v49 = vadd.f32 %v1238_v26, %v1209_v36  ;;  %v1386_v26 = vadd.f32 %v1366_v12, %v1261_v20  ;;  %v1120_v9 = vadd.f32 %v6142_v19, %v988_v7  ;;  %v991_v19 = vadd.f32 %v6235_v17, %v6109_v10 }
 0x516   : > { %v1385_v57 = vadd.f32 %v1363_v61, %v1260_v49  ;;  %v1121_v11 = vadd.f32 %v6146_v5, %v991_v19  ;;  %v994_v5 = vadd.f32 %v6248_v21, %v6116_v2 }
 0x517   : > { %v1610_v60 = vpop.f32.mrf.mxu1 }
 0x518   : > { %v1634_v58 = vadd.f32 %v1610_v60, %v1509_v53  ;;  %v1510_v51 = vadd.f32 %v1488_v29, %v1385_v57  ;;  %v1211_v29 = vadd.f32 %v6282_v6, %v1119_v42 }
 0x51a   : > { %v1491_v34 = vpop.f32.mrf.mxu3  ;;  %v1262_v15 = vadd.f32 %v6435_v38, %v1211_v29 }
 0x51b   : > { %v1511_v32 = vadd.f32 %v1491_v34, %v1386_v26  ;;  %v1212_v34 = vadd.f32 %v6286_v43, %v1120_v9 }
 0x51c   : > { %v1387_v59 = vadd.f32 %v6480_v28, %v1262_v15 }
 0x51d   : > { %v1263_v28 = vadd.f32 %v6444_v40, %v1212_v34 }
 0x51f   : > { %v1613_v47 = vpop.f32.mrf.mxu1  ;;  %v1388_v57 = vadd.f32 %v6482_v24, %v1263_v28 }
 0x520   : > { %v1635_v45 = vadd.f32 %v1613_v47, %v1510_v51 }
 0x522   : > { %v1494_v14 = vpop.f32.mrf.mxu3 }
 0x523   : > { %v1512_v0 = vadd.f32 %v1494_v14, %v1387_v59  ;;  %v1213_v14 = vadd.f32 %v6290_v46, %v1121_v11 }
 0x525   : > { %v1264_v24 = vadd.f32 %v6458_v16, %v1213_v14  ;;  %v4967_v16 = vld [vmem:[%s8295_s4 + $0x10] sm:$0xff] }
 0x526   : > { %2003 = vmatpush.msrb.mxu0 %v4967_v16  ;;  %v5484_v16 = vld [vmem:[%s8292_s1 + $0x8] sm:$0xff] }
 0x527   : > { %v1616_v3 = vpop.f32.mrf.mxu1  ;;  %v1389_v46 = vadd.f32 %v6484_v22, %v1264_v24 }
 0x528   : > { %v1636_v12 = vadd.f32 %v1616_v3, %v1511_v32  ;;  %v8417_v32 = vld [vmem:[#allocation51_spill] sm:$0xff] }
 0x52a   : > { %v6491_v8 = vpop.f32.mrf.mxu3 }
 0x52b   : > { %v1513_v10 = vadd.f32 %v6491_v8, %v1388_v57  ;;  %v997_v8 = vadd.f32 %v6259_v27, %v6120_v4 }
 0x52d   : > { %v1123_v42 = vadd.f32 %v6154_v25, %v997_v8  ;;  %v4984_v8 = vld [vmem:[%s8295_s4 + $0x18] sm:$0xff] }
 0x52f   : > { %v1619_v37 = vpop.f32.mrf.mxu1 }
 0x530   : > { %v1637_v49 = vadd.f32 %v1619_v37, %v1512_v0 }
 0x532   : > { %v6495_v35 = vpop.f32.mrf.mxu3 }
 0x533   : > { %v1514_v21 = vadd.f32 %v6495_v35, %v1389_v46 }
 0x537   : > { %v1622_v62 = vpop.f32.mrf.mxu1 }
 0x53a   : > { %v6502_v56 = vpop.f32.mrf.mxu3 }
 0x53f   : > { %v1625_v50 = vpop.f32.mrf.mxu1 }
 0x540   : > { %v1639_v20 = vadd.f32 %v1625_v50, %v1514_v21  ;;  %v6688_v21 = vld [vmem:[%s8292_s1 + $0x50] sm:$0xff] }
 0x542   : > { %v6508_v44 = vpop.f32.mrf.mxu3 }
 0x547   : > { %v1628_v35 = vpop.f32.mrf.mxu1 }
 0x54a   : > { %v1735_v39 = vpop.f32.mrf.mxu3 }
 0x54b   : > { %v1759_v30 = vadd.f32 %v1735_v39, %v1634_v58 }
 0x54d   : > { %v1769_v60 = vmul.f32 %v6517_v52, %v1759_v30  ;;  %v1638_v30 = vadd.f32 %v1622_v62, %v1513_v10 }
 0x54f   : > { %v1779_v13 = vadd.f32 %v6523_v48, %v1769_v60  ;;  %v1122_v60 = vadd.f32 %v6150_v23, %v994_v5 }
 0x551   : > { %v6531_v31 = vmax.f32 %v1779_v13, 0.0  ;;  %v1214_v2 = vadd.f32 %v6294_v33, %v1122_v60  ;;  %v5482_v60 = vld [vmem:[%s8292_s1] sm:$0xff] }
 0x552   : > { %v1738_v53 = vpop.f32.mrf.mxu3 }
 0x553   : > { %v1760_v36 = vadd.f32 %v1738_v53, %v1635_v45  ;;  %4934 = vmatmul.msk.f32.vlgmr.msra.gmra.mxu0 %vm808_vm2, %v6531_v31  ;;  %4943 = vmatmul.msk.f32.vlgmr.msrb.gmra.mxu1 %vm808_vm2, %v6531_v31  ;;  %v1265_v63 = vadd.f32 %v6469_v18, %v1214_v2 }
 0x555   : > { %v1770_v55 = vmul.f32 %v6517_v52, %v1760_v36  ;;  %v1390_v26 = vadd.f32 %v6489_v41, %v1265_v63  ;;  %v8416_v36 = vld [vmem:[#allocation26_spill] sm:$0xff]  ;;  %v6702_v63 = vld [vmem:[%s8292_s1 + $0x58] sm:$0xff] }
 0x556   : > { %v1215_v4 = vadd.f32 %v8416_v36, %v1123_v42  ;;  %8422 = vst [vmem:[#allocation53_spill] sm:$0xff] %v6702_v63  ;;  %v6713_v42 = vld [vmem:[%s8292_s1 + $0x60] sm:$0xff]  ;;  %v5492_v36 = vld [vmem:[%s8292_s1 + $0x28] sm:$0xff] }
 0x557   : > { %v1780_v47 = vadd.f32 %v6523_v48, %v1770_v55  ;;  %v1515_v27 = vadd.f32 %v6502_v56, %v1390_v26  ;;  %8423 = vst [vmem:[#allocation54_spill] sm:$0xff] %v6713_v42  ;;  %v5490_v26 = vld [vmem:[%s8292_s1 + $0x20] sm:$0xff] }
 0x558   : > { %v1266_v25 = vadd.f32 %v8417_v32, %v1215_v4  ;;  %v6746_v32 = vld [vmem:[%s8292_s1 + $0x78] sm:$0xff] }
 0x559   : > { %v6544_v1 = vmax.f32 %v1780_v47, 0.0  ;;  %v1640_v55 = vadd.f32 %v1628_v35, %v1515_v27  ;;  %v8418_v47 = vld [vmem:[#allocation52_spill] sm:$0xff]  ;;  %v6724_v35 = vld [vmem:[%s8292_s1 + $0x68] sm:$0xff]  ;;  %8426 = vst [vmem:[#allocation57_spill] sm:$0xff] %v6746_v32 }
 0x55a   : > { %v1741_v61 = vpop.f32.mrf.mxu3  ;;  %v1391_v7 = vadd.f32 %v8418_v47, %v1266_v25  ;;  %8421 = vst [vmem:[#allocation52_spill] sm:$0xff] %v6688_v21  ;;  %v6735_v27 = vld [vmem:[%s8292_s1 + $0x70] sm:$0xff]  ;;  %v5496_v25 = vld [vmem:[%s8292_s1 + $0x38] sm:$0xff] }
 0x55b   : > { %v1761_v6 = vadd.f32 %v1741_v61, %v1636_v12  ;;  %4935 = vmatmul.msk.f32.gmra.mxu0 %vm808_vm2, %v6544_v1  ;;  %4944 = vmatmul.msk.f32.gmra.mxu1 %vm808_vm2, %v6544_v1  ;;  %v1631_v61 = vpop.f32.mrf.mxu1  ;;  %8424 = vst [vmem:[#allocation55_spill] sm:$0xff] %v6724_v35  ;;  %v8429_v47 = vld [vmem:[#allocation12_spill] sm:$0xff] }
 0x55c   : > { %v1516_v56 = vadd.f32 %v6508_v44, %v1391_v7  ;;  %8425 = vst [vmem:[#allocation56_spill] sm:$0xff] %v6735_v27  ;;  %v8430_v7 = vld [vmem:[#allocation13_spill] sm:$0xff] }
 0x55d   : > { %v1771_v54 = vmul.f32 %v6517_v52, %v1761_v6 }
 0x55e   : > { %v1641_v59 = vadd.f32 %v1631_v61, %v1516_v56  ;;  %v8431_v56 = vld [vmem:[#allocation14_spill] sm:$0xff]  ;;  %v8433_v61 = vld [vmem:[#allocation16_spill] sm:$0xff] }
 0x55f   : > { %v1781_v38 = vadd.f32 %v6523_v48, %v1771_v54 }
 0x561   : > { %v6558_v58 = vmax.f32 %v1781_v38, 0.0 }
 0x562   : > { %v1744_v39 = vpop.f32.mrf.mxu3 }
 0x563   : > { %v1762_v43 = vadd.f32 %v1744_v39, %v1637_v49  ;;  %4936 = vmatmul.msk.f32.gmra.mxu0 %vm808_vm2, %v6558_v58  ;;  %4945 = vmatmul.msk.f32.gmra.mxu1 %vm808_vm2, %v6558_v58 }
 0x565   : > { %v1772_v17 = vmul.f32 %v6517_v52, %v1762_v43 }
 0x567   : > { %v1782_v40 = vadd.f32 %v6523_v48, %v1772_v17 }
 0x569   : > { %v6573_v3 = vmax.f32 %v1782_v40, 0.0 }
 0x56a   : > { %v1747_v51 = vpop.f32.mrf.mxu3 }
 0x56b   : > { %v1763_v13 = vadd.f32 %v1747_v51, %v1638_v30  ;;  %4937 = vmatmul.msk.f32.gmra.mxu0 %vm808_vm2, %v6573_v3  ;;  %4946 = vmatmul.msk.f32.gmra.mxu1 %vm808_vm2, %v6573_v3  ;;  %v6666_v51 = vld [vmem:[%s8292_s1 + $0x40] sm:$0xff] }
 0x56c   : > { %8419 = vst [vmem:[#allocation26_spill] sm:$0xff] %v6666_v51 }
 0x56d   : > { %v1773_v23 = vmul.f32 %v6517_v52, %v1763_v13  ;;  %v6677_v13 = vld [vmem:[%s8292_s1 + $0x48] sm:$0xff] }
 0x56e   : > { %8420 = vst [vmem:[#allocation51_spill] sm:$0xff] %v6677_v13 }
 0x56f   : > { %v1783_v22 = vadd.f32 %v6523_v48, %v1773_v23  ;;  %v5486_v23 = vld [vmem:[%s8292_s1 + $0x10] sm:$0xff] }
 0x571   : > { %v6591_v45 = vmax.f32 %v1783_v22, 0.0 }
 0x572   : > { %v1750_v53 = vpop.f32.mrf.mxu3 }
 0x573   : > { %v1764_v33 = vadd.f32 %v1750_v53, %v1639_v20  ;;  %4938 = vmatmul.msk.f32.gmra.mxu0 %vm808_vm2, %v6591_v45  ;;  %4947 = vmatmul.msk.f32.gmra.mxu1 %vm808_vm2, %v6591_v45  ;;  %v5488_v20 = vld [vmem:[%s8292_s1 + $0x18] sm:$0xff] }
 0x575   : > { %v1774_v18 = vmul.f32 %v6517_v52, %v1764_v33 }
 0x577   : > { %v1784_v29 = vadd.f32 %v6523_v48, %v1774_v18  ;;  %v5494_v18 = vld [vmem:[%s8292_s1 + $0x30] sm:$0xff] }
 0x579   : > { %v6604_v41 = vmax.f32 %v1784_v29, 0.0 }
 0x57a   : > { %v1753_v37 = vpop.f32.mrf.mxu3 }
 0x57b   : > { %v1765_v15 = vadd.f32 %v1753_v37, %v1640_v55  ;;  %4939 = vmatmul.msk.f32.gmra.mxu0 %vm808_vm2, %v6604_v41  ;;  %4948 = vmatmul.msk.f32.gmra.mxu1 %vm808_vm2, %v6604_v41  ;;  %v8427_v55 = vld [vmem:[#allocation10_spill] sm:$0xff]  ;;  %v8428_v37 = vld [vmem:[#allocation11_spill] sm:$0xff] }
 0x57d   : > { %v1775_v12 = vmul.f32 %v6517_v52, %v1765_v15  ;;  %v5010_v15 = vld [vmem:[%s8295_s4 + $0x28] sm:$0xff] }
 0x57f   : > { %v1785_v9 = vadd.f32 %v6523_v48, %v1775_v12  ;;  %v8432_v12 = vld [vmem:[#allocation15_spill] sm:$0xff] }
 0x581   : > { %v6614_v6 = vmax.f32 %v1785_v9, 0.0  ;;  %v8434_v9 = vld [vmem:[#allocation17_spill] sm:$0xff] }
 0x582   : > { %v1756_v34 = vpop.f32.mrf.mxu3 }
 0x583   : > { %v1766_v0 = vadd.f32 %v1756_v34, %v1641_v59  ;;  %4940 = vmatmul.msk.f32.gmra.mxu0 %vm808_vm2, %v6614_v6  ;;  %4949 = vmatmul.msk.f32.gmra.mxu1 %vm808_vm2, %v6614_v6 }
 0x585   : > { %v1776_v54 = vmul.f32 %v6517_v52, %v1766_v0  ;;  %v5001_v52 = vld [vmem:[%s8295_s4 + $0x20] sm:$0xff] }
 0x586   : > { %2187 = vmatpush.msra.mxu0 %v5001_v52 }
 0x587   : > { %v1786_v44 = vadd.f32 %v6523_v48, %v1776_v54 }
 0x589   : > { %v6622_v38 = vmax.f32 %v1786_v44, 0.0  ;;  %v5044_v44 = vld [vmem:[%s8295_s4 + $0x38] sm:$0xff] }
 0x58b   : > { %4941 = vmatmul.msk.f32.gmra.mxu0 %vm808_vm2, %v6622_v38  ;;  %4950 = vmatmul.msk.f32.gmra.mxu1 %vm808_vm2, %v6622_v38 }
 0x593   : > { %4968 = vmatmul.msk.f32.vlgmr.msrb.gmra.mxu0 %vm808_vm2, %v6531_v31 }
 0x59b   : > { %4969 = vmatmul.msk.f32.gmra.mxu0 %vm808_vm2, %v6544_v1 }
 0x5a3   : > { %4970 = vmatmul.msk.f32.gmra.mxu0 %vm808_vm2, %v6558_v58 }
 0x5ab   : > { %4971 = vmatmul.msk.f32.gmra.mxu0 %vm808_vm2, %v6573_v3 }
 0x5b3   : > { %4972 = vmatmul.msk.f32.gmra.mxu0 %vm808_vm2, %v6591_v45 }
 0x5bb   : > { %4973 = vmatmul.msk.f32.gmra.mxu0 %vm808_vm2, %v6604_v41 }
 0x5c3   : > { %4974 = vmatmul.msk.f32.gmra.mxu0 %vm808_vm2, %v6614_v6 }
 0x5cb   : > { %4975 = vmatmul.msk.f32.gmra.mxu0 %vm808_vm2, %v6622_v38 }
 0x5d0   : > { %v1837_v48 = vpop.f32.mrf.mxu0  ;;  %v1880_v62 = vpop.f32.mrf.mxu1 }
 0x5d3   : > { %5002 = vmatmul.msk.f32.vlgmr.msra.gmra.mxu0 %vm808_vm2, %v6531_v31 }
 0x5d8   : > { %v1840_v19 = vpop.f32.mrf.mxu0  ;;  %v1883_v28 = vpop.f32.mrf.mxu1 }
 0x5db   : > { %5003 = vmatmul.msk.f32.gmra.mxu0 %vm808_vm2, %v6544_v1 }
 0x5e0   : > { %v1843_v49 = vpop.f32.mrf.mxu0  ;;  %v1886_v39 = vpop.f32.mrf.mxu1 }
 0x5e3   : > { %5004 = vmatmul.msk.f32.gmra.mxu0 %vm808_vm2, %v6558_v58 }
 0x5e8   : > { %v1846_v11 = vpop.f32.mrf.mxu0  ;;  %v1889_v57 = vpop.f32.mrf.mxu1 }
 0x5eb   : > { %5005 = vmatmul.msk.f32.gmra.mxu0 %vm808_vm2, %v6573_v3 }
 0x5f0   : > { %v1849_v43 = vpop.f32.mrf.mxu0  ;;  %v1892_v14 = vpop.f32.mrf.mxu1 }
 0x5f3   : > { %5006 = vmatmul.msk.f32.gmra.mxu0 %vm808_vm2, %v6591_v45 }
 0x5f8   : > { %v1852_v10 = vpop.f32.mrf.mxu0  ;;  %v1895_v17 = vpop.f32.mrf.mxu1 }
 0x5fb   : > { %5007 = vmatmul.msk.f32.gmra.mxu0 %vm808_vm2, %v6604_v41 }
 0x600   : > { %v1855_v40 = vpop.f32.mrf.mxu0  ;;  %v1898_v5 = vpop.f32.mrf.mxu1 }
 0x603   : > { %5008 = vmatmul.msk.f32.gmra.mxu0 %vm808_vm2, %v6614_v6 }
 0x608   : > { %v1858_v24 = vpop.f32.mrf.mxu0  ;;  %v1901_v30 = vpop.f32.mrf.mxu1 }
 0x609   : > { %1912 = vmatpush.msrb.mxu2 %v1901_v30  ;;  %1953 = vmatpush.msrb.mxu3 %v1858_v24 }
 0x60b   : > { %1913 = vmatpush.msrb.mxu2 %v1898_v5  ;;  %1954 = vmatpush.msrb.mxu3 %v1855_v40 }
 0x60c   : > { %5009 = vmatmul.msk.f32.gmra.mxu0 %vm808_vm2, %v6622_v38 }
 0x60d   : > { %1914 = vmatpush.msrb.mxu2 %v1895_v17  ;;  %1955 = vmatpush.msrb.mxu3 %v1852_v10 }
 0x60f   : > { %1915 = vmatpush.msrb.mxu2 %v1892_v14  ;;  %1956 = vmatpush.msrb.mxu3 %v1849_v43 }
 0x610   : > { %v2005_v50 = vpop.f32.mrf.mxu0 }
 0x611   : > { %1916 = vmatpush.msrb.mxu2 %v1889_v57  ;;  %1957 = vmatpush.msrb.mxu3 %v1846_v11 }
 0x613   : > { %1917 = vmatpush.msrb.mxu2 %v1886_v39  ;;  %1958 = vmatpush.msrb.mxu3 %v1843_v49 }
 0x615   : > { %1918 = vmatpush.msrb.mxu2 %v1883_v28  ;;  %1959 = vmatpush.msrb.mxu3 %v1840_v19 }
 0x617   : > { %1919 = vmatpush.msrb.mxu2 %v1880_v62  ;;  %1960 = vmatpush.msrb.mxu3 %v1837_v48 }
 0x618   : > { %4951 = vmatmul.msk.f32.vlgmr.msrb.gmra.mxu2 %vm470_vm1, %v6666_v51  ;;  %4959 = vmatmul.msk.f32.vlgmr.msrb.gmra.mxu3 %vm470_vm1, %v5482_v60  ;;  %v2008_v46 = vpop.f32.mrf.mxu0 }
 0x619   : > { %2095 = vmatpush.msra.mxu2 %v4984_v8  ;;  %v6866_v8 = vld [vmem:[%s8292_s1 + $0xc8] sm:$0xff] }
 0x61a   : > { %8436 = vst [vmem:[#allocation11_spill] sm:$0xff] %v6866_v8 }
 0x620   : > { %4952 = vmatmul.msk.f32.gmra.mxu2 %vm470_vm1, %v6677_v13  ;;  %4960 = vmatmul.msk.f32.gmra.mxu3 %vm470_vm1, %v5484_v16  ;;  %v2011_v2 = vpop.f32.mrf.mxu0 }
 0x628   : > { %4953 = vmatmul.msk.f32.gmra.mxu2 %vm470_vm1, %v6688_v21  ;;  %4961 = vmatmul.msk.f32.gmra.mxu3 %vm470_vm1, %v5486_v23  ;;  %v2014_v22 = vpop.f32.mrf.mxu0  ;;  %v6859_v23 = vld [vmem:[%s8292_s1 + $0xc0] sm:$0xff] }
 0x629   : > { %8435 = vst [vmem:[#allocation10_spill] sm:$0xff] %v6859_v23 }
 0x630   : > { %4954 = vmatmul.msk.f32.gmra.mxu2 %vm470_vm1, %v6702_v63  ;;  %4962 = vmatmul.msk.f32.gmra.mxu3 %vm470_vm1, %v5488_v20  ;;  %v2017_v53 = vpop.f32.mrf.mxu0  ;;  %v5103_v63 = vld [vmem:[%s8296_s5 + $0x10] sm:$0xff] }
 0x638   : > { %4955 = vmatmul.msk.f32.gmra.mxu2 %vm470_vm1, %v6713_v42  ;;  %4963 = vmatmul.msk.f32.gmra.mxu3 %vm470_vm1, %v5490_v26  ;;  %v2020_v33 = vpop.f32.mrf.mxu0  ;;  %v5027_v26 = vld [vmem:[%s8295_s4 + $0x30] sm:$0xff] }
 0x640   : > { %4956 = vmatmul.msk.f32.gmra.mxu2 %vm470_vm1, %v6724_v35  ;;  %4964 = vmatmul.msk.f32.gmra.mxu3 %vm470_vm1, %v5492_v36  ;;  %v2023_v4 = vpop.f32.mrf.mxu0  ;;  %v6883_v36 = vld [vmem:[%s8292_s1 + $0xd8] sm:$0xff] }
 0x641   : > { %8438 = vst [vmem:[#allocation13_spill] sm:$0xff] %v6883_v36 }
 0x648   : > { %4957 = vmatmul.msk.f32.gmra.mxu2 %vm470_vm1, %v6735_v27  ;;  %4965 = vmatmul.msk.f32.gmra.mxu3 %vm470_vm1, %v5494_v18  ;;  %v2026_v29 = vpop.f32.mrf.mxu0  ;;  %v6890_v18 = vld [vmem:[%s8292_s1 + $0xe0] sm:$0xff] }
 0x649   : > { %2037 = vmatpush.msra.mxu1 %v2026_v29  ;;  %8439 = vst [vmem:[#allocation14_spill] sm:$0xff] %v6890_v18 }
 0x64b   : > { %2038 = vmatpush.msra.mxu1 %v2023_v4 }
 0x64d   : > { %2039 = vmatpush.msra.mxu1 %v2020_v33 }
 0x64f   : > { %2040 = vmatpush.msra.mxu1 %v2017_v53  ;;  %v6873_v53 = vld [vmem:[%s8292_s1 + $0xd0] sm:$0xff] }
 0x650   : > { %4958 = vmatmul.msk.f32.gmra.mxu2 %vm470_vm1, %v6746_v32  ;;  %4966 = vmatmul.msk.f32.gmra.mxu3 %vm470_vm1, %v5496_v25  ;;  %8437 = vst [vmem:[#allocation12_spill] sm:$0xff] %v6873_v53  ;;  %v6897_v25 = vld [vmem:[%s8292_s1 + $0xe8] sm:$0xff] }
 0x651   : > { %2041 = vmatpush.msra.mxu1 %v2014_v22  ;;  %8440 = vst [vmem:[#allocation15_spill] sm:$0xff] %v6897_v25 }
 0x653   : > { %2042 = vmatpush.msra.mxu1 %v2011_v2 }
 0x655   : > { %2043 = vmatpush.msra.mxu1 %v2008_v46 }
 0x657   : > { %2044 = vmatpush.msra.mxu1 %v2005_v50 }
 0x658   : > { %4976 = vmatmul.msk.f32.vlgmr.msra.gmra.mxu1 %vm470_vm1, %v8427_v55  ;;  %4985 = vmatmul.msk.f32.vlgmr.msra.gmra.mxu2 %vm808_vm2, %v6531_v31 }
 0x659   : > { %2238 = vmatpush.msrb.mxu1 %v5010_v15  ;;  %v6913_v15 = vld [vmem:[%s8292_s1 + $0xf8] sm:$0xff] }
 0x65a   : > { %8442 = vst [vmem:[#allocation17_spill] sm:$0xff] %v6913_v15 }
 0x65b   : > { %2422 = vmatpush.msra.mxu1 %v5044_v44 }
 0x660   : > { %4977 = vmatmul.msk.f32.gmra.mxu1 %vm470_vm1, %v8428_v37  ;;  %4986 = vmatmul.msk.f32.gmra.mxu2 %vm808_vm2, %v6544_v1  ;;  %v6904_v37 = vld [vmem:[%s8292_s1 + $0xf0] sm:$0xff] }
 0x661   : > { %8441 = vst [vmem:[#allocation16_spill] sm:$0xff] %v6904_v37 }
 0x668   : > { %4978 = vmatmul.msk.f32.gmra.mxu1 %vm470_vm1, %v8429_v47  ;;  %4987 = vmatmul.msk.f32.gmra.mxu2 %vm808_vm2, %v6558_v58 }
 0x670   : > { %4979 = vmatmul.msk.f32.gmra.mxu1 %vm470_vm1, %v8430_v7  ;;  %4988 = vmatmul.msk.f32.gmra.mxu2 %vm808_vm2, %v6573_v3 }
 0x678   : > { %4980 = vmatmul.msk.f32.gmra.mxu1 %vm470_vm1, %v8431_v56  ;;  %4989 = vmatmul.msk.f32.gmra.mxu2 %vm808_vm2, %v6591_v45  ;;  %v8443_v56 = vld [vmem:[#allocation18_spill] sm:$0xff] }
 0x680   : > { %4981 = vmatmul.msk.f32.gmra.mxu1 %vm470_vm1, %v8432_v12  ;;  %4990 = vmatmul.msk.f32.gmra.mxu2 %vm808_vm2, %v6604_v41 }
 0x688   : > { %4982 = vmatmul.msk.f32.gmra.mxu1 %vm470_vm1, %v8433_v61  ;;  %4991 = vmatmul.msk.f32.gmra.mxu2 %vm808_vm2, %v6614_v6 }
 0x690   : > { %4983 = vmatmul.msk.f32.gmra.mxu1 %vm470_vm1, %v8434_v9  ;;  %4992 = vmatmul.msk.f32.gmra.mxu2 %vm808_vm2, %v6622_v38  ;;  %v8444_v9 = vld [vmem:[#allocation19_spill] sm:$0xff] }
 0x698   : > { %5011 = vmatmul.msk.f32.vlgmr.msrb.gmra.mxu1 %vm808_vm2, %v6531_v31 }
 0x69b   : > { %v6791_v59 = vpop.f32.mrf.mxu2  ;;  %v6908_v7 = vpop.f32.mrf.mxu3 }
 0x6a0   : > { %5012 = vmatmul.msk.f32.gmra.mxu1 %vm808_vm2, %v6544_v1 }
 0x6a3   : > { %v6795_v34 = vpop.f32.mrf.mxu2  ;;  %v6919_v61 = vpop.f32.mrf.mxu3 }
 0x6a8   : > { %5013 = vmatmul.msk.f32.gmra.mxu1 %vm808_vm2, %v6558_v58 }
 0x6ab   : > { %v6799_v0 = vpop.f32.mrf.mxu2 }
 0x6b0   : > { %5014 = vmatmul.msk.f32.gmra.mxu1 %vm808_vm2, %v6573_v3 }
 0x6b3   : > { %v6803_v54 = vpop.f32.mrf.mxu2 }
 0x6b8   : > { %5015 = vmatmul.msk.f32.gmra.mxu1 %vm808_vm2, %v6591_v45 }
 0x6bb   : > { %v6810_v52 = vpop.f32.mrf.mxu2 }
 0x6c0   : > { %5016 = vmatmul.msk.f32.gmra.mxu1 %vm808_vm2, %v6604_v41 }
 0x6c3   : > { %v6814_v48 = vpop.f32.mrf.mxu2 }
 0x6c8   : > { %5017 = vmatmul.msk.f32.gmra.mxu1 %vm808_vm2, %v6614_v6 }
 0x6cb   : > { %v6818_v62 = vpop.f32.mrf.mxu2 }
 0x6d0   : > { %5018 = vmatmul.msk.f32.gmra.mxu1 %vm808_vm2, %v6622_v38 }
 0x6d3   : > { %v6822_v19 = vpop.f32.mrf.mxu2 }
 0x6d5   : > { %v6824_v28 = vpop.f32.mrf.mxu1 }
 0x6d8   : > { %5045 = vmatmul.msk.f32.vlgmr.msra.gmra.mxu1 %vm808_vm2, %v6531_v31 }
 0x6db   : > { %v2097_v49 = vpop.f32.mrf.mxu2 }
 0x6dd   : > { %v6828_v39 = vpop.f32.mrf.mxu1 }
 0x6e0   : > { %5046 = vmatmul.msk.f32.gmra.mxu1 %vm808_vm2, %v6544_v1 }
 0x6e3   : > { %v2100_v11 = vpop.f32.mrf.mxu2 }
 0x6e5   : > { %v6832_v57 = vpop.f32.mrf.mxu1 }
 0x6e8   : > { %5047 = vmatmul.msk.f32.gmra.mxu1 %vm808_vm2, %v6558_v58 }
 0x6eb   : > { %v2103_v43 = vpop.f32.mrf.mxu2 }
 0x6ed   : > { %v6836_v14 = vpop.f32.mrf.mxu1 }
 0x6f0   : > { %5048 = vmatmul.msk.f32.gmra.mxu1 %vm808_vm2, %v6573_v3 }
 0x6f3   : > { %v2106_v10 = vpop.f32.mrf.mxu2 }
 0x6f5   : > { %v6840_v17 = vpop.f32.mrf.mxu1 }
 0x6f8   : > { %5049 = vmatmul.msk.f32.gmra.mxu1 %vm808_vm2, %v6591_v45 }
 0x6fb   : > { %v2109_v40 = vpop.f32.mrf.mxu2 }
 0x6fd   : > { %v6844_v5 = vpop.f32.mrf.mxu1 }
 0x700   : > { %5050 = vmatmul.msk.f32.gmra.mxu1 %vm808_vm2, %v6604_v41 }
 0x703   : > { %v2112_v24 = vpop.f32.mrf.mxu2 }
 0x705   : > { %v6848_v30 = vpop.f32.mrf.mxu1 }
 0x708   : > { %5051 = vmatmul.msk.f32.gmra.mxu1 %vm808_vm2, %v6614_v6 }
 0x70b   : > { %v2115_v50 = vpop.f32.mrf.mxu2 }
 0x70d   : > { %v6852_v60 = vpop.f32.mrf.mxu1 }
 0x710   : > { %5052 = vmatmul.msk.f32.gmra.mxu1 %vm808_vm2, %v6622_v38 }
 0x713   : > { %v2118_v46 = vpop.f32.mrf.mxu2 }
 0x714   : > { %2129 = vmatpush.msra.mxu3 %v2118_v46  ;;  %v8447_v46 = vld [vmem:[#allocation22_spill] sm:$0xff] }
 0x715   : > { %v2240_v16 = vpop.f32.mrf.mxu1 }
 0x716   : > { %2130 = vmatpush.msra.mxu3 %v2115_v50 }
 0x718   : > { %2131 = vmatpush.msra.mxu3 %v2112_v24 }
 0x71a   : > { %2132 = vmatpush.msra.mxu3 %v2109_v40  ;;  %v8446_v40 = vld [vmem:[#allocation21_spill] sm:$0xff] }
 0x71c   : > { %2133 = vmatpush.msra.mxu3 %v2106_v10  ;;  %v5061_v10 = vld [vmem:[%s8295_s4 + $0x40] sm:$0xff] }
 0x71d   : > { %v2243_v2 = vpop.f32.mrf.mxu1 }
 0x71e   : > { %2134 = vmatpush.msra.mxu3 %v2103_v43 }
 0x720   : > { %2135 = vmatpush.msra.mxu3 %v2100_v11  ;;  %v8445_v11 = vld [vmem:[#allocation20_spill] sm:$0xff] }
 0x722   : > { %2136 = vmatpush.msra.mxu3 %v2097_v49  ;;  %v6927_v49 = vpop.f32.mrf.mxu3 }
 0x723   : > { %4993 = vmatmul.msk.f32.vlgmr.msra.gmra.mxu3 %vm470_vm1, %v6859_v23 }
 0x724   : > { %2330 = vmatpush.msrb.mxu3 %v5027_v26 }
 0x725   : > { %v2246_v22 = vpop.f32.mrf.mxu1 }
 0x726   : > { %2514 = vmatpush.msra.mxu3 %v5061_v10 }
 0x72a   : > { %v6938_v50 = vpop.f32.mrf.mxu3 }
 0x72b   : > { %4994 = vmatmul.msk.f32.gmra.mxu3 %vm470_vm1, %v6866_v8  ;;  %v1966_v8 = vadd.f32 %v6919_v61, %v6795_v34 }
 0x72d   : > { %v2249_v20 = vpop.f32.mrf.mxu1 }
 0x733   : > { %4995 = vmatmul.msk.f32.gmra.mxu3 %vm470_vm1, %v6873_v53 }
 0x735   : > { %v2252_v33 = vpop.f32.mrf.mxu1 }
 0x73b   : > { %4996 = vmatmul.msk.f32.gmra.mxu3 %vm470_vm1, %v6883_v36 }
 0x73d   : > { %v2255_v4 = vpop.f32.mrf.mxu1 }
 0x743   : > { %4997 = vmatmul.msk.f32.gmra.mxu3 %vm470_vm1, %v6890_v18  ;;  %v2625_v18 = vld [vmem:[%s8296_s5] sm:$0xff] }
 0x745   : > { %v2258_v29 = vpop.f32.mrf.mxu1 }
 0x74b   : > { %4998 = vmatmul.msk.f32.gmra.mxu3 %vm470_vm1, %v6897_v25 }
 0x74d   : > { %v2261_v55 = vpop.f32.mrf.mxu1 }
 0x74e   : > { %2272 = vmatpush.msrb.mxu2 %v2261_v55  ;;  %v8450_v55 = vld [vmem:[#allocation25_spill] sm:$0xff] }
 0x750   : > { %2273 = vmatpush.msrb.mxu2 %v2258_v29 }
 0x752   : > { %2274 = vmatpush.msrb.mxu2 %v2255_v4 }
 0x753   : > { %4999 = vmatmul.msk.f32.gmra.mxu3 %vm470_vm1, %v6904_v37 }
 0x754   : > { %2275 = vmatpush.msrb.mxu2 %v2252_v33  ;;  %v8449_v33 = vld [vmem:[#allocation24_spill] sm:$0xff] }
 0x755   : > { %v2424_v47 = vpop.f32.mrf.mxu1 }
 0x756   : > { %2276 = vmatpush.msrb.mxu2 %v2249_v20 }
 0x758   : > { %2277 = vmatpush.msrb.mxu2 %v2246_v22  ;;  %v8448_v22 = vld [vmem:[#allocation23_spill] sm:$0xff] }
 0x75a   : > { %2278 = vmatpush.msrb.mxu2 %v2243_v2  ;;  %v6944_v2 = vpop.f32.mrf.mxu3 }
 0x75b   : > { %5000 = vmatmul.msk.f32.gmra.mxu3 %vm470_vm1, %v6913_v15 }
 0x75c   : > { %2279 = vmatpush.msrb.mxu2 %v2240_v16 }
 0x75d   : > { %5019 = vmatmul.msk.f32.vlgmr.msrb.gmra.mxu2 %vm470_vm1, %v8443_v56  ;;  %v2427_v12 = vpop.f32.mrf.mxu1  ;;  %v8451_v56 = vld [vmem:[#allocation27_spill] sm:$0xff] }
 0x762   : > { %v6950_v26 = vpop.f32.mrf.mxu3 }
 0x763   : > { %5028 = vmatmul.msk.f32.vlgmr.msrb.gmra.mxu3 %vm808_vm2, %v6531_v31 }
 0x764   : > { %2749 = vmatpush.msrb.mxu3 %v2625_v18  ;;  %v2071_v18 = vadd.f32 %v6828_v39, %v1966_v8 }
 0x765   : > { %5020 = vmatmul.msk.f32.gmra.mxu2 %vm470_vm1, %v8444_v9  ;;  %v2430_v44 = vpop.f32.mrf.mxu1 }
 0x76a   : > { %v6958_v29 = vpop.f32.mrf.mxu3 }
 0x76b   : > { %5029 = vmatmul.msk.f32.gmra.mxu3 %vm808_vm2, %v6544_v1 }
 0x76d   : > { %5021 = vmatmul.msk.f32.gmra.mxu2 %vm470_vm1, %v8445_v11  ;;  %v2433_v43 = vpop.f32.mrf.mxu1  ;;  %v8452_v11 = vld [vmem:[#allocation28_spill] sm:$0xff] }
 0x772   : > { %v6966_v9 = vpop.f32.mrf.mxu3 }
 0x773   : > { %5030 = vmatmul.msk.f32.gmra.mxu3 %vm808_vm2, %v6558_v58 }
 0x775   : > { %5022 = vmatmul.msk.f32.gmra.mxu2 %vm470_vm1, %v8446_v40  ;;  %v2436_v24 = vpop.f32.mrf.mxu1  ;;  %v8456_v40 = vld [vmem:[#allocation35_spill] sm:$0xff] }
 0x77b   : > { %5031 = vmatmul.msk.f32.gmra.mxu3 %vm808_vm2, %v6573_v3 }
 0x77d   : > { %5023 = vmatmul.msk.f32.gmra.mxu2 %vm470_vm1, %v8447_v46  ;;  %v2439_v16 = vpop.f32.mrf.mxu1  ;;  %v8458_v46 = vld [vmem:[#allocation39_spill] sm:$0xff] }
 0x783   : > { %5032 = vmatmul.msk.f32.gmra.mxu3 %vm808_vm2, %v6591_v45 }
 0x785   : > { %5024 = vmatmul.msk.f32.gmra.mxu2 %vm470_vm1, %v8448_v22  ;;  %v2442_v20 = vpop.f32.mrf.mxu1 }
 0x78b   : > { %5033 = vmatmul.msk.f32.gmra.mxu3 %vm808_vm2, %v6604_v41 }
 0x78d   : > { %5025 = vmatmul.msk.f32.gmra.mxu2 %vm470_vm1, %v8449_v33  ;;  %v2445_v4 = vpop.f32.mrf.mxu1 }
 0x78e   : > { %2456 = vmatpush.msra.mxu2 %v2445_v4 }
 0x790   : > { %2457 = vmatpush.msra.mxu2 %v2442_v20 }
 0x792   : > { %2458 = vmatpush.msra.mxu2 %v2439_v16 }
 0x793   : > { %5034 = vmatmul.msk.f32.gmra.mxu3 %vm808_vm2, %v6614_v6 }
 0x794   : > { %2459 = vmatpush.msra.mxu2 %v2436_v24  ;;  %v8457_v24 = vld [vmem:[#allocation37_spill] sm:$0xff] }
 0x795   : > { %5026 = vmatmul.msk.f32.gmra.mxu2 %vm470_vm1, %v8450_v55 }
 0x796   : > { %2460 = vmatpush.msra.mxu2 %v2433_v43  ;;  %v8455_v43 = vld [vmem:[#allocation33_spill] sm:$0xff] }
 0x798   : > { %2461 = vmatpush.msra.mxu2 %v2430_v44  ;;  %v8454_v44 = vld [vmem:[#allocation31_spill] sm:$0xff] }
 0x79a   : > { %2462 = vmatpush.msra.mxu2 %v2427_v12  ;;  %v8453_v12 = vld [vmem:[#allocation29_spill] sm:$0xff] }
 0x79b   : > { %5035 = vmatmul.msk.f32.gmra.mxu3 %vm808_vm2, %v6622_v38 }
 0x79c   : > { %2463 = vmatpush.msra.mxu2 %v2424_v47 }
 0x79d   : > { %5053 = vmatmul.msk.f32.vlgmr.msra.gmra.mxu2 %vm470_vm1, %v8451_v56 }
 0x7a3   : > { %5062 = vmatmul.msk.f32.vlgmr.msra.gmra.mxu3 %vm808_vm2, %v6531_v31 }
 0x7a5   : > { %5054 = vmatmul.msk.f32.gmra.mxu2 %vm470_vm1, %v8452_v11 }
 0x7a6   : > { %v6972_v10 = vpop.f32.mrf.mxu3 }
 0x7ab   : > { %5063 = vmatmul.msk.f32.gmra.mxu3 %vm808_vm2, %v6544_v1 }
 0x7ad   : > { %5055 = vmatmul.msk.f32.gmra.mxu2 %vm470_vm1, %v8453_v12 }
 0x7ae   : > { %v6978_v47 = vpop.f32.mrf.mxu3 }
 0x7b3   : > { %5064 = vmatmul.msk.f32.gmra.mxu3 %vm808_vm2, %v6558_v58 }
 0x7b5   : > { %5056 = vmatmul.msk.f32.gmra.mxu2 %vm470_vm1, %v8454_v44  ;;  %v8461_v44 = vld [vmem:[#allocation32_spill] sm:$0xff] }
 0x7b6   : > { %v6984_v31 = vpop.f32.mrf.mxu3 }
 0x7bb   : > { %5065 = vmatmul.msk.f32.gmra.mxu3 %vm808_vm2, %v6573_v3 }
 0x7bd   : > { %5057 = vmatmul.msk.f32.gmra.mxu2 %vm470_vm1, %v8455_v43 }
 0x7be   : > { %v6990_v1 = vpop.f32.mrf.mxu3 }
 0x7c3   : > { %5066 = vmatmul.msk.f32.gmra.mxu3 %vm808_vm2, %v6591_v45 }
 0x7c5   : > { %5058 = vmatmul.msk.f32.gmra.mxu2 %vm470_vm1, %v8456_v40  ;;  %v8462_v40 = vld [vmem:[#allocation34_spill] sm:$0xff] }
 0x7c6   : > { %v6996_v58 = vpop.f32.mrf.mxu3 }
 0x7cb   : > { %5067 = vmatmul.msk.f32.gmra.mxu3 %vm808_vm2, %v6604_v41 }
 0x7cd   : > { %5059 = vmatmul.msk.f32.gmra.mxu2 %vm470_vm1, %v8457_v24 }
 0x7ce   : > { %v7002_v3 = vpop.f32.mrf.mxu3 }
 0x7d3   : > { %5068 = vmatmul.msk.f32.gmra.mxu3 %vm808_vm2, %v6614_v6 }
 0x7d5   : > { %5060 = vmatmul.msk.f32.gmra.mxu2 %vm470_vm1, %v8458_v46  ;;  %v8463_v46 = vld [vmem:[#allocation36_spill] sm:$0xff] }
 0x7d6   : > { %v7008_v45 = vpop.f32.mrf.mxu3 }
 0x7db   : > { %5069 = vmatmul.msk.f32.gmra.mxu3 %vm808_vm2, %v6622_v38  ;;  %v8460_v38 = vld [vmem:[#allocation30_spill] sm:$0xff] }
 0x7de   : > { %v7012_v16 = vpop.f32.mrf.mxu3 }
 0x7df   : > { %8459 = vst [vmem:[#allocation18_spill] sm:$0xff] %v7012_v16 }
 0x7e6   : > { %v2332_v22 = vpop.f32.mrf.mxu3 }
 0x7ee   : > { %v2335_v41 = vpop.f32.mrf.mxu3 }
 0x7f6   : > { %v2338_v20 = vpop.f32.mrf.mxu3 }
 0x7fe   : > { %v2341_v33 = vpop.f32.mrf.mxu3 }
 0x806   : > { %v2344_v4 = vpop.f32.mrf.mxu3 }
 0x80e   : > { %v2347_v55 = vpop.f32.mrf.mxu3 }
 0x816   : > { %v2350_v56 = vpop.f32.mrf.mxu3 }
 0x81e   : > { %v2353_v11 = vpop.f32.mrf.mxu3 }
 0x81f   : > { %2364 = vmatpush.msrb.mxu0 %v2353_v11 }
 0x821   : > { %2365 = vmatpush.msrb.mxu0 %v2350_v56  ;;  %v8466_v56 = vld [vmem:[#allocation41_spill] sm:$0xff] }
 0x823   : > { %2366 = vmatpush.msrb.mxu0 %v2347_v55  ;;  %v2189_v55 = vpop.f32.mrf.mxu0 }
 0x825   : > { %2367 = vmatpush.msrb.mxu0 %v2344_v4 }
 0x826   : > { %v2516_v6 = vpop.f32.mrf.mxu3 }
 0x827   : > { %2368 = vmatpush.msrb.mxu0 %v2341_v33  ;;  %v8464_v33 = vld [vmem:[#allocation38_spill] sm:$0xff] }
 0x829   : > { %2369 = vmatpush.msrb.mxu0 %v2338_v20 }
 0x82b   : > { %2370 = vmatpush.msrb.mxu0 %v2335_v41  ;;  %v8465_v41 = vld [vmem:[#allocation40_spill] sm:$0xff] }
 0x82d   : > { %2371 = vmatpush.msrb.mxu0 %v2332_v22 }
 0x82e   : > { %5036 = vmatmul.msk.f32.vlgmr.msrb.gmra.mxu0 %vm470_vm1, %v8460_v38  ;;  %v2519_v12 = vpop.f32.mrf.mxu3  ;;  %v8467_v38 = vld [vmem:[#allocation42_spill] sm:$0xff] }
 0x836   : > { %5037 = vmatmul.msk.f32.gmra.mxu0 %vm470_vm1, %v8461_v44  ;;  %v2522_v43 = vpop.f32.mrf.mxu3  ;;  %v2192_v44 = vpop.f32.mrf.mxu0 }
 0x83e   : > { %5038 = vmatmul.msk.f32.gmra.mxu0 %vm470_vm1, %v8462_v40  ;;  %v2525_v24 = vpop.f32.mrf.mxu3  ;;  %v8468_v40 = vld [vmem:[#allocation43_spill] sm:$0xff] }
 0x846   : > { %5039 = vmatmul.msk.f32.gmra.mxu0 %vm470_vm1, %v8463_v46  ;;  %v2528_v4 = vpop.f32.mrf.mxu3  ;;  %v2195_v46 = vpop.f32.mrf.mxu0 }
 0x84e   : > { %5040 = vmatmul.msk.f32.gmra.mxu0 %vm470_vm1, %v8464_v33  ;;  %v2531_v22 = vpop.f32.mrf.mxu3  ;;  %v8469_v33 = vld [vmem:[#allocation44_spill] sm:$0xff] }
 0x856   : > { %5041 = vmatmul.msk.f32.gmra.mxu0 %vm470_vm1, %v8465_v41  ;;  %v2534_v20 = vpop.f32.mrf.mxu3  ;;  %v7034_v41 = vpop.f32.mrf.mxu0 }
 0x85e   : > { %5042 = vmatmul.msk.f32.gmra.mxu0 %vm470_vm1, %v8466_v56  ;;  %v2537_v11 = vpop.f32.mrf.mxu3  ;;  %v8473_v56 = vld [vmem:[#allocation48_spill] sm:$0xff] }
 0x85f   : > { %2548 = vmatpush.msra.mxu0 %v2537_v11 }
 0x861   : > { %2549 = vmatpush.msra.mxu0 %v2534_v20  ;;  %v8470_v20 = vld [vmem:[#allocation45_spill] sm:$0xff] }
 0x863   : > { %2550 = vmatpush.msra.mxu0 %v2531_v22  ;;  %v8471_v22 = vld [vmem:[#allocation46_spill] sm:$0xff] }
 0x865   : > { %2551 = vmatpush.msra.mxu0 %v2528_v4  ;;  %v7038_v4 = vpop.f32.mrf.mxu0 }
 0x866   : > { %5043 = vmatmul.msk.f32.gmra.mxu0 %vm470_vm1, %v8467_v38  ;;  %v8474_v38 = vld [vmem:[#allocation49_spill] sm:$0xff] }
 0x867   : > { %2552 = vmatpush.msra.mxu0 %v2525_v24 }
 0x869   : > { %2553 = vmatpush.msra.mxu0 %v2522_v43  ;;  %v2281_v43 = vpop.f32.mrf.mxu2 }
 0x86b   : > { %2554 = vmatpush.msra.mxu0 %v2519_v12  ;;  %v8472_v12 = vld [vmem:[#allocation47_spill] sm:$0xff] }
 0x86d   : > { %2555 = vmatpush.msra.mxu0 %v2516_v6  ;;  %v7044_v6 = vpop.f32.mrf.mxu0 }
 0x86e   : > { %5070 = vmatmul.msk.f32.vlgmr.msra.gmra.mxu0 %vm470_vm1, %v8468_v40 }
 0x86f   : > { %2792 = vmatpush.msrb.mxu0 %v5103_v63 }
 0x871   : > { %v2284_v24 = vpop.f32.mrf.mxu2 }
 0x875   : > { %v7048_v11 = vpop.f32.mrf.mxu0 }
 0x876   : > { %5071 = vmatmul.msk.f32.gmra.mxu0 %vm470_vm1, %v8469_v33 }
 0x879   : > { %v2287_v40 = vpop.f32.mrf.mxu2 }
 0x87d   : > { %v7052_v33 = vpop.f32.mrf.mxu0 }
 0x87e   : > { %5072 = vmatmul.msk.f32.gmra.mxu0 %vm470_vm1, %v8470_v20  ;;  %8475 = vst [vmem:[#allocation19_spill] sm:$0xff] %v7052_v33  ;;  %v8476_v20 = vld [vmem:[#allocation50_spill] sm:$0xff]  ;;  %v2163_v33 = vadd.f32 %v6978_v47, %v2071_v18  ;;  %v1972_v47 = vadd.f32 %v6938_v50, %v6803_v54 }
 0x886   : > { %5073 = vmatmul.msk.f32.gmra.mxu0 %vm470_vm1, %v8471_v22  ;;  %v7056_v22 = vpop.f32.mrf.mxu2 }
 0x88e   : > { %5074 = vmatmul.msk.f32.gmra.mxu0 %vm470_vm1, %v8472_v12  ;;  %v7058_v32 = vpop.f32.mrf.mxu2 }
 0x896   : > { %5075 = vmatmul.msk.f32.gmra.mxu0 %vm470_vm1, %v8473_v56  ;;  %v7060_v37 = vpop.f32.mrf.mxu2 }
 0x89e   : > { %5076 = vmatmul.msk.f32.gmra.mxu0 %vm470_vm1, %v8474_v38  ;;  %v5078_v38 = vld [vmem:[%s8296_s5 + $0x8] sm:$0xff]  ;;  %v7067_v35 = vpop.f32.mrf.mxu2 }
 0x89f   : > { %2667 = vmatpush.msrb.mxu1 %v5078_v38  ;;  %v1963_v38 = vadd.f32 %v6908_v7, %v6791_v59  ;;  %v1969_v59 = vadd.f32 %v6927_v49, %v6799_v0  ;;  %v2214_v7 = vadd.f32 %v2192_v44, %v2163_v33 }
 0x8a1   : > { %v2070_v53 = vadd.f32 %v6824_v28, %v1963_v38  ;;  %v2072_v34 = vadd.f32 %v6832_v57, %v1969_v59  ;;  %v2306_v61 = vadd.f32 %v2284_v24, %v2214_v7  ;;  %v2073_v24 = vadd.f32 %v6836_v14, %v1972_v47 }
 0x8a3   : > { %v2162_v13 = vadd.f32 %v6972_v10, %v2070_v53  ;;  %v7098_v53 = vld [vmem:[%s8297_s6 + $0x4] ss:$0 sm:$0xff]  ;;  %v2164_v0 = vadd.f32 %v6984_v31, %v2072_v34 }
 0x8a5   : > { %v2213_v51 = vadd.f32 %v2189_v55, %v2162_v13  ;;  %v8478_v55 = vld [vmem:[#allocation2_spill] sm:$0xff] }
 0x8a6   : > { %5077 = vmatmul.msk.f32.gmra.mxu0 %vm470_vm1, %v8476_v20  ;;  %v7071_v20 = vpop.f32.mrf.mxu2 }
 0x8a7   : > { %8477 = vst [vmem:[#allocation20_spill] sm:$0xff] %v7071_v20  ;;  %v2305_v63 = vadd.f32 %v2281_v43, %v2213_v51  ;;  %v7104_v51 = vld [vmem:[%s8297_s6 + $0x5] ss:$0 sm:$0xff] }
 0x8ab   : > { %v2373_v12 = vpop.f32.mrf.mxu0 }
 0x8ac   : > { %v2397_v16 = vadd.f32 %v2373_v12, %v2305_v63 }
 0x8ae   : > { %v2465_v36 = vpop.f32.mrf.mxu2 }
 0x8af   : > { %v2489_v28 = vadd.f32 %v2465_v36, %v2397_v16  ;;  %v2215_v16 = vadd.f32 %v2195_v46, %v2164_v0 }
 0x8b1   : > { %v2307_v33 = vadd.f32 %v2287_v40, %v2215_v16 }
 0x8b3   : > { %v2376_v15 = vpop.f32.mrf.mxu0 }
 0x8b4   : > { %v2398_v8 = vadd.f32 %v2376_v15, %v2306_v61  ;;  %v2165_v15 = vadd.f32 %v6990_v1, %v2073_v24  ;;  %v8479_v1 = vld [vmem:[#allocation3_spill] sm:$0xff] }
 0x8b6   : > { %v2468_v23 = vpop.f32.mrf.mxu2  ;;  %v2216_v50 = vadd.f32 %v7034_v41, %v2165_v15 }
 0x8b7   : > { %v2490_v57 = vadd.f32 %v2468_v23, %v2398_v8  ;;  %v1975_v23 = vadd.f32 %v6944_v2, %v6810_v52  ;;  %v1978_v2 = vadd.f32 %v6950_v26, %v6814_v48  ;;  %v1981_v48 = vadd.f32 %v6958_v29, %v6818_v62 }
 0x8b8   : > { %v2308_v59 = vadd.f32 %v7056_v22, %v2216_v50  ;;  %v8480_v22 = vld [vmem:[#allocation4_spill] sm:$0xff]  ;;  %v8483_v50 = vld [vmem:[#allocation18_spill] sm:$0xff] }
 0x8b9   : > { %v2074_v63 = vadd.f32 %v6840_v17, %v1975_v23 }
 0x8bb   : > { %v2379_v27 = vpop.f32.mrf.mxu0 }
 0x8bc   : > { %v2399_v31 = vadd.f32 %v2379_v27, %v2307_v33 }
 0x8be   : > { %v2471_v39 = vpop.f32.mrf.mxu2 }
 0x8bf   : > { %v2491_v27 = vadd.f32 %v2471_v39, %v2399_v31  ;;  %v2075_v39 = vadd.f32 %v6844_v5, %v1978_v2 }
 0x8c3   : > { %v7062_v56 = vpop.f32.mrf.mxu0 }
 0x8c4   : > { %v2400_v34 = vadd.f32 %v7062_v56, %v2308_v59 }
 0x8c6   : > { %v2474_v54 = vpop.f32.mrf.mxu2 }
 0x8c7   : > { %v2492_v41 = vadd.f32 %v2474_v54, %v2400_v34 }
 0x8cb   : > { %v7069_v25 = vpop.f32.mrf.mxu0 }
 0x8ce   : > { %v2477_v17 = vpop.f32.mrf.mxu2 }
 0x8d3   : > { %v7073_v42 = vpop.f32.mrf.mxu0 }
 0x8db   : > { %v7083_v21 = vpop.f32.mrf.mxu0 }
 0x8e3   : > { %v7089_v20 = vpop.f32.mrf.mxu0 }
 0x8eb   : > { %v2557_v13 = vpop.f32.mrf.mxu0 }
 0x8ec   : > { %v2581_v10 = vadd.f32 %v2557_v13, %v2489_v28  ;;  %v2166_v13 = vadd.f32 %v6996_v58, %v2074_v63 }
 0x8ee   : > { %v2591_v36 = vmul.f32 %v7098_v53, %v2581_v10  ;;  %v2217_v58 = vadd.f32 %v7038_v4, %v2166_v13  ;;  %v2480_v4 = vpop.f32.mrf.mxu2 }
 0x8f0   : > { %v2601_v49 = vadd.f32 %v7104_v51, %v2591_v36  ;;  %v2309_v0 = vadd.f32 %v7058_v32, %v2217_v58  ;;  %v8487_v58 = vld [vmem:[#allocation8_spill] sm:$0xff] }
 0x8f2   : > { %v2609_v44 = vadd.f32 %v2601_v49, %v8478_v55  ;;  %v2167_v49 = vadd.f32 %v7002_v3, %v2075_v39  ;;  %v2401_v47 = vadd.f32 %v7069_v25, %v2309_v0  ;;  %v8481_v25 = vld [vmem:[#allocation5_spill] sm:$0xff]  ;;  %v2076_v55 = vadd.f32 %v6848_v30, %v1981_v48 }
 0x8f3   : > { %v2560_v43 = vpop.f32.mrf.mxu0  ;;  %v8488_v0 = vld [vmem:[#allocation9_spill] sm:$0xff] }
 0x8f4   : > { %v7113_v12 = vmax.f32 %v2609_v44, 0.0  ;;  %v2582_v38 = vadd.f32 %v2560_v43, %v2490_v57  ;;  %v2218_v5 = vadd.f32 %v7044_v6, %v2167_v49  ;;  %v2493_v26 = vadd.f32 %v2477_v17, %v2401_v47 }
 0x8f5   : > { %v2168_v33 = vadd.f32 %v7008_v45, %v2076_v55 }
 0x8f6   : > { %v2592_v18 = vmul.f32 %v7098_v53, %v2582_v38  ;;  %5079 = vmatmul.msk.f32.vlgmr.msrb.gmra.mxu1 %vm808_vm2, %v7113_v12  ;;  %5095 = vmatmul.msk.f32.vlgmr.msrb.gmra.mxu3 %vm808_vm2, %v7113_v12  ;;  %v2310_v44 = vadd.f32 %v7060_v37, %v2218_v5  ;;  %v1984_v37 = vadd.f32 %v6966_v9, %v6822_v19  ;;  %v2483_v23 = vpop.f32.mrf.mxu2 }
 0x8f7   : > { %5104 = vmatmul.msk.f32.vlgmr.msrb.gmra.mxu0 %vm808_vm2, %v7113_v12  ;;  %v2219_v29 = vadd.f32 %v7048_v11, %v2168_v33 }
 0x8f8   : > { %v2602_v14 = vadd.f32 %v7104_v51, %v2592_v18  ;;  %v2402_v38 = vadd.f32 %v7073_v42, %v2310_v44  ;;  %v8482_v42 = vld [vmem:[#allocation6_spill] sm:$0xff]  ;;  %v2077_v31 = vadd.f32 %v6852_v60, %v1984_v37  ;;  %v8484_v60 = vld [vmem:[#allocation19_spill] sm:$0xff] }
 0x8f9   : > { %v2311_v18 = vadd.f32 %v7067_v35, %v2219_v29  ;;  %v8492_v37 = vld [vmem:[#allocation51_spill] sm:$0xff]  ;;  %v8493_v29 = vld [vmem:[#allocation12_spill] sm:$0xff] }
 0x8fa   : > { %v2610_v46 = vadd.f32 %v2602_v14, %v8479_v1  ;;  %v2494_v45 = vadd.f32 %v2480_v4, %v2402_v38  ;;  %v8489_v38 = vld [vmem:[#allocation10_spill] sm:$0xff] }
 0x8fb   : > { %v2563_v40 = vpop.f32.mrf.mxu0  ;;  %v2403_v1 = vadd.f32 %v7083_v21, %v2311_v18  ;;  %v8486_v21 = vld [vmem:[#allocation20_spill] sm:$0xff]  ;;  %v8497_v18 = vld [vmem:[#allocation14_spill] sm:$0xff] }
 0x8fc   : > { %v7130_v7 = vmax.f32 %v2610_v46, 0.0  ;;  %v2583_v28 = vadd.f32 %v2563_v40, %v2491_v27  ;;  %v2169_v27 = vadd.f32 %v8483_v50, %v2077_v31  ;;  %v8485_v46 = vld [vmem:[#allocation7_spill] sm:$0xff]  ;;  %v5145_v31 = vld [vmem:[%s8296_s5 + $0x20] sm:$0xff] }
 0x8fd   : > { %v2495_v11 = vadd.f32 %v2483_v23, %v2403_v1  ;;  %v8499_v23 = vld [vmem:[#allocation15_spill] sm:$0xff]  ;;  %v8502_v1 = vld [vmem:[#allocation56_spill] sm:$0xff] }
 0x8fe   : > { %v2593_v61 = vmul.f32 %v7098_v53, %v2583_v28  ;;  %5080 = vmatmul.msk.f32.gmra.mxu1 %vm808_vm2, %v7130_v7  ;;  %5096 = vmatmul.msk.f32.gmra.mxu3 %vm808_vm2, %v7130_v7  ;;  %v2220_v9 = vadd.f32 %v8484_v60, %v2169_v27  ;;  %v8500_v50 = vld [vmem:[#allocation55_spill] sm:$0xff]  ;;  %v8501_v27 = vld [vmem:[#allocation16_spill] sm:$0xff] }
 0x8ff   : > { %5105 = vmatmul.msk.f32.gmra.mxu0 %vm808_vm2, %v7130_v7  ;;  %v5162_v60 = vld [vmem:[%s8296_s5 + $0x28] sm:$0xff] }
 0x900   : > { %v2603_v52 = vadd.f32 %v7104_v51, %v2593_v61  ;;  %v2312_v59 = vadd.f32 %v8486_v21, %v2220_v9 }
 0x902   : > { %v2611_v56 = vadd.f32 %v2603_v52, %v8480_v22  ;;  %v2404_v34 = vadd.f32 %v7089_v20, %v2312_v59  ;;  %v2486_v52 = vpop.f32.mrf.mxu2 }
 0x903   : > { %v2566_v10 = vpop.f32.mrf.mxu0 }
 0x904   : > { %v7148_v8 = vmax.f32 %v2611_v56, 0.0  ;;  %v2584_v36 = vadd.f32 %v2566_v10, %v2492_v41  ;;  %v2496_v2 = vadd.f32 %v2486_v52, %v2404_v34 }
 0x906   : > { %v2594_v16 = vmul.f32 %v7098_v53, %v2584_v36  ;;  %5081 = vmatmul.msk.f32.gmra.mxu1 %vm808_vm2, %v7148_v8  ;;  %5097 = vmatmul.msk.f32.gmra.mxu3 %vm808_vm2, %v7148_v8 }
 0x907   : > { %5106 = vmatmul.msk.f32.gmra.mxu0 %vm808_vm2, %v7148_v8 }
 0x908   : > { %v2604_v32 = vadd.f32 %v7104_v51, %v2594_v16 }
 0x90a   : > { %v2612_v3 = vadd.f32 %v2604_v32, %v8481_v25 }
 0x90b   : > { %v2569_v57 = vpop.f32.mrf.mxu0 }
 0x90c   : > { %v7166_v43 = vmax.f32 %v2612_v3, 0.0  ;;  %v2585_v24 = vadd.f32 %v2569_v57, %v2493_v26 }
 0x90e   : > { %v2595_v62 = vmul.f32 %v7098_v53, %v2585_v24  ;;  %5082 = vmatmul.msk.f32.gmra.mxu1 %vm808_vm2, %v7166_v43  ;;  %5098 = vmatmul.msk.f32.gmra.mxu3 %vm808_vm2, %v7166_v43 }
 0x90f   : > { %5107 = vmatmul.msk.f32.gmra.mxu0 %vm808_vm2, %v7166_v43 }
 0x910   : > { %v2605_v30 = vadd.f32 %v7104_v51, %v2595_v62  ;;  %v8490_v62 = vld [vmem:[#allocation26_spill] sm:$0xff] }
 0x912   : > { %v2613_v6 = vadd.f32 %v2605_v30, %v8482_v42  ;;  %v8491_v30 = vld [vmem:[#allocation11_spill] sm:$0xff]  ;;  %v5120_v42 = vld [vmem:[%s8296_s5 + $0x18] sm:$0xff] }
 0x913   : > { %v2572_v15 = vpop.f32.mrf.mxu0 }
 0x914   : > { %v7184_v54 = vmax.f32 %v2613_v6, 0.0  ;;  %v2586_v14 = vadd.f32 %v2572_v15, %v2494_v45  ;;  %v8494_v45 = vld [vmem:[#allocation52_spill] sm:$0xff]  ;;  %v8495_v6 = vld [vmem:[#allocation13_spill] sm:$0xff] }
 0x915   : > { %v8496_v15 = vld [vmem:[#allocation53_spill] sm:$0xff] }
 0x916   : > { %v2596_v19 = vmul.f32 %v7098_v53, %v2586_v14  ;;  %5083 = vmatmul.msk.f32.gmra.mxu1 %vm808_vm2, %v7184_v54  ;;  %5099 = vmatmul.msk.f32.gmra.mxu3 %vm808_vm2, %v7184_v54  ;;  %v8498_v14 = vld [vmem:[#allocation54_spill] sm:$0xff] }
 0x917   : > { %5108 = vmatmul.msk.f32.gmra.mxu0 %vm808_vm2, %v7184_v54 }
 0x918   : > { %v2606_v35 = vadd.f32 %v7104_v51, %v2596_v19  ;;  %v8503_v19 = vld [vmem:[#allocation17_spill] sm:$0xff] }
 0x91a   : > { %v2614_v40 = vadd.f32 %v2606_v35, %v8485_v46  ;;  %v8504_v35 = vld [vmem:[#allocation57_spill] sm:$0xff] }
 0x91b   : > { %v2575_v63 = vpop.f32.mrf.mxu0 }
 0x91c   : > { %v7199_v28 = vmax.f32 %v2614_v40, 0.0  ;;  %v2587_v13 = vadd.f32 %v2575_v63, %v2495_v11 }
 0x91e   : > { %v2597_v61 = vmul.f32 %v7098_v53, %v2587_v13  ;;  %5084 = vmatmul.msk.f32.gmra.mxu1 %vm808_vm2, %v7199_v28  ;;  %5100 = vmatmul.msk.f32.gmra.mxu3 %vm808_vm2, %v7199_v28 }
 0x91f   : > { %5109 = vmatmul.msk.f32.gmra.mxu0 %vm808_vm2, %v7199_v28 }
 0x920   : > { %v2607_v17 = vadd.f32 %v7104_v51, %v2597_v61  ;;  %v5204_v61 = vld [vmem:[%s8296_s5 + $0x38] sm:$0xff] }
 0x922   : > { %v2615_v41 = vadd.f32 %v2607_v17, %v8487_v58 }
 0x923   : > { %v2578_v22 = vpop.f32.mrf.mxu0 }
 0x924   : > { %v7211_v56 = vmax.f32 %v2615_v41, 0.0  ;;  %v2588_v20 = vadd.f32 %v2578_v22, %v2496_v2 }
 0x926   : > { %v2598_v10 = vmul.f32 %v7098_v53, %v2588_v20  ;;  %5085 = vmatmul.msk.f32.gmra.mxu1 %vm808_vm2, %v7211_v56  ;;  %5101 = vmatmul.msk.f32.gmra.mxu3 %vm808_vm2, %v7211_v56 }
 0x927   : > { %5110 = vmatmul.msk.f32.gmra.mxu0 %vm808_vm2, %v7211_v56 }
 0x928   : > { %v2608_v39 = vadd.f32 %v7104_v51, %v2598_v10 }
 0x92a   : > { %v2616_v36 = vadd.f32 %v2608_v39, %v8488_v0 }
 0x92c   : > { %v7222_v49 = vmax.f32 %v2616_v36, 0.0 }
 0x92e   : > { %5086 = vmatmul.msk.f32.gmra.mxu1 %vm808_vm2, %v7222_v49  ;;  %5102 = vmatmul.msk.f32.gmra.mxu3 %vm808_vm2, %v7222_v49 }
 0x92f   : > { %5111 = vmatmul.msk.f32.gmra.mxu0 %vm808_vm2, %v7222_v49 }
 0x973   : > { %v2669_v53 = vpop.f32.mrf.mxu1 }
 0x974   : > { %v2794_v47 = vpop.f32.mrf.mxu0 }
 0x97b   : > { %v2672_v16 = vpop.f32.mrf.mxu1 }
 0x97c   : > { %v2797_v32 = vpop.f32.mrf.mxu0 }
 0x983   : > { %v2675_v48 = vpop.f32.mrf.mxu1 }
 0x984   : > { %v2800_v5 = vpop.f32.mrf.mxu0 }
 0x98b   : > { %v2678_v51 = vpop.f32.mrf.mxu1 }
 0x98c   : > { %v2803_v26 = vpop.f32.mrf.mxu0 }
 0x993   : > { %v2681_v25 = vpop.f32.mrf.mxu1 }
 0x994   : > { %v2806_v3 = vpop.f32.mrf.mxu0 }
 0x99b   : > { %v2684_v4 = vpop.f32.mrf.mxu1 }
 0x99c   : > { %v2809_v57 = vpop.f32.mrf.mxu0 }
 0x9a3   : > { %v2687_v55 = vpop.f32.mrf.mxu1 }
 0x9a4   : > { %v2812_v44 = vpop.f32.mrf.mxu0 }
 0x9ab   : > { %v2690_v24 = vpop.f32.mrf.mxu1 }
 0x9ac   : > { %v2815_v33 = vpop.f32.mrf.mxu0  ;;  %2701 = vmatpush.msrb.mxu2 %v2690_v24  ;;  %v5505_v24 = vld [vmem:[%s8292_s1] sm:$0xff] }
 0x9ad   : > { %2826 = vmatpush.msra.mxu1 %v2815_v33 }
 0x9ae   : > { %2702 = vmatpush.msrb.mxu2 %v2687_v55 }
 0x9af   : > { %2827 = vmatpush.msra.mxu1 %v2812_v44 }
 0x9b0   : > { %2703 = vmatpush.msrb.mxu2 %v2684_v4 }
 0x9b1   : > { %2828 = vmatpush.msra.mxu1 %v2809_v57 }
 0x9b2   : > { %2704 = vmatpush.msrb.mxu2 %v2681_v25 }
 0x9b3   : > { %2829 = vmatpush.msra.mxu1 %v2806_v3 }
 0x9b4   : > { %2705 = vmatpush.msrb.mxu2 %v2678_v51 }
 0x9b5   : > { %2830 = vmatpush.msra.mxu1 %v2803_v26 }
 0x9b6   : > { %2706 = vmatpush.msrb.mxu2 %v2675_v48 }
 0x9b7   : > { %2831 = vmatpush.msra.mxu1 %v2800_v5 }
 0x9b8   : > { %2707 = vmatpush.msrb.mxu2 %v2672_v16 }
 0x9b9   : > { %2832 = vmatpush.msra.mxu1 %v2797_v32  ;;  %v5262_v32 = vld [vmem:[%s8296_s5 + $0x48] sm:$0xff] }
 0x9ba   : > { %2708 = vmatpush.msrb.mxu2 %v2669_v53 }
 0x9bb   : > { %2833 = vmatpush.msra.mxu1 %v2794_v47  ;;  %5087 = vmatmul.msk.f32.vlgmr.msrb.gmra.mxu2 %vm470_vm1, %v8489_v38  ;;  %v5506_v38 = vld [vmem:[%s8292_s1 + $0x8] sm:$0xff] }
 0x9bc   : > { %5112 = vmatmul.msk.f32.vlgmr.msra.gmra.mxu1 %vm470_vm1, %v8490_v62  ;;  %2884 = vmatpush.msra.mxu2 %v5120_v42 }
 0x9bd   : > { %3083 = vmatpush.msrb.mxu1 %v5145_v31  ;;  %v5510_v31 = vld [vmem:[%s8292_s1 + $0x28] sm:$0xff] }
 0x9be   : > { %3134 = vmatpush.msrb.mxu2 %v5162_v60 }
 0x9c3   : > { %5088 = vmatmul.msk.f32.gmra.mxu2 %vm470_vm1, %v8491_v30  ;;  %v5507_v30 = vld [vmem:[%s8292_s1 + $0x10] sm:$0xff] }
 0x9c4   : > { %5113 = vmatmul.msk.f32.gmra.mxu1 %vm470_vm1, %v8492_v37 }
 0x9cb   : > { %5089 = vmatmul.msk.f32.gmra.mxu2 %vm470_vm1, %v8493_v29  ;;  %v5304_v29 = vld [vmem:[%s8296_s5 + $0x58] sm:$0xff] }
 0x9cc   : > { %5114 = vmatmul.msk.f32.gmra.mxu1 %vm470_vm1, %v8494_v45  ;;  %v5508_v45 = vld [vmem:[%s8292_s1 + $0x18] sm:$0xff] }
 0x9d3   : > { %5090 = vmatmul.msk.f32.gmra.mxu2 %vm470_vm1, %v8495_v6  ;;  %v5509_v6 = vld [vmem:[%s8292_s1 + $0x20] sm:$0xff] }
 0x9d4   : > { %5115 = vmatmul.msk.f32.gmra.mxu1 %vm470_vm1, %v8496_v15 }
 0x9db   : > { %5091 = vmatmul.msk.f32.gmra.mxu2 %vm470_vm1, %v8497_v18 }
 0x9dc   : > { %5116 = vmatmul.msk.f32.gmra.mxu1 %vm470_vm1, %v8498_v14  ;;  %v5511_v14 = vld [vmem:[%s8292_s1 + $0x30] sm:$0xff] }
 0x9e3   : > { %5092 = vmatmul.msk.f32.gmra.mxu2 %vm470_vm1, %v8499_v23 }
 0x9e4   : > { %5117 = vmatmul.msk.f32.gmra.mxu1 %vm470_vm1, %v8500_v50  ;;  %v2751_v50 = vpop.f32.mrf.mxu3 }
 0x9eb   : > { %5093 = vmatmul.msk.f32.gmra.mxu2 %vm470_vm1, %v8501_v27  ;;  %v5512_v27 = vld [vmem:[%s8292_s1 + $0x38] sm:$0xff] }
 0x9ec   : > { %5118 = vmatmul.msk.f32.gmra.mxu1 %vm470_vm1, %v8502_v1 }
 0x9f3   : > { %5094 = vmatmul.msk.f32.gmra.mxu2 %vm470_vm1, %v8503_v19  ;;  %v5154_v19 = vld [vmem:[%s8292_s1 + $0x140] sm:$0xff] }
 0x9f4   : > { %5119 = vmatmul.msk.f32.gmra.mxu1 %vm470_vm1, %v8504_v35  ;;  %v2754_v35 = vpop.f32.mrf.mxu3 }
 0x9fb   : > { %5121 = vmatmul.msk.f32.vlgmr.msra.gmra.mxu2 %vm808_vm2, %v7113_v12 }
 0x9fc   : > { %5146 = vmatmul.msk.f32.vlgmr.msrb.gmra.mxu1 %vm808_vm2, %v7113_v12  ;;  %3366 = vmatpush.msra.mxu2 %v5204_v61  ;;  %v5155_v61 = vld [vmem:[%s8292_s1 + $0x148] sm:$0xff] }
 0xa03   : > { %5122 = vmatmul.msk.f32.gmra.mxu2 %vm808_vm2, %v7130_v7 }
 0xa04   : > { %5147 = vmatmul.msk.f32.gmra.mxu1 %vm808_vm2, %v7130_v7 }
 0xa0b   : > { %5123 = vmatmul.msk.f32.gmra.mxu2 %vm808_vm2, %v7148_v8 }
 0xa0c   : > { %5148 = vmatmul.msk.f32.gmra.mxu1 %vm808_vm2, %v7148_v8 }
 0xa13   : > { %5124 = vmatmul.msk.f32.gmra.mxu2 %vm808_vm2, %v7166_v43 }
 0xa14   : > { %5149 = vmatmul.msk.f32.gmra.mxu1 %vm808_vm2, %v7166_v43 }
 0xa1b   : > { %5125 = vmatmul.msk.f32.gmra.mxu2 %vm808_vm2, %v7184_v54 }
 0xa1c   : > { %5150 = vmatmul.msk.f32.gmra.mxu1 %vm808_vm2, %v7184_v54 }
 0xa23   : > { %5126 = vmatmul.msk.f32.gmra.mxu2 %vm808_vm2, %v7199_v28 }
 0xa24   : > { %5151 = vmatmul.msk.f32.gmra.mxu1 %vm808_vm2, %v7199_v28 }
 0xa2b   : > { %5127 = vmatmul.msk.f32.gmra.mxu2 %vm808_vm2, %v7211_v56 }
 0xa2c   : > { %5152 = vmatmul.msk.f32.gmra.mxu1 %vm808_vm2, %v7211_v56 }
 0xa33   : > { %5128 = vmatmul.msk.f32.gmra.mxu2 %vm808_vm2, %v7222_v49 }
 0xa34   : > { %5153 = vmatmul.msk.f32.gmra.mxu1 %vm808_vm2, %v7222_v49 }
 0xa39   : > { %v7303_v9 = vpop.f32.mrf.mxu1 }
 0xa3b   : > { %5163 = vmatmul.msk.f32.vlgmr.msrb.gmra.mxu2 %vm808_vm2, %v7113_v12 }
 0xa3c   : > { %3648 = vmatpush.msrb.mxu2 %v5262_v32 }
 0xa3e   : > { %v7307_v11 = vpop.f32.mrf.mxu2 }
 0xa41   : > { %v7309_v46 = vpop.f32.mrf.mxu1 }
 0xa43   : > { %5164 = vmatmul.msk.f32.gmra.mxu2 %vm808_vm2, %v7130_v7 }
 0xa46   : > { %v7313_v40 = vpop.f32.mrf.mxu2 }
 0xa49   : > { %v7315_v63 = vpop.f32.mrf.mxu1 }
 0xa4b   : > { %5165 = vmatmul.msk.f32.gmra.mxu2 %vm808_vm2, %v7148_v8 }
 0xa4e   : > { %v7319_v21 = vpop.f32.mrf.mxu2 }
 0xa51   : > { %v7321_v59 = vpop.f32.mrf.mxu1 }
 0xa53   : > { %5166 = vmatmul.msk.f32.gmra.mxu2 %vm808_vm2, %v7166_v43 }
 0xa56   : > { %v7325_v13 = vpop.f32.mrf.mxu2 }
 0xa59   : > { %v7327_v34 = vpop.f32.mrf.mxu1 }
 0xa5b   : > { %5167 = vmatmul.msk.f32.gmra.mxu2 %vm808_vm2, %v7184_v54 }
 0xa5e   : > { %v7334_v52 = vpop.f32.mrf.mxu2 }
 0xa61   : > { %v7336_v17 = vpop.f32.mrf.mxu1 }
 0xa63   : > { %5168 = vmatmul.msk.f32.gmra.mxu2 %vm808_vm2, %v7199_v28 }
 0xa66   : > { %v7340_v2 = vpop.f32.mrf.mxu2 }
 0xa69   : > { %v7344_v58 = vpop.f32.mrf.mxu1 }
 0xa6b   : > { %5169 = vmatmul.msk.f32.gmra.mxu2 %vm808_vm2, %v7211_v56 }
 0xa6e   : > { %v7346_v41 = vpop.f32.mrf.mxu2 }
 0xa71   : > { %v7350_v22 = vpop.f32.mrf.mxu1 }
 0xa73   : > { %5170 = vmatmul.msk.f32.gmra.mxu2 %vm808_vm2, %v7222_v49 }
 0xa76   : > { %v7352_v20 = vpop.f32.mrf.mxu2 }
 0xa79   : > { %v3085_v39 = vpop.f32.mrf.mxu1 }
 0xa7b   : > { %5205 = vmatmul.msk.f32.vlgmr.msra.gmra.mxu2 %vm808_vm2, %v7113_v12 }
 0xa7c   : > { %3880 = vmatpush.msra.mxu2 %v5304_v29 }
 0xa7e   : > { %v2886_v10 = vpop.f32.mrf.mxu2 }
 0xa81   : > { %v3088_v36 = vpop.f32.mrf.mxu1 }
 0xa83   : > { %5206 = vmatmul.msk.f32.gmra.mxu2 %vm808_vm2, %v7130_v7 }
 0xa86   : > { %v2889_v0 = vpop.f32.mrf.mxu2 }
 0xa89   : > { %v3091_v47 = vpop.f32.mrf.mxu1 }
 0xa8b   : > { %5207 = vmatmul.msk.f32.gmra.mxu2 %vm808_vm2, %v7148_v8 }
 0xa8e   : > { %v2892_v53 = vpop.f32.mrf.mxu2 }
 0xa91   : > { %v3094_v48 = vpop.f32.mrf.mxu1 }
 0xa93   : > { %5208 = vmatmul.msk.f32.gmra.mxu2 %vm808_vm2, %v7166_v43 }
 0xa96   : > { %v2895_v16 = vpop.f32.mrf.mxu2 }
 0xa99   : > { %v3097_v26 = vpop.f32.mrf.mxu1 }
 0xa9b   : > { %5209 = vmatmul.msk.f32.gmra.mxu2 %vm808_vm2, %v7184_v54 }
 0xa9e   : > { %v2898_v5 = vpop.f32.mrf.mxu2 }
 0xaa1   : > { %v3100_v3 = vpop.f32.mrf.mxu1 }
 0xaa3   : > { %5210 = vmatmul.msk.f32.gmra.mxu2 %vm808_vm2, %v7199_v28 }
 0xaa6   : > { %v2901_v51 = vpop.f32.mrf.mxu2 }
 0xaa9   : > { %v3103_v57 = vpop.f32.mrf.mxu1 }
 0xaab   : > { %5211 = vmatmul.msk.f32.gmra.mxu2 %vm808_vm2, %v7211_v56 }
 0xaae   : > { %v2904_v25 = vpop.f32.mrf.mxu2 }
 0xab1   : > { %v3106_v44 = vpop.f32.mrf.mxu1 }
 0xab3   : > { %5212 = vmatmul.msk.f32.gmra.mxu2 %vm808_vm2, %v7222_v49 }
 0xab6   : > { %v2907_v4 = vpop.f32.mrf.mxu2 }
 0xab7   : > { %2918 = vmatpush.msra.mxu3 %v2907_v4 }
 0xab9   : > { %2919 = vmatpush.msra.mxu3 %v2904_v25  ;;  %v5159_v25 = vld [vmem:[%s8292_s1 + $0x168] sm:$0xff] }
 0xabb   : > { %2920 = vmatpush.msra.mxu3 %v2901_v51  ;;  %5263 = vmatmul.msk.f32.vlgmr.msrb.gmra.mxu2 %vm808_vm2, %v7113_v12  ;;  %v5158_v51 = vld [vmem:[%s8292_s1 + $0x160] sm:$0xff] }
 0xabd   : > { %2921 = vmatpush.msra.mxu3 %v2898_v5 }
 0xabe   : > { %v7375_v55 = vpop.f32.mrf.mxu2 }
 0xabf   : > { %2922 = vmatpush.msra.mxu3 %v2895_v16  ;;  %v5157_v16 = vld [vmem:[%s8292_s1 + $0x158] sm:$0xff] }
 0xac1   : > { %2923 = vmatpush.msra.mxu3 %v2892_v53 }
 0xac3   : > { %2924 = vmatpush.msra.mxu3 %v2889_v0  ;;  %5264 = vmatmul.msk.f32.gmra.mxu2 %vm808_vm2, %v7130_v7  ;;  %v5156_v0 = vld [vmem:[%s8292_s1 + $0x150] sm:$0xff] }
 0xac5   : > { %2925 = vmatpush.msra.mxu3 %v2886_v10 }
 0xac6   : > { %5129 = vmatmul.msk.f32.vlgmr.msra.gmra.mxu3 %vm470_vm1, %v5505_v24  ;;  %v7383_v33 = vpop.f32.mrf.mxu2 }
 0xac7   : > { %3192 = vmatpush.msrb.mxu3 %v3106_v44 }
 0xac9   : > { %3193 = vmatpush.msrb.mxu3 %v3103_v57  ;;  %v5160_v57 = vld [vmem:[%s8292_s1 + $0x170] sm:$0xff] }
 0xacb   : > { %3194 = vmatpush.msrb.mxu3 %v3100_v3  ;;  %5265 = vmatmul.msk.f32.gmra.mxu2 %vm808_vm2, %v7148_v8 }
 0xacd   : > { %3195 = vmatpush.msrb.mxu3 %v3097_v26 }
 0xace   : > { %5130 = vmatmul.msk.f32.gmra.mxu3 %vm470_vm1, %v5506_v38  ;;  %v7391_v62 = vpop.f32.mrf.mxu2  ;;  %v5161_v38 = vld [vmem:[%s8292_s1 + $0x178] sm:$0xff] }
 0xacf   : > { %3196 = vmatpush.msrb.mxu3 %v3094_v48  ;;  %v7476_v48 = vld [vmem:[%s8298_s7] sm:$0xff] }
 0xad0   : > { %3031 = vmatpush.msra.mxu0 %v7476_v48 }
 0xad1   : > { %3197 = vmatpush.msrb.mxu3 %v3091_v47  ;;  %v5362_v47 = vld [vmem:[%s8296_s5 + $0x68] sm:$0xff] }
 0xad2   : > { %4162 = vmatpush.msrb.mxu2 %v5362_v47 }
 0xad3   : > { %3198 = vmatpush.msrb.mxu3 %v3088_v36  ;;  %5266 = vmatmul.msk.f32.gmra.mxu2 %vm808_vm2, %v7166_v43 }
 0xad5   : > { %3199 = vmatpush.msrb.mxu3 %v3085_v39  ;;  %v7454_v39 = vpop.f32.mrf.mxu3 }
 0xad6   : > { %5131 = vmatmul.msk.f32.gmra.mxu3 %vm470_vm1, %v5507_v30  ;;  %v7399_v37 = vpop.f32.mrf.mxu2 }
 0xadb   : > { %5267 = vmatmul.msk.f32.gmra.mxu2 %vm808_vm2, %v7184_v54 }
 0xadd   : > { %v7462_v53 = vpop.f32.mrf.mxu3 }
 0xade   : > { %5132 = vmatmul.msk.f32.gmra.mxu3 %vm470_vm1, %v5508_v45  ;;  %v7410_v42 = vpop.f32.mrf.mxu2  ;;  %v5213_v45 = vld [vmem:[%s8292_s1 + $0x40] sm:$0xff] }
 0xae3   : > { %5268 = vmatmul.msk.f32.gmra.mxu2 %vm808_vm2, %v7199_v28 }
 0xae5   : > { %v7479_v5 = vpop.f32.mrf.mxu3 }
 0xae6   : > { %5133 = vmatmul.msk.f32.gmra.mxu3 %vm470_vm1, %v5509_v6  ;;  %v7418_v15 = vpop.f32.mrf.mxu2  ;;  %v2752_v6 = vadd.f32 %v2751_v50, %v7307_v11  ;;  %v5214_v11 = vld [vmem:[%s8292_s1 + $0x48] sm:$0xff] }
 0xaeb   : > { %5269 = vmatmul.msk.f32.gmra.mxu2 %vm808_vm2, %v7211_v56 }
 0xaed   : > { %v7492_v3 = vpop.f32.mrf.mxu3 }
 0xaee   : > { %5134 = vmatmul.msk.f32.gmra.mxu3 %vm470_vm1, %v5510_v31  ;;  %v7426_v18 = vpop.f32.mrf.mxu2 }
 0xaf3   : > { %5270 = vmatmul.msk.f32.gmra.mxu2 %vm808_vm2, %v7222_v49 }
 0xaf5   : > { %v7501_v24 = vpop.f32.mrf.mxu3 }
 0xaf6   : > { %5135 = vmatmul.msk.f32.gmra.mxu3 %vm470_vm1, %v5511_v14  ;;  %v7434_v23 = vpop.f32.mrf.mxu2  ;;  %v2859_v14 = vadd.f32 %v7303_v9, %v2752_v6  ;;  %v2755_v9 = vadd.f32 %v2754_v35, %v7313_v40  ;;  %v5215_v40 = vld [vmem:[%s8292_s1 + $0x50] sm:$0xff]  ;;  %v2758_v35 = vadd.f32 %v7454_v39, %v7319_v21  ;;  %v5216_v21 = vld [vmem:[%s8292_s1 + $0x58] sm:$0xff]  ;;  %v2761_v39 = vadd.f32 %v7462_v53, %v7325_v13  ;;  %v5217_v13 = vld [vmem:[%s8292_s1 + $0x60] sm:$0xff] }
 0xaf7   : > { %v2764_v53 = vadd.f32 %v7479_v5, %v7334_v52  ;;  %v5218_v52 = vld [vmem:[%s8292_s1 + $0x68] sm:$0xff] }
 0xaf8   : > { %v2862_v6 = vadd.f32 %v7321_v59, %v2761_v39 }
 0xafb   : > { %5305 = vmatmul.msk.f32.vlgmr.msra.gmra.mxu2 %vm808_vm2, %v7113_v12 }
 0xafd   : > { %v7511_v29 = vpop.f32.mrf.mxu3 }
 0xafe   : > { %5136 = vmatmul.msk.f32.gmra.mxu3 %vm470_vm1, %v5512_v27  ;;  %v3368_v1 = vpop.f32.mrf.mxu2  ;;  %v7526_v27 = vld [vmem:[%s8297_s6 + $0x6] ss:$0 sm:$0xff] }
 0xb03   : > { %5306 = vmatmul.msk.f32.gmra.mxu2 %vm808_vm2, %v7130_v7 }
 0xb06   : > { %5171 = vmatmul.msk.f32.vlgmr.msrb.gmra.mxu3 %vm470_vm1, %v5154_v19  ;;  %v3371_v60 = vpop.f32.mrf.mxu2 }
 0xb0b   : > { %5307 = vmatmul.msk.f32.gmra.mxu2 %vm808_vm2, %v7148_v8 }
 0xb0e   : > { %5172 = vmatmul.msk.f32.gmra.mxu3 %vm470_vm1, %v5155_v61  ;;  %v3374_v10 = vpop.f32.mrf.mxu2  ;;  %v7531_v61 = vld [vmem:[%s8297_s6 + $0x7] ss:$0 sm:$0xff] }
 0xb13   : > { %5308 = vmatmul.msk.f32.gmra.mxu2 %vm808_vm2, %v7166_v43 }
 0xb16   : > { %5173 = vmatmul.msk.f32.gmra.mxu3 %vm470_vm1, %v5156_v0  ;;  %v3377_v36 = vpop.f32.mrf.mxu2 }
 0xb1b   : > { %5309 = vmatmul.msk.f32.gmra.mxu2 %vm808_vm2, %v7184_v54 }
 0xb1e   : > { %5174 = vmatmul.msk.f32.gmra.mxu3 %vm470_vm1, %v5157_v16  ;;  %v3380_v32 = vpop.f32.mrf.mxu2 }
 0xb23   : > { %5310 = vmatmul.msk.f32.gmra.mxu2 %vm808_vm2, %v7199_v28 }
 0xb26   : > { %5175 = vmatmul.msk.f32.gmra.mxu3 %vm470_vm1, %v5158_v51  ;;  %v3383_v26 = vpop.f32.mrf.mxu2 }
 0xb2b   : > { %5311 = vmatmul.msk.f32.gmra.mxu2 %vm808_vm2, %v7211_v56 }
 0xb2e   : > { %5176 = vmatmul.msk.f32.gmra.mxu3 %vm470_vm1, %v5159_v25  ;;  %v3386_v4 = vpop.f32.mrf.mxu2  ;;  %v2861_v25 = vadd.f32 %v7315_v63, %v2758_v35 }
 0xb33   : > { %5312 = vmatmul.msk.f32.gmra.mxu2 %vm808_vm2, %v7222_v49 }
 0xb36   : > { %5177 = vmatmul.msk.f32.gmra.mxu3 %vm470_vm1, %v5160_v57  ;;  %v3389_v44 = vpop.f32.mrf.mxu2 }
 0xb37   : > { %3432 = vmatpush.msra.mxu3 %v3389_v44 }
 0xb39   : > { %3433 = vmatpush.msra.mxu3 %v3386_v4 }
 0xb3b   : > { %3434 = vmatpush.msra.mxu3 %v3383_v26  ;;  %5363 = vmatmul.msk.f32.vlgmr.msrb.gmra.mxu2 %vm808_vm2, %v7113_v12 }
 0xb3d   : > { %3435 = vmatpush.msra.mxu3 %v3380_v32 }
 0xb3e   : > { %5178 = vmatmul.msk.f32.gmra.mxu3 %vm470_vm1, %v5161_v38  ;;  %v7509_v30 = vpop.f32.mrf.mxu2 }
 0xb3f   : > { %3436 = vmatpush.msra.mxu3 %v3377_v36  ;;  %v2860_v36 = vadd.f32 %v7309_v46, %v2755_v9 }
 0xb41   : > { %3437 = vmatpush.msra.mxu3 %v3374_v10 }
 0xb43   : > { %3438 = vmatpush.msra.mxu3 %v3371_v60  ;;  %5364 = vmatmul.msk.f32.gmra.mxu2 %vm808_vm2, %v7130_v7 }
 0xb45   : > { %3439 = vmatpush.msra.mxu3 %v3368_v1 }
 0xb46   : > { %5221 = vmatmul.msk.f32.vlgmr.msra.gmra.mxu3 %vm470_vm1, %v5213_v45  ;;  %v7520_v31 = vpop.f32.mrf.mxu2 }
 0xb49   : > { %v2927_v19 = vpop.f32.mrf.mxu3 }
 0xb4a   : > { %v2951_v60 = vadd.f32 %v2927_v19, %v2859_v14 }
 0xb4b   : > { %5365 = vmatmul.msk.f32.gmra.mxu2 %vm808_vm2, %v7148_v8 }
 0xb4c   : > { %v2961_v50 = vmul.f32 %v7526_v27, %v2951_v60 }
 0xb4e   : > { %v2971_v1 = vadd.f32 %v7531_v61, %v2961_v50  ;;  %5222 = vmatmul.msk.f32.gmra.mxu3 %vm470_vm1, %v5214_v11  ;;  %v7542_v10 = vpop.f32.mrf.mxu2  ;;  %v2863_v50 = vadd.f32 %v7327_v34, %v2764_v53  ;;  %v2767_v34 = vadd.f32 %v7492_v3, %v7340_v2  ;;  %v5219_v2 = vld [vmem:[%s8292_s1 + $0x70] sm:$0xff]  ;;  %v2770_v3 = vadd.f32 %v7501_v24, %v7346_v41  ;;  %v5220_v41 = vld [vmem:[%s8292_s1 + $0x78] sm:$0xff] }
 0xb4f   : > { %v2773_v24 = vadd.f32 %v7511_v29, %v7352_v20  ;;  %v5271_v20 = vld [vmem:[%s8292_s1 + $0x180] sm:$0xff] }
 0xb50   : > { %v2979_v0 = vmax.f32 %v2971_v1, 0.0  ;;  %v5179_v1 = vld [vmem:[%s8296_s5 + $0x30] sm:$0xff]  ;;  %v2864_v35 = vadd.f32 %v7336_v17, %v2767_v34  ;;  %v5278_v34 = vld [vmem:[%s8292_s1 + $0x1b8] sm:$0xff] }
 0xb51   : > { %v2930_v47 = vpop.f32.mrf.mxu3  ;;  %3242 = vmatpush.msrb.mxu0 %v5179_v1 }
 0xb52   : > { %v2952_v16 = vadd.f32 %v2930_v47, %v2860_v36  ;;  %5137 = vmatmul.msk.f32.vlgmr.msra.gmra.mxu0 %vm808_vm2, %v2979_v0 }
 0xb53   : > { %5366 = vmatmul.msk.f32.gmra.mxu2 %vm808_vm2, %v7166_v43  ;;  %3545 = vmatpush.msra.mxu0 %v7476_v48 }
 0xb54   : > { %v2962_v32 = vmul.f32 %v7526_v27, %v2952_v16 }
 0xb56   : > { %v2972_v51 = vadd.f32 %v7531_v61, %v2962_v32  ;;  %5223 = vmatmul.msk.f32.gmra.mxu3 %vm470_vm1, %v5215_v40  ;;  %v7556_v46 = vpop.f32.mrf.mxu2 }
 0xb58   : > { %v2980_v26 = vmax.f32 %v2972_v51, 0.0 }
 0xb59   : > { %v2933_v4 = vpop.f32.mrf.mxu3 }
 0xb5a   : > { %v2953_v57 = vadd.f32 %v2933_v4, %v2861_v25  ;;  %5138 = vmatmul.msk.f32.gmra.mxu0 %vm808_vm2, %v2980_v26 }
 0xb5b   : > { %5367 = vmatmul.msk.f32.gmra.mxu2 %vm808_vm2, %v7184_v54 }
 0xb5c   : > { %v2963_v44 = vmul.f32 %v7526_v27, %v2953_v57  ;;  %v2865_v57 = vadd.f32 %v7344_v58, %v2770_v3 }
 0xb5e   : > { %v2973_v38 = vadd.f32 %v7531_v61, %v2963_v44  ;;  %5224 = vmatmul.msk.f32.gmra.mxu3 %vm470_vm1, %v5216_v21  ;;  %v3662_v63 = vpop.f32.mrf.mxu2 }
 0xb60   : > { %v2981_v45 = vmax.f32 %v2973_v38, 0.0 }
 0xb61   : > { %v2936_v14 = vpop.f32.mrf.mxu3 }
 0xb62   : > { %v2954_v19 = vadd.f32 %v2936_v14, %v2862_v6  ;;  %5139 = vmatmul.msk.f32.gmra.mxu0 %vm808_vm2, %v2981_v45  ;;  %v2866_v6 = vadd.f32 %v7350_v22, %v2773_v24 }
 0xb63   : > { %5368 = vmatmul.msk.f32.gmra.mxu2 %vm808_vm2, %v7199_v28 }
 0xb64   : > { %v2964_v60 = vmul.f32 %v7526_v27, %v2954_v19 }
 0xb66   : > { %v2974_v11 = vadd.f32 %v7531_v61, %v2964_v60  ;;  %5225 = vmatmul.msk.f32.gmra.mxu3 %vm470_vm1, %v5217_v13  ;;  %v3665_v59 = vpop.f32.mrf.mxu2  ;;  %v5274_v13 = vld [vmem:[%s8292_s1 + $0x198] sm:$0xff] }
 0xb68   : > { %v2982_v9 = vmax.f32 %v2974_v11, 0.0  ;;  %v5275_v11 = vld [vmem:[%s8292_s1 + $0x1a0] sm:$0xff] }
 0xb69   : > { %v2939_v0 = vpop.f32.mrf.mxu3 }
 0xb6a   : > { %v2955_v36 = vadd.f32 %v2939_v0, %v2863_v50  ;;  %5140 = vmatmul.msk.f32.gmra.mxu0 %vm808_vm2, %v2982_v9  ;;  %v5276_v9 = vld [vmem:[%s8292_s1 + $0x1a8] sm:$0xff]  ;;  %v5277_v0 = vld [vmem:[%s8292_s1 + $0x1b0] sm:$0xff] }
 0xb6b   : > { %5369 = vmatmul.msk.f32.gmra.mxu2 %vm808_vm2, %v7211_v56 }
 0xb6c   : > { %v2965_v5 = vmul.f32 %v7526_v27, %v2955_v36 }
 0xb6e   : > { %v2975_v47 = vadd.f32 %v7531_v61, %v2965_v5  ;;  %5226 = vmatmul.msk.f32.gmra.mxu3 %vm470_vm1, %v5218_v52  ;;  %v3668_v16 = vpop.f32.mrf.mxu2 }
 0xb70   : > { %v2983_v40 = vmax.f32 %v2975_v47, 0.0 }
 0xb71   : > { %v2942_v32 = vpop.f32.mrf.mxu3 }
 0xb72   : > { %v2956_v51 = vadd.f32 %v2942_v32, %v2864_v35  ;;  %5141 = vmatmul.msk.f32.gmra.mxu0 %vm808_vm2, %v2983_v40  ;;  %v5314_v32 = vld [vmem:[%s8292_s1 + $0xc8] sm:$0xff] }
 0xb73   : > { %5370 = vmatmul.msk.f32.gmra.mxu2 %vm808_vm2, %v7222_v49 }
 0xb74   : > { %v2966_v26 = vmul.f32 %v7526_v27, %v2956_v51  ;;  %v5471_v51 = vld [vmem:[%s8299_s8] ss:$0 sm:$0xff] }
 0xb76   : > { %v2976_v25 = vadd.f32 %v7531_v61, %v2966_v26  ;;  %5227 = vmatmul.msk.f32.gmra.mxu3 %vm470_vm1, %v5219_v2  ;;  %v3671_v17 = vpop.f32.mrf.mxu2 }
 0xb77   : > { %3714 = vmatpush.msrb.mxu3 %v3671_v17 }
 0xb78   : > { %v2984_v4 = vmax.f32 %v2976_v25, 0.0  ;;  %v5315_v25 = vld [vmem:[%s8292_s1 + $0xd0] sm:$0xff] }
 0xb79   : > { %v2945_v21 = vpop.f32.mrf.mxu3  ;;  %3715 = vmatpush.msrb.mxu3 %v3668_v16  ;;  %v5313_v16 = vld [vmem:[%s8292_s1 + $0xc0] sm:$0xff] }
 0xb7a   : > { %v2957_v39 = vadd.f32 %v2945_v21, %v2865_v57  ;;  %5142 = vmatmul.msk.f32.gmra.mxu0 %vm808_vm2, %v2984_v4 }
 0xb7b   : > { %3716 = vmatpush.msrb.mxu3 %v3665_v59 }
 0xb7c   : > { %v2967_v44 = vmul.f32 %v7526_v27, %v2957_v39  ;;  %v5316_v39 = vld [vmem:[%s8292_s1 + $0xd8] sm:$0xff] }
 0xb7d   : > { %3717 = vmatpush.msrb.mxu3 %v3662_v63 }
 0xb7e   : > { %v2977_v38 = vadd.f32 %v7531_v61, %v2967_v44  ;;  %5228 = vmatmul.msk.f32.gmra.mxu3 %vm470_vm1, %v5220_v41  ;;  %v3882_v58 = vpop.f32.mrf.mxu2 }
 0xb7f   : > { %3718 = vmatpush.msrb.mxu3 %v7556_v46 }
 0xb80   : > { %v2985_v45 = vmax.f32 %v2977_v38, 0.0 }
 0xb81   : > { %v2948_v14 = vpop.f32.mrf.mxu3  ;;  %3719 = vmatpush.msrb.mxu3 %v7542_v10 }
 0xb82   : > { %v2958_v19 = vadd.f32 %v2948_v14, %v2866_v6  ;;  %5143 = vmatmul.msk.f32.gmra.mxu0 %vm808_vm2, %v2985_v45 }
 0xb83   : > { %3720 = vmatpush.msrb.mxu3 %v7520_v31  ;;  %v5272_v31 = vld [vmem:[%s8292_s1 + $0x188] sm:$0xff] }
 0xb84   : > { %v2968_v29 = vmul.f32 %v7526_v27, %v2958_v19 }
 0xb85   : > { %3721 = vmatpush.msrb.mxu3 %v7509_v30  ;;  %v5273_v30 = vld [vmem:[%s8292_s1 + $0x190] sm:$0xff] }
 0xb86   : > { %v2978_v46 = vadd.f32 %v7531_v61, %v2968_v29  ;;  %5279 = vmatmul.msk.f32.vlgmr.msrb.gmra.mxu3 %vm470_vm1, %v5271_v20  ;;  %v3885_v22 = vpop.f32.mrf.mxu2  ;;  %v5318_v20 = vld [vmem:[%s8292_s1 + $0xe8] sm:$0xff] }
 0xb88   : > { %v2986_v63 = vmax.f32 %v2978_v46, 0.0 }
 0xb89   : > { %v7643_v61 = vpop.f32.mrf.mxu3 }
 0xb8a   : > { %5144 = vmatmul.msk.f32.gmra.mxu0 %vm808_vm2, %v2986_v63 }
 0xb8e   : > { %5280 = vmatmul.msk.f32.gmra.mxu3 %vm470_vm1, %v5272_v31  ;;  %v3888_v10 = vpop.f32.mrf.mxu2  ;;  %v5319_v31 = vld [vmem:[%s8292_s1 + $0xf0] sm:$0xff] }
 0xb91   : > { %v7651_v60 = vpop.f32.mrf.mxu3 }
 0xb92   : > { %5180 = vmatmul.msk.f32.vlgmr.msrb.gmra.mxu0 %vm808_vm2, %v7113_v12 }
 0xb96   : > { %5281 = vmatmul.msk.f32.gmra.mxu3 %vm470_vm1, %v5273_v30  ;;  %v3891_v27 = vpop.f32.mrf.mxu2 }
 0xb99   : > { %v7664_v50 = vpop.f32.mrf.mxu3 }
 0xb9a   : > { %5181 = vmatmul.msk.f32.gmra.mxu0 %vm808_vm2, %v7130_v7 }
 0xb9e   : > { %5282 = vmatmul.msk.f32.gmra.mxu3 %vm470_vm1, %v5274_v13  ;;  %v3894_v53 = vpop.f32.mrf.mxu2  ;;  %v5320_v13 = vld [vmem:[%s8292_s1 + $0xf8] sm:$0xff] }
 0xba1   : > { %v7672_v36 = vpop.f32.mrf.mxu3 }
 0xba2   : > { %5182 = vmatmul.msk.f32.gmra.mxu0 %vm808_vm2, %v7148_v8 }
 0xba6   : > { %5283 = vmatmul.msk.f32.gmra.mxu3 %vm470_vm1, %v5275_v11  ;;  %v3897_v59 = vpop.f32.mrf.mxu2 }
 0xba9   : > { %v7683_v47 = vpop.f32.mrf.mxu3 }
 0xbaa   : > { %5183 = vmatmul.msk.f32.gmra.mxu0 %vm808_vm2, %v7166_v43 }
 0xbae   : > { %5284 = vmatmul.msk.f32.gmra.mxu3 %vm470_vm1, %v5276_v9  ;;  %v3900_v1 = vpop.f32.mrf.mxu2  ;;  %v7759_v9 = vld [vmem:[%s8292_s1 + $0x1c0] sm:$0xff] }
 0xbb1   : > { %v7691_v35 = vpop.f32.mrf.mxu3 }
 0xbb2   : > { %5184 = vmatmul.msk.f32.gmra.mxu0 %vm808_vm2, %v7184_v54 }
 0xbb6   : > { %5285 = vmatmul.msk.f32.gmra.mxu3 %vm470_vm1, %v5277_v0  ;;  %v3903_v52 = vpop.f32.mrf.mxu2 }
 0xbb7   : > { %3946 = vmatpush.msra.mxu3 %v3903_v52 }
 0xbb9   : > { %3947 = vmatpush.msra.mxu3 %v3900_v1  ;;  %v7713_v17 = vpop.f32.mrf.mxu3 }
 0xbba   : > { %5185 = vmatmul.msk.f32.gmra.mxu0 %vm808_vm2, %v7199_v28 }
 0xbbb   : > { %3948 = vmatpush.msra.mxu3 %v3897_v59 }
 0xbbd   : > { %3949 = vmatpush.msra.mxu3 %v3894_v53 }
 0xbbe   : > { %5286 = vmatmul.msk.f32.gmra.mxu3 %vm470_vm1, %v5278_v34  ;;  %v7681_v5 = vpop.f32.mrf.mxu2  ;;  %v7771_v34 = vld [vmem:[%s8292_s1 + $0x1c8] sm:$0xff] }
 0xbbf   : > { %3950 = vmatpush.msra.mxu3 %v3891_v27 }
 0xbc1   : > { %3951 = vmatpush.msra.mxu3 %v3888_v10  ;;  %v7721_v41 = vpop.f32.mrf.mxu3 }
 0xbc2   : > { %5186 = vmatmul.msk.f32.gmra.mxu0 %vm808_vm2, %v7211_v56 }
 0xbc3   : > { %3952 = vmatpush.msra.mxu3 %v3885_v22 }
 0xbc5   : > { %3953 = vmatpush.msra.mxu3 %v3882_v58  ;;  %v5317_v58 = vld [vmem:[%s8292_s1 + $0xe0] sm:$0xff] }
 0xbc6   : > { %5321 = vmatmul.msk.f32.vlgmr.msra.gmra.mxu3 %vm470_vm1, %v5313_v16  ;;  %v4167_v40 = vpop.f32.mrf.mxu2 }
 0xbc9   : > { %v7730_v14 = vpop.f32.mrf.mxu3 }
 0xbca   : > { %5187 = vmatmul.msk.f32.gmra.mxu0 %vm808_vm2, %v7222_v49 }
 0xbce   : > { %5322 = vmatmul.msk.f32.gmra.mxu3 %vm470_vm1, %v5314_v32  ;;  %v4170_v2 = vpop.f32.mrf.mxu2 }
 0xbcf   : > { %v3033_v3 = vpop.f32.mrf.mxu0 }
 0xbd0   : > { %v3034_v26 = vadd.f32 %v5471_v51, %v3033_v3 }
 0xbd1   : > { %v7738_v63 = vpop.f32.mrf.mxu3 }
 0xbd2   : > { %3058 = vst.msk [vmem:[%s7706_s14] sm:$0xff] %vm3057_vm3, %v3034_v26  ;;  %v5420_v26 = vld [vmem:[%s8296_s5 + $0x78] sm:$0xff] }
 0xbd6   : > { %5323 = vmatmul.msk.f32.gmra.mxu3 %vm470_vm1, %v5315_v25  ;;  %v4173_v4 = vpop.f32.mrf.mxu2  ;;  %v7799_v25 = vld [vmem:[%s8292_s1 + $0x1e0] sm:$0xff] }
 0xbd7   : > { %v3036_v57 = vpop.f32.mrf.mxu0 }
 0xbd8   : > { %v3037_v21 = vadd.f32 %v5471_v51, %v3036_v57 }
 0xbd9   : > { %v7751_v53 = vpop.f32.mrf.mxu3 }
 0xbda   : > { %3059 = vst.msk [vmem:[%s7706_s14 + $0x8] sm:$0xff] %vm3057_vm3, %v3037_v21  ;;  %v7808_v21 = vld [vmem:[%s8292_s1 + $0x1e8] sm:$0xff] }
 0xbde   : > { %5324 = vmatmul.msk.f32.gmra.mxu3 %vm470_vm1, %v5316_v39  ;;  %v4176_v24 = vpop.f32.mrf.mxu2 }
 0xbdf   : > { %v3039_v44 = vpop.f32.mrf.mxu0 }
 0xbe0   : > { %v3040_v38 = vadd.f32 %v5471_v51, %v3039_v44  ;;  %v7817_v44 = vld [vmem:[%s8292_s1 + $0x1f0] sm:$0xff] }
 0xbe1   : > { %v7762_v1 = vpop.f32.mrf.mxu3 }
 0xbe2   : > { %3060 = vst.msk [vmem:[%s7706_s14 + $0x10] sm:$0xff] %vm3057_vm3, %v3040_v38 }
 0xbe6   : > { %5325 = vmatmul.msk.f32.gmra.mxu3 %vm470_vm1, %v5317_v58  ;;  %v4179_v45 = vpop.f32.mrf.mxu2 }
 0xbe7   : > { %v3042_v6 = vpop.f32.mrf.mxu0 }
 0xbe8   : > { %v3043_v19 = vadd.f32 %v5471_v51, %v3042_v6 }
 0xbea   : > { %3061 = vst.msk [vmem:[%s7706_s14 + $0x18] sm:$0xff] %vm3057_vm3, %v3043_v19 }
 0xbee   : > { %5326 = vmatmul.msk.f32.gmra.mxu3 %vm470_vm1, %v5318_v20  ;;  %v4182_v29 = vpop.f32.mrf.mxu2 }
 0xbef   : > { %v3045_v46 = vpop.f32.mrf.mxu0 }
 0xbf0   : > { %v3046_v22 = vadd.f32 %v5471_v51, %v3045_v46  ;;  %v5188_v46 = vld [vmem:[%s8292_s1 + $0x80] sm:$0xff] }
 0xbf2   : > { %3062 = vst.msk [vmem:[%s7706_s14 + $0x20] sm:$0xff] %vm3057_vm3, %v3046_v22 }
 0xbf6   : > { %5327 = vmatmul.msk.f32.gmra.mxu3 %vm470_vm1, %v5319_v31  ;;  %v4185_v10 = vpop.f32.mrf.mxu2  ;;  %v5189_v31 = vld [vmem:[%s8292_s1 + $0x88] sm:$0xff] }
 0xbf7   : > { %v3048_v30 = vpop.f32.mrf.mxu0  ;;  %4228 = vmatpush.msrb.mxu3 %v4185_v10 }
 0xbf8   : > { %v3049_v27 = vadd.f32 %v5471_v51, %v3048_v30  ;;  %v5190_v30 = vld [vmem:[%s8292_s1 + $0x90] sm:$0xff] }
 0xbf9   : > { %4229 = vmatpush.msrb.mxu3 %v4182_v29 }
 0xbfa   : > { %3063 = vst.msk [vmem:[%s7706_s14 + $0x28] sm:$0xff] %vm3057_vm3, %v3049_v27  ;;  %v5245_v27 = vld [vmem:[%s8296_s5 + $0x40] sm:$0xff] }
 0xbfb   : > { %4230 = vmatpush.msrb.mxu3 %v4179_v45  ;;  %v7826_v45 = vld [vmem:[%s8292_s1 + $0x1f8] sm:$0xff] }
 0xbfd   : > { %4231 = vmatpush.msrb.mxu3 %v4176_v24 }
 0xbfe   : > { %5328 = vmatmul.msk.f32.gmra.mxu3 %vm470_vm1, %v5320_v13 }
 0xbff   : > { %v3051_v11 = vpop.f32.mrf.mxu0  ;;  %4232 = vmatpush.msrb.mxu3 %v4173_v4 }
 0xc00   : > { %v3052_v59 = vadd.f32 %v5471_v51, %v3051_v11  ;;  %v5191_v11 = vld [vmem:[%s8292_s1 + $0x98] sm:$0xff] }
 0xc01   : > { %4233 = vmatpush.msrb.mxu3 %v4170_v2  ;;  %v7789_v2 = vld [vmem:[%s8292_s1 + $0x1d8] sm:$0xff] }
 0xc02   : > { %3064 = vst.msk [vmem:[%s7706_s14 + $0x30] sm:$0xff] %vm3057_vm3, %v3052_v59 }
 0xc03   : > { %4234 = vmatpush.msrb.mxu3 %v4167_v40  ;;  %v7775_v40 = vpop.f32.mrf.mxu3 }
 0xc05   : > { %4235 = vmatpush.msrb.mxu3 %v7681_v5  ;;  %v7780_v5 = vld [vmem:[%s8292_s1 + $0x1d0] sm:$0xff] }
 0xc06   : > { %5379 = vmatmul.msk.f32.vlgmr.msrb.gmra.mxu3 %vm470_vm1, %v7759_v9 }
 0xc07   : > { %v3054_v0 = vpop.f32.mrf.mxu0  ;;  %4467 = vmatpush.msra.mxu3 %v5420_v26  ;;  %v5295_v26 = vld [vmem:[%s8296_s5 + $0x50] sm:$0xff] }
 0xc08   : > { %v3055_v52 = vadd.f32 %v5471_v51, %v3054_v0  ;;  %v5192_v0 = vld [vmem:[%s8292_s1 + $0xa0] sm:$0xff] }
 0xc0a   : > { %3065 = vst.msk [vmem:[%s7706_s14 + $0x38] sm:$0xff] %vm3057_vm3, %v3055_v52  ;;  %v5193_v52 = vld [vmem:[%s8292_s1 + $0xa8] sm:$0xff] }
 0xc0b   : > { %v7784_v51 = vpop.f32.mrf.mxu3 }
 0xc0e   : > { %5380 = vmatmul.msk.f32.gmra.mxu3 %vm470_vm1, %v7771_v34 }
 0xc0f   : > { %v3244_v16 = vpop.f32.mrf.mxu0 }
 0xc13   : > { %v7801_v4 = vpop.f32.mrf.mxu3 }
 0xc16   : > { %5381 = vmatmul.msk.f32.gmra.mxu3 %vm470_vm1, %v7780_v5 }
 0xc17   : > { %v3247_v32 = vpop.f32.mrf.mxu0 }
 0xc1b   : > { %v7810_v39 = vpop.f32.mrf.mxu3 }
 0xc1e   : > { %5382 = vmatmul.msk.f32.gmra.mxu3 %vm470_vm1, %v7789_v2 }
 0xc1f   : > { %v3250_v3 = vpop.f32.mrf.mxu0 }
 0xc23   : > { %v7821_v58 = vpop.f32.mrf.mxu3 }
 0xc26   : > { %5383 = vmatmul.msk.f32.gmra.mxu3 %vm470_vm1, %v7799_v25 }
 0xc27   : > { %v3253_v57 = vpop.f32.mrf.mxu0 }
 0xc2b   : > { %v7830_v19 = vpop.f32.mrf.mxu3 }
 0xc2e   : > { %5384 = vmatmul.msk.f32.gmra.mxu3 %vm470_vm1, %v7808_v21 }
 0xc2f   : > { %v3256_v24 = vpop.f32.mrf.mxu0 }
 0xc33   : > { %v7834_v29 = vpop.f32.mrf.mxu3 }
 0xc36   : > { %5385 = vmatmul.msk.f32.gmra.mxu3 %vm470_vm1, %v7817_v44 }
 0xc37   : > { %v3259_v38 = vpop.f32.mrf.mxu0 }
 0xc3b   : > { %v7841_v22 = vpop.f32.mrf.mxu3 }
 0xc3e   : > { %5386 = vmatmul.msk.f32.gmra.mxu3 %vm470_vm1, %v7826_v45 }
 0xc3f   : > { %v3262_v6 = vpop.f32.mrf.mxu0 }
 0xc43   : > { %v7852_v10 = vpop.f32.mrf.mxu3 }
 0xc46   : > { %5421 = vmatmul.msk.f32.vlgmr.msra.gmra.mxu3 %vm808_vm2, %v7113_v12 }
 0xc47   : > { %v3265_v20 = vpop.f32.mrf.mxu0 }
 0xc48   : > { %3308 = vmatpush.msra.mxu1 %v3265_v20 }
 0xc4a   : > { %3309 = vmatpush.msra.mxu1 %v3262_v6  ;;  %v7919_v6 = vld [vmem:[%s8297_s6 + $0x6] ss:$0 sm:$0xff] }
 0xc4b   : > { %v7863_v13 = vpop.f32.mrf.mxu3 }
 0xc4c   : > { %3310 = vmatpush.msra.mxu1 %v3259_v38 }
 0xc4e   : > { %3311 = vmatpush.msra.mxu1 %v3256_v24  ;;  %5422 = vmatmul.msk.f32.gmra.mxu3 %vm808_vm2, %v7130_v7 }
 0xc50   : > { %3312 = vmatpush.msra.mxu1 %v3253_v57  ;;  %v3202_v57 = vadd.f32 %v7643_v61, %v7375_v55  ;;  %v3205_v55 = vadd.f32 %v7651_v60, %v7383_v33 }
 0xc52   : > { %3313 = vmatpush.msra.mxu1 %v3250_v3  ;;  %v5195_v3 = vld [vmem:[%s8292_s1 + $0xb8] sm:$0xff] }
 0xc53   : > { %v7871_v59 = vpop.f32.mrf.mxu3 }
 0xc54   : > { %3314 = vmatpush.msra.mxu1 %v3247_v32  ;;  %v5194_v32 = vld [vmem:[%s8292_s1 + $0xb0] sm:$0xff] }
 0xc56   : > { %3315 = vmatpush.msra.mxu1 %v3244_v16  ;;  %5423 = vmatmul.msk.f32.gmra.mxu3 %vm808_vm2, %v7148_v8 }
 0xc57   : > { %5196 = vmatmul.msk.f32.vlgmr.msra.gmra.mxu1 %vm470_vm1, %v5188_v46  ;;  %v7925_v46 = vld [vmem:[%s8297_s6 + $0x7] ss:$0 sm:$0xff] }
 0xc58   : > { %3597 = vmatpush.msrb.mxu1 %v5245_v27 }
 0xc5a   : > { %3829 = vmatpush.msra.mxu1 %v5295_v26 }
 0xc5b   : > { %v7882_v16 = vpop.f32.mrf.mxu3 }
 0xc5e   : > { %5424 = vmatmul.msk.f32.gmra.mxu3 %vm808_vm2, %v7166_v43 }
 0xc5f   : > { %5197 = vmatmul.msk.f32.gmra.mxu1 %vm470_vm1, %v5189_v31 }
 0xc66   : > { %5425 = vmatmul.msk.f32.gmra.mxu3 %vm808_vm2, %v7184_v54 }
 0xc67   : > { %5198 = vmatmul.msk.f32.gmra.mxu1 %vm470_vm1, %v5190_v30 }
 0xc6e   : > { %5426 = vmatmul.msk.f32.gmra.mxu3 %vm808_vm2, %v7199_v28 }
 0xc6f   : > { %5199 = vmatmul.msk.f32.gmra.mxu1 %vm470_vm1, %v5191_v11 }
 0xc76   : > { %5427 = vmatmul.msk.f32.gmra.mxu3 %vm808_vm2, %v7211_v56 }
 0xc77   : > { %5200 = vmatmul.msk.f32.gmra.mxu1 %vm470_vm1, %v5192_v0 }
 0xc7e   : > { %5428 = vmatmul.msk.f32.gmra.mxu3 %vm808_vm2, %v7222_v49 }
 0xc7f   : > { %5201 = vmatmul.msk.f32.gmra.mxu1 %vm470_vm1, %v5193_v52  ;;  %v3208_v52 = vadd.f32 %v7664_v50, %v7391_v62 }
 0xc87   : > { %5202 = vmatmul.msk.f32.gmra.mxu1 %vm470_vm1, %v5194_v32 }
 0xc8f   : > { %5203 = vmatmul.msk.f32.gmra.mxu1 %vm470_vm1, %v5195_v3 }
 0xc97   : > { %5246 = vmatmul.msk.f32.vlgmr.msrb.gmra.mxu1 %vm808_vm2, %v7113_v12 }
 0xc9f   : > { %5247 = vmatmul.msk.f32.gmra.mxu1 %vm808_vm2, %v7130_v7 }
 0xca7   : > { %5248 = vmatmul.msk.f32.gmra.mxu1 %vm808_vm2, %v7148_v8 }
 0xcaf   : > { %5249 = vmatmul.msk.f32.gmra.mxu1 %vm808_vm2, %v7166_v43 }
 0xcb7   : > { %5250 = vmatmul.msk.f32.gmra.mxu1 %vm808_vm2, %v7184_v54 }
 0xcbf   : > { %5251 = vmatmul.msk.f32.gmra.mxu1 %vm808_vm2, %v7199_v28 }
 0xcc7   : > { %5252 = vmatmul.msk.f32.gmra.mxu1 %vm808_vm2, %v7211_v56 }
 0xccf   : > { %5253 = vmatmul.msk.f32.gmra.mxu1 %vm808_vm2, %v7222_v49 }
 0xcd4   : > { %v3317_v24 = vpop.f32.mrf.mxu1 }
 0xcd5   : > { %v3341_v38 = vadd.f32 %v3317_v24, %v3202_v57  ;;  %v3211_v57 = vadd.f32 %v7672_v36, %v7399_v37  ;;  %v5345_v37 = vld [vmem:[%s8296_s5 + $0x60] sm:$0xff] }
 0xcd6   : > { %4111 = vmatpush.msrb.mxu1 %v5345_v37  ;;  %v5474_v37 = vld [vmem:[%s8299_s8] ss:$0 sm:$0xff] }
 0xcd7   : > { %v3465_v20 = vadd.f32 %v7730_v14, %v3341_v38  ;;  %5296 = vmatmul.msk.f32.vlgmr.msra.gmra.mxu1 %vm808_vm2, %v7113_v12 }
 0xcd9   : > { %v3475_v31 = vmul.f32 %v7919_v6, %v3465_v20 }
 0xcdb   : > { %v3485_v61 = vadd.f32 %v7925_v46, %v3475_v31  ;;  %v3214_v31 = vadd.f32 %v7683_v47, %v7410_v42  ;;  %v3217_v42 = vadd.f32 %v7691_v35, %v7418_v15 }
 0xcdc   : > { %v3320_v30 = vpop.f32.mrf.mxu1 }
 0xcdd   : > { %v3493_v27 = vmax.f32 %v3485_v61, 0.0  ;;  %v3342_v11 = vadd.f32 %v3320_v30, %v3205_v55 }
 0xcdf   : > { %v3466_v14 = vadd.f32 %v7738_v63, %v3342_v11  ;;  %5229 = vmatmul.msk.f32.vlgmr.msra.gmra.mxu0 %vm808_vm2, %v3493_v27  ;;  %5297 = vmatmul.msk.f32.gmra.mxu1 %vm808_vm2, %v7130_v7 }
 0xce1   : > { %v3476_v0 = vmul.f32 %v7919_v6, %v3466_v14 }
 0xce3   : > { %v3486_v32 = vadd.f32 %v7925_v46, %v3476_v0 }
 0xce4   : > { %v3323_v33 = vpop.f32.mrf.mxu1 }
 0xce5   : > { %v3343_v60 = vadd.f32 %v3323_v33, %v3208_v52  ;;  %v3494_v3 = vmax.f32 %v3486_v32, 0.0  ;;  %v3220_v32 = vadd.f32 %v7713_v17, %v7426_v18 }
 0xce7   : > { %v3467_v26 = vadd.f32 %v7751_v53, %v3343_v60  ;;  %5230 = vmatmul.msk.f32.gmra.mxu0 %vm808_vm2, %v3494_v3  ;;  %5298 = vmatmul.msk.f32.gmra.mxu1 %vm808_vm2, %v7148_v8 }
 0xce9   : > { %v3477_v63 = vmul.f32 %v7919_v6, %v3467_v26  ;;  %v3223_v26 = vadd.f32 %v7721_v41, %v7434_v23 }
 0xceb   : > { %v3487_v24 = vadd.f32 %v7925_v46, %v3477_v63 }
 0xcec   : > { %v3326_v62 = vpop.f32.mrf.mxu1 }
 0xced   : > { %v3344_v50 = vadd.f32 %v3326_v62, %v3211_v57  ;;  %v3495_v38 = vmax.f32 %v3487_v24, 0.0 }
 0xcef   : > { %v3468_v20 = vadd.f32 %v7762_v1, %v3344_v50  ;;  %5231 = vmatmul.msk.f32.gmra.mxu0 %vm808_vm2, %v3495_v38  ;;  %5299 = vmatmul.msk.f32.gmra.mxu1 %vm808_vm2, %v7166_v43 }
 0xcf1   : > { %v3478_v53 = vmul.f32 %v7919_v6, %v3468_v20 }
 0xcf3   : > { %v3488_v55 = vadd.f32 %v7925_v46, %v3478_v53 }
 0xcf4   : > { %v3329_v36 = vpop.f32.mrf.mxu1 }
 0xcf5   : > { %v3345_v61 = vadd.f32 %v3329_v36, %v3214_v31  ;;  %v3496_v1 = vmax.f32 %v3488_v55, 0.0 }
 0xcf7   : > { %v3469_v30 = vadd.f32 %v7775_v40, %v3345_v61  ;;  %5232 = vmatmul.msk.f32.gmra.mxu0 %vm808_vm2, %v3496_v1  ;;  %5300 = vmatmul.msk.f32.gmra.mxu1 %vm808_vm2, %v7184_v54 }
 0xcf9   : > { %v3479_v27 = vmul.f32 %v7919_v6, %v3469_v30 }
 0xcfb   : > { %v3489_v47 = vadd.f32 %v7925_v46, %v3479_v27 }
 0xcfc   : > { %v3332_v11 = vpop.f32.mrf.mxu1 }
 0xcfd   : > { %v3346_v14 = vadd.f32 %v3332_v11, %v3217_v42  ;;  %v3497_v0 = vmax.f32 %v3489_v47, 0.0 }
 0xcff   : > { %v3470_v52 = vadd.f32 %v7784_v51, %v3346_v14  ;;  %5233 = vmatmul.msk.f32.gmra.mxu0 %vm808_vm2, %v3497_v0  ;;  %5301 = vmatmul.msk.f32.gmra.mxu1 %vm808_vm2, %v7199_v28 }
 0xd01   : > { %v3480_v40 = vmul.f32 %v7919_v6, %v3470_v52 }
 0xd03   : > { %v3490_v33 = vadd.f32 %v7925_v46, %v3480_v40 }
 0xd04   : > { %v3335_v15 = vpop.f32.mrf.mxu1 }
 0xd05   : > { %v3347_v35 = vadd.f32 %v3335_v15, %v3220_v32  ;;  %v3498_v60 = vmax.f32 %v3490_v33, 0.0 }
 0xd07   : > { %v3471_v3 = vadd.f32 %v7801_v4, %v3347_v35  ;;  %5234 = vmatmul.msk.f32.gmra.mxu0 %vm808_vm2, %v3498_v60  ;;  %5302 = vmatmul.msk.f32.gmra.mxu1 %vm808_vm2, %v7211_v56  ;;  %v3955_v60 = vpop.f32.mrf.mxu3 }
 0xd09   : > { %v3481_v51 = vmul.f32 %v7919_v6, %v3471_v3 }
 0xd0b   : > { %v3491_v63 = vadd.f32 %v7925_v46, %v3481_v51 }
 0xd0c   : > { %v3338_v18 = vpop.f32.mrf.mxu1 }
 0xd0d   : > { %v3348_v17 = vadd.f32 %v3338_v18, %v3223_v26  ;;  %v3499_v57 = vmax.f32 %v3491_v63, 0.0  ;;  %v8085_v63 = vld [vmem:[%s8297_s6 + $0x6] ss:$0 sm:$0xff] }
 0xd0f   : > { %v3472_v24 = vadd.f32 %v7810_v39, %v3348_v17  ;;  %5235 = vmatmul.msk.f32.gmra.mxu0 %vm808_vm2, %v3499_v57  ;;  %5303 = vmatmul.msk.f32.gmra.mxu1 %vm808_vm2, %v7222_v49  ;;  %v8092_v57 = vld [vmem:[%s8297_s6 + $0x7] ss:$0 sm:$0xff] }
 0xd11   : > { %v3482_v4 = vmul.f32 %v7919_v6, %v3472_v24  ;;  %v5395_v6 = vld [vmem:[%s8296_s5 + $0x70] sm:$0xff] }
 0xd12   : > { %4343 = vmatpush.msra.mxu1 %v5395_v6 }
 0xd13   : > { %v3492_v62 = vadd.f32 %v7925_v46, %v3482_v4 }
 0xd14   : > { %v3599_v50 = vpop.f32.mrf.mxu1 }
 0xd15   : > { %v3500_v38 = vmax.f32 %v3492_v62, 0.0 }
 0xd17   : > { %5236 = vmatmul.msk.f32.gmra.mxu0 %vm808_vm2, %v3500_v38  ;;  %5346 = vmatmul.msk.f32.vlgmr.msrb.gmra.mxu1 %vm808_vm2, %v7113_v12 }
 0xd1c   : > { %v3602_v23 = vpop.f32.mrf.mxu1 }
 0xd1f   : > { %5347 = vmatmul.msk.f32.gmra.mxu1 %vm808_vm2, %v7130_v7 }
 0xd24   : > { %v3605_v41 = vpop.f32.mrf.mxu1 }
 0xd27   : > { %5348 = vmatmul.msk.f32.gmra.mxu1 %vm808_vm2, %v7148_v8 }
 0xd2c   : > { %v3608_v39 = vpop.f32.mrf.mxu1 }
 0xd2f   : > { %5349 = vmatmul.msk.f32.gmra.mxu1 %vm808_vm2, %v7166_v43 }
 0xd34   : > { %v3611_v46 = vpop.f32.mrf.mxu1 }
 0xd37   : > { %5350 = vmatmul.msk.f32.gmra.mxu1 %vm808_vm2, %v7184_v54 }
 0xd3c   : > { %v3614_v20 = vpop.f32.mrf.mxu1 }
 0xd3f   : > { %5351 = vmatmul.msk.f32.gmra.mxu1 %vm808_vm2, %v7199_v28 }
 0xd44   : > { %v3617_v53 = vpop.f32.mrf.mxu1 }
 0xd47   : > { %5352 = vmatmul.msk.f32.gmra.mxu1 %vm808_vm2, %v7211_v56 }
 0xd4c   : > { %v3620_v31 = vpop.f32.mrf.mxu1 }
 0xd4d   : > { %3779 = vmatpush.msrb.mxu0 %v3620_v31 }
 0xd4f   : > { %3780 = vmatpush.msrb.mxu0 %v3617_v53  ;;  %5353 = vmatmul.msk.f32.gmra.mxu1 %vm808_vm2, %v7222_v49 }
 0xd51   : > { %3781 = vmatpush.msrb.mxu0 %v3614_v20 }
 0xd53   : > { %3782 = vmatpush.msrb.mxu0 %v3611_v46 }
 0xd54   : > { %v8010_v55 = vpop.f32.mrf.mxu1 }
 0xd55   : > { %3783 = vmatpush.msrb.mxu0 %v3608_v39 }
 0xd57   : > { %3784 = vmatpush.msrb.mxu0 %v3605_v41  ;;  %5396 = vmatmul.msk.f32.vlgmr.msra.gmra.mxu1 %vm808_vm2, %v7113_v12 }
 0xd59   : > { %3785 = vmatpush.msrb.mxu0 %v3602_v23 }
 0xd5b   : > { %3786 = vmatpush.msrb.mxu0 %v3599_v50 }
 0xd5c   : > { %v3547_v36 = vpop.f32.mrf.mxu0  ;;  %5287 = vmatmul.msk.f32.vlgmr.msrb.gmra.mxu0 %vm470_vm1, %v7759_v9  ;;  %v8019_v61 = vpop.f32.mrf.mxu1 }
 0xd5d   : > { %v3548_v1 = vadd.f32 %v5474_v37, %v3547_v36  ;;  %4059 = vmatpush.msra.mxu0 %v7476_v48 }
 0xd5f   : > { %5237 = vst.msk [vmem:[%s7706_s14 + $0x40] sm:$0xff] %vm3057_vm3, %v3548_v1  ;;  %5397 = vmatmul.msk.f32.gmra.mxu1 %vm808_vm2, %v7130_v7 }
 0xd64   : > { %v3550_v12 = vpop.f32.mrf.mxu0  ;;  %5288 = vmatmul.msk.f32.gmra.mxu0 %vm470_vm1, %v7771_v34  ;;  %v8028_v30 = vpop.f32.mrf.mxu1 }
 0xd65   : > { %v3551_v27 = vadd.f32 %v5474_v37, %v3550_v12 }
 0xd67   : > { %5238 = vst.msk [vmem:[%s7706_s14 + $0x48] sm:$0xff] %vm3057_vm3, %v3551_v27  ;;  %5398 = vmatmul.msk.f32.gmra.mxu1 %vm808_vm2, %v7148_v8 }
 0xd6c   : > { %v3553_v9 = vpop.f32.mrf.mxu0  ;;  %5289 = vmatmul.msk.f32.gmra.mxu0 %vm470_vm1, %v7780_v5  ;;  %v8036_v48 = vpop.f32.mrf.mxu1 }
 0xd6d   : > { %v3554_v7 = vadd.f32 %v5474_v37, %v3553_v9 }
 0xd6f   : > { %5239 = vst.msk [vmem:[%s7706_s14 + $0x50] sm:$0xff] %vm3057_vm3, %v3554_v7  ;;  %5399 = vmatmul.msk.f32.gmra.mxu1 %vm808_vm2, %v7166_v43 }
 0xd74   : > { %v3556_v34 = vpop.f32.mrf.mxu0  ;;  %5290 = vmatmul.msk.f32.gmra.mxu0 %vm470_vm1, %v7789_v2  ;;  %v8044_v42 = vpop.f32.mrf.mxu1 }
 0xd75   : > { %v3557_v8 = vadd.f32 %v5474_v37, %v3556_v34 }
 0xd77   : > { %5240 = vst.msk [vmem:[%s7706_s14 + $0x58] sm:$0xff] %vm3057_vm3, %v3557_v8  ;;  %5400 = vmatmul.msk.f32.gmra.mxu1 %vm808_vm2, %v7184_v54 }
 0xd7c   : > { %v3559_v5 = vpop.f32.mrf.mxu0  ;;  %5291 = vmatmul.msk.f32.gmra.mxu0 %vm470_vm1, %v7799_v25  ;;  %v8052_v47 = vpop.f32.mrf.mxu1 }
 0xd7d   : > { %v3560_v43 = vadd.f32 %v5474_v37, %v3559_v5 }
 0xd7f   : > { %5241 = vst.msk [vmem:[%s7706_s14 + $0x60] sm:$0xff] %vm3057_vm3, %v3560_v43  ;;  %5401 = vmatmul.msk.f32.gmra.mxu1 %vm808_vm2, %v7199_v28 }
 0xd84   : > { %v3562_v2 = vpop.f32.mrf.mxu0  ;;  %5292 = vmatmul.msk.f32.gmra.mxu0 %vm470_vm1, %v7808_v21  ;;  %v8060_v11 = vpop.f32.mrf.mxu1 }
 0xd85   : > { %v3563_v54 = vadd.f32 %v5474_v37, %v3562_v2 }
 0xd87   : > { %5242 = vst.msk [vmem:[%s7706_s14 + $0x68] sm:$0xff] %vm3057_vm3, %v3563_v54  ;;  %5402 = vmatmul.msk.f32.gmra.mxu1 %vm808_vm2, %v7211_v56 }
 0xd8c   : > { %v3565_v25 = vpop.f32.mrf.mxu0  ;;  %5293 = vmatmul.msk.f32.gmra.mxu0 %vm470_vm1, %v7817_v44  ;;  %v8068_v14 = vpop.f32.mrf.mxu1 }
 0xd8d   : > { %v3566_v28 = vadd.f32 %v5474_v37, %v3565_v25 }
 0xd8f   : > { %5243 = vst.msk [vmem:[%s7706_s14 + $0x70] sm:$0xff] %vm3057_vm3, %v3566_v28  ;;  %5403 = vmatmul.msk.f32.gmra.mxu1 %vm808_vm2, %v7222_v49 }
 0xd94   : > { %v3568_v21 = vpop.f32.mrf.mxu0  ;;  %5294 = vmatmul.msk.f32.gmra.mxu0 %vm470_vm1, %v7826_v45  ;;  %v4113_v0 = vpop.f32.mrf.mxu1 }
 0xd95   : > { %v3569_v52 = vadd.f32 %v5474_v37, %v3568_v21  ;;  %v3958_v45 = vpop.f32.mrf.mxu3 }
 0xd97   : > { %5244 = vst.msk [vmem:[%s7706_s14 + $0x78] sm:$0xff] %vm3057_vm3, %v3569_v52 }
 0xd9c   : > { %v4116_v56 = vpop.f32.mrf.mxu1 }
 0xd9d   : > { %v3961_v50 = vpop.f32.mrf.mxu3 }
 0xda4   : > { %v4119_v40 = vpop.f32.mrf.mxu1 }
 0xda5   : > { %v3964_v37 = vpop.f32.mrf.mxu3 }
 0xdac   : > { %v4122_v32 = vpop.f32.mrf.mxu1 }
 0xdb4   : > { %v4125_v44 = vpop.f32.mrf.mxu1 }
 0xdbc   : > { %v4128_v33 = vpop.f32.mrf.mxu1 }
 0xdc4   : > { %v4131_v15 = vpop.f32.mrf.mxu1 }
 0xdcc   : > { %v4134_v35 = vpop.f32.mrf.mxu1 }
 0xdcd   : > { %4293 = vmatpush.msrb.mxu0 %v4134_v35 }
 0xdcf   : > { %4294 = vmatpush.msrb.mxu0 %v4131_v15 }
 0xdd1   : > { %4295 = vmatpush.msrb.mxu0 %v4128_v33 }
 0xdd3   : > { %4296 = vmatpush.msrb.mxu0 %v4125_v44 }
 0xdd4   : > { %v8078_v49 = vpop.f32.mrf.mxu1 }
 0xdd5   : > { %4297 = vmatpush.msrb.mxu0 %v4122_v32 }
 0xdd7   : > { %4298 = vmatpush.msrb.mxu0 %v4119_v40 }
 0xdd9   : > { %v3788_v3 = vpop.f32.mrf.mxu0  ;;  %4299 = vmatpush.msrb.mxu0 %v4116_v56 }
 0xdda   : > { %v3789_v51 = vadd.f32 %v3788_v3, %v7821_v58 }
 0xddb   : > { %4300 = vmatpush.msrb.mxu0 %v4113_v0 }
 0xddc   : > { %v3855_v26 = vadd.f32 %v8010_v55, %v3789_v51  ;;  %v8087_v18 = vpop.f32.mrf.mxu1 }
 0xdde   : > { %v3979_v17 = vadd.f32 %v3955_v60, %v3855_v26 }
 0xde0   : > { %v3989_v24 = vmul.f32 %v8085_v63, %v3979_v17 }
 0xde1   : > { %v3791_v4 = vpop.f32.mrf.mxu0 }
 0xde2   : > { %v3999_v58 = vadd.f32 %v8092_v57, %v3989_v24  ;;  %v3792_v62 = vadd.f32 %v3791_v4, %v7830_v19 }
 0xde4   : > { %v4007_v38 = vmax.f32 %v3999_v58, 0.0  ;;  %v3856_v23 = vadd.f32 %v8019_v61, %v3792_v62  ;;  %v8098_v41 = vpop.f32.mrf.mxu1 }
 0xde6   : > { %v3980_v39 = vadd.f32 %v3958_v45, %v3856_v23  ;;  %5329 = vmatmul.msk.f32.vlgmr.msra.gmra.mxu0 %vm808_vm2, %v4007_v38  ;;  %v5405_v38 = vld [vmem:[%s8292_s1 + $0x148] sm:$0xff]  ;;  %v5356_v23 = vld [vmem:[%s8292_s1 + $0x210] sm:$0xff] }
 0xde8   : > { %v3990_v6 = vmul.f32 %v8085_v63, %v3980_v39  ;;  %v5357_v39 = vld [vmem:[%s8292_s1 + $0x218] sm:$0xff] }
 0xde9   : > { %v3794_v46 = vpop.f32.mrf.mxu0 }
 0xdea   : > { %v3795_v20 = vadd.f32 %v3794_v46, %v7834_v29  ;;  %v4000_v53 = vadd.f32 %v8092_v57, %v3990_v6  ;;  %v5409_v6 = vld [vmem:[%s8292_s1 + $0x168] sm:$0xff]  ;;  %v5358_v46 = vld [vmem:[%s8292_s1 + $0x220] sm:$0xff] }
 0xdec   : > { %v3857_v31 = vadd.f32 %v8028_v30, %v3795_v20  ;;  %v4354_v55 = vpop.f32.mrf.mxu1  ;;  %v4008_v19 = vmax.f32 %v4000_v53, 0.0  ;;  %v3967_v30 = vpop.f32.mrf.mxu3  ;;  %v5410_v53 = vld [vmem:[%s8292_s1 + $0x170] sm:$0xff] }
 0xdee   : > { %v3981_v36 = vadd.f32 %v3961_v50, %v3857_v31  ;;  %5330 = vmatmul.msk.f32.gmra.mxu0 %vm808_vm2, %v4008_v19  ;;  %v5359_v31 = vld [vmem:[%s8292_s1 + $0x228] sm:$0xff] }
 0xdf0   : > { %v3991_v61 = vmul.f32 %v8085_v63, %v3981_v36  ;;  %v5361_v36 = vld [vmem:[%s8292_s1 + $0x238] sm:$0xff] }
 0xdf1   : > { %v3797_v1 = vpop.f32.mrf.mxu0 }
 0xdf2   : > { %v3798_v12 = vadd.f32 %v3797_v1, %v7841_v22  ;;  %v4001_v27 = vadd.f32 %v8092_v57, %v3991_v61  ;;  %v5477_v1 = vld [vmem:[%s8299_s8] ss:$0 sm:$0xff] }
 0xdf4   : > { %v3858_v9 = vadd.f32 %v8036_v48, %v3798_v12  ;;  %v4357_v29 = vpop.f32.mrf.mxu1  ;;  %v4009_v7 = vmax.f32 %v4001_v27, 0.0  ;;  %v3970_v21 = vpop.f32.mrf.mxu3 }
 0xdf6   : > { %v3982_v34 = vadd.f32 %v3964_v37, %v3858_v9  ;;  %5331 = vmatmul.msk.f32.gmra.mxu0 %vm808_vm2, %v4009_v7  ;;  %v5360_v37 = vld [vmem:[%s8292_s1 + $0x230] sm:$0xff] }
 0xdf8   : > { %v3992_v8 = vmul.f32 %v8085_v63, %v3982_v34 }
 0xdf9   : > { %v3800_v5 = vpop.f32.mrf.mxu0 }
 0xdfa   : > { %v3801_v43 = vadd.f32 %v3800_v5, %v7852_v10  ;;  %v4002_v2 = vadd.f32 %v8092_v57, %v3992_v8 }
 0xdfc   : > { %v3859_v54 = vadd.f32 %v8044_v42, %v3801_v43  ;;  %v4360_v22 = vpop.f32.mrf.mxu1  ;;  %v4010_v25 = vmax.f32 %v4002_v2, 0.0  ;;  %v3973_v60 = vpop.f32.mrf.mxu3 }
 0xdfe   : > { %v3983_v28 = vadd.f32 %v3967_v30, %v3859_v54  ;;  %5332 = vmatmul.msk.f32.gmra.mxu0 %vm808_vm2, %v4010_v25  ;;  %v4529_v54 = vld [vmem:[%s8298_s7] sm:$0xff] }
 0xdff   : > { %4573 = vmatpush.msra.mxu0 %v4529_v54 }
 0xe00   : > { %v3993_v48 = vmul.f32 %v8085_v63, %v3983_v28 }
 0xe01   : > { %v3803_v0 = vpop.f32.mrf.mxu0 }
 0xe02   : > { %v3804_v52 = vadd.f32 %v3803_v0, %v7863_v13  ;;  %v4003_v56 = vadd.f32 %v8092_v57, %v3993_v48 }
 0xe04   : > { %v3860_v40 = vadd.f32 %v8052_v47, %v3804_v52  ;;  %v4363_v10 = vpop.f32.mrf.mxu1  ;;  %v4011_v32 = vmax.f32 %v4003_v56, 0.0 }
 0xe06   : > { %v3984_v44 = vadd.f32 %v3970_v21, %v3860_v40  ;;  %5333 = vmatmul.msk.f32.gmra.mxu0 %vm808_vm2, %v4011_v32 }
 0xe08   : > { %v3994_v42 = vmul.f32 %v8085_v63, %v3984_v44 }
 0xe09   : > { %v3806_v33 = vpop.f32.mrf.mxu0 }
 0xe0a   : > { %v3807_v15 = vadd.f32 %v3806_v33, %v7871_v59  ;;  %v4004_v35 = vadd.f32 %v8092_v57, %v3994_v42 }
 0xe0c   : > { %v3861_v45 = vadd.f32 %v8060_v11, %v3807_v15  ;;  %v4366_v13 = vpop.f32.mrf.mxu1  ;;  %v4012_v3 = vmax.f32 %v4004_v35, 0.0  ;;  %v3976_v11 = vpop.f32.mrf.mxu3 }
 0xe0d   : > { %4409 = vmatpush.msra.mxu2 %v4366_v13 }
 0xe0e   : > { %v3985_v51 = vadd.f32 %v3973_v60, %v3861_v45  ;;  %5334 = vmatmul.msk.f32.gmra.mxu0 %vm808_vm2, %v4012_v3  ;;  %v8234_v60 = vld [vmem:[%s8297_s6 + $0x6] ss:$0 sm:$0xff]  ;;  %v8239_v3 = vld [vmem:[%s8297_s6 + $0x7] ss:$0 sm:$0xff] }
 0xe0f   : > { %4410 = vmatpush.msra.mxu2 %v4363_v10 }
 0xe10   : > { %v3995_v47 = vmul.f32 %v8085_v63, %v3985_v51 }
 0xe11   : > { %v3809_v26 = vpop.f32.mrf.mxu0  ;;  %4411 = vmatpush.msra.mxu2 %v4360_v22 }
 0xe12   : > { %v3810_v17 = vadd.f32 %v3809_v26, %v7882_v16  ;;  %v4005_v59 = vadd.f32 %v8092_v57, %v3995_v47  ;;  %v5404_v16 = vld [vmem:[%s8292_s1 + $0x140] sm:$0xff] }
 0xe13   : > { %4412 = vmatpush.msra.mxu2 %v4357_v29 }
 0xe14   : > { %v3862_v24 = vadd.f32 %v8068_v14, %v3810_v17  ;;  %v4013_v4 = vmax.f32 %v4005_v59, 0.0  ;;  %v4237_v20 = vpop.f32.mrf.mxu3 }
 0xe15   : > { %4413 = vmatpush.msra.mxu2 %v4354_v55  ;;  %v5411_v55 = vld [vmem:[%s8292_s1 + $0x178] sm:$0xff] }
 0xe16   : > { %v3986_v58 = vadd.f32 %v3976_v11, %v3862_v24  ;;  %5335 = vmatmul.msk.f32.gmra.mxu0 %vm808_vm2, %v4013_v4 }
 0xe17   : > { %4414 = vmatpush.msra.mxu2 %v8098_v41  ;;  %v5408_v41 = vld [vmem:[%s8292_s1 + $0x160] sm:$0xff] }
 0xe18   : > { %v3996_v62 = vmul.f32 %v8085_v63, %v3986_v58  ;;  %v5354_v63 = vld [vmem:[%s8292_s1 + $0x200] sm:$0xff] }
 0xe19   : > { %4415 = vmatpush.msra.mxu2 %v8087_v18  ;;  %v5355_v18 = vld [vmem:[%s8292_s1 + $0x208] sm:$0xff] }
 0xe1a   : > { %v4006_v50 = vadd.f32 %v8092_v57, %v3996_v62  ;;  %v5407_v57 = vld [vmem:[%s8292_s1 + $0x158] sm:$0xff] }
 0xe1b   : > { %4416 = vmatpush.msra.mxu2 %v8078_v49  ;;  %v5406_v49 = vld [vmem:[%s8292_s1 + $0x150] sm:$0xff] }
 0xe1c   : > { %v4014_v14 = vmax.f32 %v4006_v50, 0.0  ;;  %5412 = vmatmul.msk.f32.vlgmr.msra.gmra.mxu2 %vm470_vm1, %v5404_v16  ;;  %v4240_v19 = vpop.f32.mrf.mxu3 }
 0xe1e   : > { %5336 = vmatmul.msk.f32.gmra.mxu0 %vm808_vm2, %v4014_v14 }
 0xe24   : > { %5413 = vmatmul.msk.f32.gmra.mxu2 %vm470_vm1, %v5405_v38  ;;  %v4243_v61 = vpop.f32.mrf.mxu3 }
 0xe26   : > { %5387 = vmatmul.msk.f32.vlgmr.msrb.gmra.mxu0 %vm470_vm1, %v5354_v63 }
 0xe2c   : > { %5414 = vmatmul.msk.f32.gmra.mxu2 %vm470_vm1, %v5406_v49  ;;  %v4246_v9 = vpop.f32.mrf.mxu3 }
 0xe2e   : > { %5388 = vmatmul.msk.f32.gmra.mxu0 %vm470_vm1, %v5355_v18 }
 0xe34   : > { %5415 = vmatmul.msk.f32.gmra.mxu2 %vm470_vm1, %v5407_v57  ;;  %v8208_v34 = vpop.f32.mrf.mxu3 }
 0xe36   : > { %5389 = vmatmul.msk.f32.gmra.mxu0 %vm470_vm1, %v5356_v23 }
 0xe3c   : > { %5416 = vmatmul.msk.f32.gmra.mxu2 %vm470_vm1, %v5408_v41  ;;  %v8212_v5 = vpop.f32.mrf.mxu3 }
 0xe3e   : > { %5390 = vmatmul.msk.f32.gmra.mxu0 %vm470_vm1, %v5357_v39 }
 0xe44   : > { %5417 = vmatmul.msk.f32.gmra.mxu2 %vm470_vm1, %v5409_v6  ;;  %v8219_v28 = vpop.f32.mrf.mxu3 }
 0xe46   : > { %5391 = vmatmul.msk.f32.gmra.mxu0 %vm470_vm1, %v5358_v46 }
 0xe4c   : > { %5418 = vmatmul.msk.f32.gmra.mxu2 %vm470_vm1, %v5410_v53  ;;  %v8225_v0 = vpop.f32.mrf.mxu3 }
 0xe4e   : > { %5392 = vmatmul.msk.f32.gmra.mxu0 %vm470_vm1, %v5359_v31 }
 0xe54   : > { %5419 = vmatmul.msk.f32.gmra.mxu2 %vm470_vm1, %v5411_v55  ;;  %v4469_v40 = vpop.f32.mrf.mxu3 }
 0xe56   : > { %5393 = vmatmul.msk.f32.gmra.mxu0 %vm470_vm1, %v5360_v37 }
 0xe5c   : > { %v4472_v42 = vpop.f32.mrf.mxu3 }
 0xe5e   : > { %5394 = vmatmul.msk.f32.gmra.mxu0 %vm470_vm1, %v5361_v36 }
 0xe63   : > { %v4061_v12 = vpop.f32.mrf.mxu0 }
 0xe64   : > { %v4062_v27 = vadd.f32 %v5477_v1, %v4061_v12  ;;  %v4475_v59 = vpop.f32.mrf.mxu3 }
 0xe66   : > { %5337 = vst.msk [vmem:[%s7706_s14 + $0x80] sm:$0xff] %vm3057_vm3, %v4062_v27 }
 0xe6b   : > { %v4064_v29 = vpop.f32.mrf.mxu0 }
 0xe6c   : > { %v4065_v7 = vadd.f32 %v5477_v1, %v4064_v29  ;;  %v4478_v49 = vpop.f32.mrf.mxu3 }
 0xe6e   : > { %5338 = vst.msk [vmem:[%s7706_s14 + $0x88] sm:$0xff] %vm3057_vm3, %v4065_v7 }
 0xe73   : > { %v4067_v30 = vpop.f32.mrf.mxu0 }
 0xe74   : > { %v4068_v8 = vadd.f32 %v5477_v1, %v4067_v30  ;;  %v4481_v55 = vpop.f32.mrf.mxu3 }
 0xe76   : > { %5339 = vst.msk [vmem:[%s7706_s14 + $0x90] sm:$0xff] %vm3057_vm3, %v4068_v8 }
 0xe7b   : > { %v4070_v43 = vpop.f32.mrf.mxu0 }
 0xe7c   : > { %v4071_v2 = vadd.f32 %v5477_v1, %v4070_v43  ;;  %v4484_v7 = vpop.f32.mrf.mxu3 }
 0xe7e   : > { %5340 = vst.msk [vmem:[%s7706_s14 + $0x98] sm:$0xff] %vm3057_vm3, %v4071_v2 }
 0xe83   : > { %v4073_v22 = vpop.f32.mrf.mxu0 }
 0xe84   : > { %v4074_v25 = vadd.f32 %v5477_v1, %v4073_v22 }
 0xe86   : > { %5341 = vst.msk [vmem:[%s7706_s14 + $0xa0] sm:$0xff] %vm3057_vm3, %v4074_v25 }
 0xe8b   : > { %v4076_v48 = vpop.f32.mrf.mxu0 }
 0xe8c   : > { %v4077_v21 = vadd.f32 %v5477_v1, %v4076_v48 }
 0xe8e   : > { %5342 = vst.msk [vmem:[%s7706_s14 + $0xa8] sm:$0xff] %vm3057_vm3, %v4077_v21 }
 0xe93   : > { %v4079_v52 = vpop.f32.mrf.mxu0 }
 0xe94   : > { %v4080_v56 = vadd.f32 %v5477_v1, %v4079_v52 }
 0xe96   : > { %5343 = vst.msk [vmem:[%s7706_s14 + $0xb0] sm:$0xff] %vm3057_vm3, %v4080_v56  ;;  %v4487_v56 = vpop.f32.mrf.mxu3 }
 0xe9b   : > { %v4082_v10 = vpop.f32.mrf.mxu0 }
 0xe9c   : > { %v4083_v32 = vadd.f32 %v5477_v1, %v4082_v10 }
 0xe9e   : > { %5344 = vst.msk [vmem:[%s7706_s14 + $0xb8] sm:$0xff] %vm3057_vm3, %v4083_v32 }
 0xe9f   : > { %v4418_v44 = vpop.f32.mrf.mxu2 }
 0xea3   : > { %v4302_v33 = vpop.f32.mrf.mxu0 }
 0xea4   : > { %v4303_v15 = vadd.f32 %v4302_v33, %v4237_v20 }
 0xea6   : > { %v4442_v35 = vadd.f32 %v4418_v44, %v4303_v15 }
 0xea7   : > { %v4421_v45 = vpop.f32.mrf.mxu2 }
 0xea8   : > { %v4493_v13 = vadd.f32 %v4469_v40, %v4442_v35 }
 0xeaa   : > { %v4503_v51 = vmul.f32 %v8234_v60, %v4493_v13  ;;  %v4490_v13 = vpop.f32.mrf.mxu3 }
 0xeab   : > { %v4305_v47 = vpop.f32.mrf.mxu0 }
 0xeac   : > { %v4513_v26 = vadd.f32 %v8239_v3, %v4503_v51  ;;  %v4306_v17 = vadd.f32 %v4305_v47, %v4240_v19 }
 0xeae   : > { %v4521_v24 = vmax.f32 %v4513_v26, 0.0  ;;  %v4443_v4 = vadd.f32 %v4421_v45, %v4306_v17 }
 0xeaf   : > { %v4424_v11 = vpop.f32.mrf.mxu2 }
 0xeb0   : > { %v4494_v58 = vadd.f32 %v4472_v42, %v4443_v4  ;;  %5429 = vmatmul.msk.f32.vlgmr.msra.gmra.mxu0 %vm808_vm2, %v4521_v24 }
 0xeb2   : > { %v4504_v62 = vmul.f32 %v8234_v60, %v4494_v58 }
 0xeb3   : > { %v4308_v16 = vpop.f32.mrf.mxu0 }
 0xeb4   : > { %v4514_v50 = vadd.f32 %v8239_v3, %v4504_v62  ;;  %v4309_v14 = vadd.f32 %v4308_v16, %v4243_v61 }
 0xeb6   : > { %v4522_v38 = vmax.f32 %v4514_v50, 0.0  ;;  %v4444_v63 = vadd.f32 %v4424_v11, %v4309_v14 }
 0xeb7   : > { %v4427_v18 = vpop.f32.mrf.mxu2 }
 0xeb8   : > { %v4495_v57 = vadd.f32 %v4475_v59, %v4444_v63  ;;  %5430 = vmatmul.msk.f32.gmra.mxu0 %vm808_vm2, %v4522_v38 }
 0xeba   : > { %v4505_v23 = vmul.f32 %v8234_v60, %v4495_v57 }
 0xebb   : > { %v4311_v41 = vpop.f32.mrf.mxu0 }
 0xebc   : > { %v4515_v39 = vadd.f32 %v8239_v3, %v4505_v23  ;;  %v4312_v6 = vadd.f32 %v4311_v41, %v4246_v9 }
 0xebe   : > { %v4523_v46 = vmax.f32 %v4515_v39, 0.0  ;;  %v4445_v20 = vadd.f32 %v4427_v18, %v4312_v6 }
 0xebf   : > { %v4430_v53 = vpop.f32.mrf.mxu2 }
 0xec0   : > { %v4496_v31 = vadd.f32 %v4478_v49, %v4445_v20  ;;  %5431 = vmatmul.msk.f32.gmra.mxu0 %vm808_vm2, %v4523_v46 }
 0xec2   : > { %v4506_v19 = vmul.f32 %v8234_v60, %v4496_v31 }
 0xec3   : > { %v4314_v37 = vpop.f32.mrf.mxu0 }
 0xec4   : > { %v4516_v36 = vadd.f32 %v8239_v3, %v4506_v19  ;;  %v4315_v61 = vadd.f32 %v4314_v37, %v8208_v34 }
 0xec6   : > { %v4524_v1 = vmax.f32 %v4516_v36, 0.0  ;;  %v4446_v12 = vadd.f32 %v4430_v53, %v4315_v61 }
 0xec7   : > { %v4433_v27 = vpop.f32.mrf.mxu2 }
 0xec8   : > { %v4497_v29 = vadd.f32 %v4481_v55, %v4446_v12  ;;  %5432 = vmatmul.msk.f32.gmra.mxu0 %vm808_vm2, %v4524_v1 }
 0xeca   : > { %v4507_v9 = vmul.f32 %v8234_v60, %v4497_v29 }
 0xecb   : > { %v4317_v30 = vpop.f32.mrf.mxu0 }
 0xecc   : > { %v4517_v8 = vadd.f32 %v8239_v3, %v4507_v9  ;;  %v4318_v43 = vadd.f32 %v4317_v30, %v8212_v5 }
 0xece   : > { %v4525_v2 = vmax.f32 %v4517_v8, 0.0  ;;  %v4447_v54 = vadd.f32 %v4433_v27, %v4318_v43 }
 0xecf   : > { %v4436_v34 = vpop.f32.mrf.mxu2 }
 0xed0   : > { %v4498_v22 = vadd.f32 %v4484_v7, %v4447_v54  ;;  %5433 = vmatmul.msk.f32.gmra.mxu0 %vm808_vm2, %v4525_v2 }
 0xed2   : > { %v4508_v25 = vmul.f32 %v8234_v60, %v4498_v22 }
 0xed3   : > { %v4320_v48 = vpop.f32.mrf.mxu0 }
 0xed4   : > { %v4518_v21 = vadd.f32 %v8239_v3, %v4508_v25  ;;  %v4321_v52 = vadd.f32 %v4320_v48, %v8219_v28 }
 0xed6   : > { %v4526_v40 = vmax.f32 %v4518_v21, 0.0  ;;  %v4448_v10 = vadd.f32 %v4436_v34, %v4321_v52 }
 0xed7   : > { %v4439_v42 = vpop.f32.mrf.mxu2 }
 0xed8   : > { %v4499_v32 = vadd.f32 %v4487_v56, %v4448_v10  ;;  %5434 = vmatmul.msk.f32.gmra.mxu0 %vm808_vm2, %v4526_v40 }
 0xeda   : > { %v4509_v5 = vmul.f32 %v8234_v60, %v4499_v32 }
 0xedb   : > { %v4323_v44 = vpop.f32.mrf.mxu0 }
 0xedc   : > { %v4519_v33 = vadd.f32 %v8239_v3, %v4509_v5  ;;  %v4324_v15 = vadd.f32 %v4323_v44, %v8225_v0  ;;  %v5480_v0 = vld [vmem:[%s8299_s8] ss:$0 sm:$0xff] }
 0xede   : > { %v4527_v35 = vmax.f32 %v4519_v33, 0.0  ;;  %v4449_v45 = vadd.f32 %v4439_v42, %v4324_v15 }
 0xee0   : > { %v4500_v28 = vadd.f32 %v4490_v13, %v4449_v45  ;;  %5435 = vmatmul.msk.f32.gmra.mxu0 %vm808_vm2, %v4527_v35 }
 0xee2   : > { %v4510_v51 = vmul.f32 %v8234_v60, %v4500_v28 }
 0xee4   : > { %v4520_v47 = vadd.f32 %v8239_v3, %v4510_v51 }
 0xee6   : > { %v4528_v26 = vmax.f32 %v4520_v47, 0.0 }
 0xee8   : > { %5436 = vmatmul.msk.f32.gmra.mxu0 %vm808_vm2, %v4528_v26 }
 0xf2d   : > { %v4575_v17 = vpop.f32.mrf.mxu0 }
 0xf2e   : > { %v4576_v59 = vadd.f32 %v5480_v0, %v4575_v17 }
 0xf30   : > { %5437 = vst.msk [vmem:[%s7706_s14 + $0xc0] sm:$0xff] %vm3057_vm3, %v4576_v59 }
 0xf35   : > { %v4578_v24 = vpop.f32.mrf.mxu0 }
 0xf36   : > { %v4579_v4 = vadd.f32 %v5480_v0, %v4578_v24 }
 0xf38   : > { %5438 = vst.msk [vmem:[%s7706_s14 + $0xc8] sm:$0xff] %vm3057_vm3, %v4579_v4 }
 0xf3d   : > { %v4581_v60 = vpop.f32.mrf.mxu0 }
 0xf3e   : > { %v4582_v3 = vadd.f32 %v5480_v0, %v4581_v60 }
 0xf40   : > { %5439 = vst.msk [vmem:[%s7706_s14 + $0xd0] sm:$0xff] %vm3057_vm3, %v4582_v3 }
 0xf45   : > { %v4584_v11 = vpop.f32.mrf.mxu0 }
 0xf46   : > { %v4585_v58 = vadd.f32 %v5480_v0, %v4584_v11 }
 0xf48   : > { %5440 = vst.msk [vmem:[%s7706_s14 + $0xd8] sm:$0xff] %vm3057_vm3, %v4585_v58 }
 0xf4d   : > { %v4587_v62 = vpop.f32.mrf.mxu0 }
 0xf4e   : > { %v4588_v16 = vadd.f32 %v5480_v0, %v4587_v62 }
 0xf50   : > { %5441 = vst.msk [vmem:[%s7706_s14 + $0xe0] sm:$0xff] %vm3057_vm3, %v4588_v16 }
 0xf55   : > { %v4590_v50 = vpop.f32.mrf.mxu0 }
 0xf56   : > { %v4591_v14 = vadd.f32 %v5480_v0, %v4590_v50 }
 0xf58   : > { %5442 = vst.msk [vmem:[%s7706_s14 + $0xe8] sm:$0xff] %vm3057_vm3, %v4591_v14 }
 0xf5d   : > { %v4593_v38 = vpop.f32.mrf.mxu0 }
 0xf5e   : > { %v4594_v63 = vadd.f32 %v5480_v0, %v4593_v38 }
 0xf60   : > { %5443 = vst.msk [vmem:[%s7706_s14 + $0xf0] sm:$0xff] %vm3057_vm3, %v4594_v63 }
 0xf65   : > { %v4596_v49 = vpop.f32.mrf.mxu0 }
 0xf66   : > { %v4597_v18 = vadd.f32 %v5480_v0, %v4596_v49 }
 0xf68   : > { %5444 = vst.msk [vmem:[%s7706_s14 + $0xf8] sm:$0xff] %vm3057_vm3, %v4597_v18 }
 0xf69 PF: > { %s19_s30 = sadd.s32 1, %s5519_s30  }
 0xf6a   : > { %p16_p4 = scmp.ge.s32.totalorder %s19_s30, 4  }
 0xf6c   :  { %18 = sbr.rel (!%p16_p4) target bundleno = 1 (0x1), region = 130 }

</bundles_post_ra>
